<compile_context>
chip_gen: v7x
topology: tpu7x:2x2x1
jax: 0.10.0
libtpu: 0.0.40
codegen_flags: <defaults>
</compile_context>

<pallas_src>
import jax
import jax.numpy as jnp
import numpy as np
from jax import lax
from jax.experimental import pallas as pl
from jax.experimental.pallas import tpu as pltpu

LANE = 128  # TPU lane width: all GEMM lane dims are padded to this


def _round_up(v, m):
    return ((v + m - 1) // m) * m


def _fused_conv_conv_hardswish(x_nchw, w1, b1, w2, b2):
    """conv1(3x3, pad1) -> conv2(4x4, pad1) -> s2*clip(s2+3,0,6)/6, NCHW in/out."""
    n, cin, h, w = x_nchw.shape
    c1, _, k1, _ = w1.shape                      # (25, 3, 3, 3)
    c2, _, k2, _ = w2.shape                      # (96, 25, 4, 4)
    ho, wo = h + 2 - k2 + 1, w + 2 - k2 + 1      # conv2 output spatial (h-1, w-1)

    k1p = _round_up(k1 * k1 * cin + 1, LANE)     # 27 patch vals + ones(b1) col -> 128
    c1p = _round_up(c1, LANE)                    # 25  -> 128
    c2p = _round_up(c2, LANE)                    # 96  -> 128

    hp = h + 2                                   # conv1-output canvas height (incl. conv2 pad)
    wpp = _round_up(w + 2, 8)                    # canvas width, sublane aligned (18 -> 24)
    mb = ho * wpp                                # conv2 GEMM rows per image (360)
    rb = _round_up(max(hp * wpp, mb + (k2 - 1) * (wpp + 1)), 8)   # plane rows/image (440)

    # ---------------- host-side prep (small, fuses into a few XLA ops) ------------
    xh = jnp.transpose(x_nchw, (0, 2, 3, 1))                         # NHWC
    xp = jnp.pad(xh, ((0, 0), (1, 1), (1, 1), (0, 0)))               # conv1 pad-1
    cols = [xp[:, di:di + h, dj:dj + w, :] for di in range(k1) for dj in range(k1)]
    cols.append(jnp.ones((n, h, w, 1), xh.dtype))                    # ones column (b1 fold)
    cols.append(jnp.zeros((n, h, w, k1p - (k1 * k1 * cin + 1)), xh.dtype))
    patches = jnp.concatenate(cols, axis=-1)                         # (n, h, w, 128)
    # Place patches into the zero canvas: ring rows/cols stay zero patches, so the
    # conv1 GEMM produces conv2's zero padding for free (ones col is 0 there too).
    canvas = jnp.pad(patches, ((0, 0), (1, hp - 1 - h), (1, wpp - 1 - w), (0, 0)))
    p1 = canvas.reshape(n, hp * wpp, k1p)
    p1 = jnp.pad(p1, ((0, 0), (0, rb - hp * wpp), (0, 0)))           # zero guard rows
    p1 = p1.reshape(n * rb, k1p).astype(jnp.bfloat16)                # (n*440, 128)

    w1g = jnp.transpose(w1, (2, 3, 1, 0)).reshape(k1 * k1 * cin, c1)  # (27, 25)
    w1g = jnp.concatenate([w1g, b1.reshape(1, c1)], axis=0)           # b1 row (ones lane)
    w1g = jnp.pad(w1g, ((0, k1p - (k1 * k1 * cin + 1)), (0, c1p - c1))).astype(jnp.bfloat16)

    w2t = jnp.transpose(w2, (2, 3, 1, 0))                             # (4, 4, 25, 96)
    w2t = jnp.pad(w2t, ((0, 0), (0, 0), (0, c1p - c1), (0, c2p - c2)))
    w2g = w2t.reshape(k2 * k2, c1p, c2p).astype(jnp.bfloat16)         # (16, 128, 128)

    b2g = jnp.pad(b2, (0, c2p - c2)).reshape(1, c2p).astype(jnp.float32)

    # ------------------------------ kernel --------------------------------
    def kernel(p1_ref, w1_ref, w2_ref, b2_ref, o_ref, plane_ref):
        # Phase 1: conv1 (+ folded b1, + conv2 zero-pad ring) as ONE lane-dense GEMM.
        # Writes the padded conv1 plane (rb, 128) f32 directly — no scatter.
        plane_ref[...] = jnp.dot(p1_ref[...], w1_ref[...],
                                 preferred_element_type=jnp.float32)

        # Phase 2: conv2 as 16 shift-and-add tap GEMMs accumulated in the f32
        # output block (no im2col patch matrix, no tiny copies).
        o_ref[...] = jnp.broadcast_to(b2_ref[...], (mb, c2p))
        for di in range(k2):
            for dj in range(k2):
                lhs = plane_ref[pl.ds(di * wpp + dj, mb), :].astype(jnp.bfloat16)
                o_ref[...] += jnp.dot(lhs, w2_ref[di * k2 + dj],
                                      preferred_element_type=jnp.float32)

        # Phase 3: fused hardswish-style epilogue s2 * clip(s2+3, 0, 6) / 6.
        s2 = o_ref[...]
        o_ref[...] = s2 * jnp.clip(s2 + 3.0, 0.0, 6.0) * (1.0 / 6.0)

    out_flat = pl.pallas_call(
        kernel,
        out_shape=jax.ShapeDtypeStruct((n * mb, c2p), jnp.float32),
        grid_spec=pltpu.PrefetchScalarGridSpec(
            num_scalar_prefetch=0,
            grid=(n,),                                                # one image per step
            in_specs=[
                pl.BlockSpec((rb, k1p), lambda b: (b, 0)),            # conv1 patches (bf16)
                pl.BlockSpec((k1p, c1p), lambda b: (0, 0)),           # conv1 weight+b1 (bf16)
                pl.BlockSpec((k2 * k2, c1p, c2p), lambda b: (0, 0, 0)),  # conv2 taps (bf16)
                pl.BlockSpec((1, c2p), lambda b: (0, 0)),             # conv2 bias (f32)
            ],
            out_specs=pl.BlockSpec((mb, c2p), lambda b: (b, 0)),
            scratch_shapes=[
                pltpu.VMEM((rb, c1p), jnp.float32),                   # padded conv1 plane
            ],
        ),
        compiler_params=pltpu.CompilerParams(
            dimension_semantics=("parallel",),                        # v7x: 2 TCs, 1 image each
        ),
    )(p1, w1g, w2g, b2g)

    # Drop junk canvas columns and padded channels, then NHWC -> NCHW.
    out = out_flat.reshape(n, ho, wpp, c2p)[:, :, :wo, :c2]
    return jnp.transpose(out, (0, 3, 1, 2))


forward = jax.jit(_fused_conv_conv_hardswish)


def _reference(x, w1, b1, w2, b2):
    """Pure-JAX f32 reference of the implemented semantics."""
    dn = ("NCHW", "OIHW", "NCHW")
    s1 = lax.conv_general_dilated(x, w1, (1, 1), [(1, 1), (1, 1)],
                                  dimension_numbers=dn) + b1[None, :, None, None]
    s2 = lax.conv_general_dilated(s1, w2, (1, 1), [(1, 1), (1, 1)],
                                  dimension_numbers=dn) + b2[None, :, None, None]
    s5 = jnp.clip(s2 + 3.0, 0.0, 6.0)
    return s2 * s5 / 6.0


if __name__ == "__main__":
    key = jax.random.PRNGKey(0)
    k_x, k_w1, k_b1, k_w2, k_b2 = jax.random.split(key, 5)

    # Small shapes consistent with the module: N=2, Cin=3, H=W=16.
    N, Cin, H, W = 2, 3, 16, 16
    x = jax.random.normal(k_x, (N, Cin, H, W), dtype=jnp.float32)

    # Deterministic synthetic parameters (Conv2d shapes from __init__).
    w1 = jax.random.normal(k_w1, (25, 3, 3, 3), dtype=jnp.float32) * 0.1
    b1 = jax.random.normal(k_b1, (25,), dtype=jnp.float32) * 0.1
    w2 = jax.random.normal(k_w2, (96, 25, 4, 4), dtype=jnp.float32) * 0.05
    b2 = jax.random.normal(k_b2, (96,), dtype=jnp.float32) * 0.05

    out = forward(x, w1, b1, w2, b2)
    jax.block_until_ready(out)

    assert out.shape == (N, 96, H - 1, W - 1), out.shape
    assert out.dtype == jnp.float32

    # Loose tolerance: GEMM operands are bf16 by design (f32 accumulation).
    ref = _reference(x, w1, b1, w2, b2)
    np.testing.assert_allclose(np.asarray(out), np.asarray(ref), rtol=0.05, atol=0.05)

    print("KERNEL_OK")
</pallas_src>

<mosaic_0001>
module attributes {stable_mosaic.version = 11 : i64} {
  func.func @kernel(%arg0: i32, %arg1: memref<440x128xbf16, #tpu.memory_space<vmem>>, %arg2: memref<128x128xbf16, #tpu.memory_space<vmem>>, %arg3: memref<16x128x128xbf16, #tpu.memory_space<vmem>>, %arg4: memref<1x128xf32, #tpu.memory_space<vmem>>, %arg5: memref<360x128xf32, #tpu.memory_space<vmem>>, %arg6: memref<440x128xf32, #tpu.memory_space<vmem>>) attributes {dimension_semantics = [#tpu.dimension_semantics<parallel>], iteration_bounds = array<i64: 2>, scalar_prefetch = 0 : i64, scratch_operands = 1 : i64, tpu.core_type = #tpu.core_type<tc>, window_params = [{transform_indices = @transform_0, window_bounds = array<i64: 440, 128>}, {pipeline_mode = #tpu.pipeline_mode<synchronous>, transform_indices = @transform_1, window_bounds = array<i64: 128, 128>}, {pipeline_mode = #tpu.pipeline_mode<synchronous>, transform_indices = @transform_2, window_bounds = array<i64: 16, 128, 128>}, {pipeline_mode = #tpu.pipeline_mode<synchronous>, transform_indices = @transform_3, window_bounds = array<i64: 1, 128>}, {transform_indices = @transform_4, window_bounds = array<i64: 360, 128>}]} {
    %c0 = arith.constant 0 : index
    %c0_0 = arith.constant 0 : index
    %0 = vector.load %arg1[%c0, %c0_0] : memref<440x128xbf16, #tpu.memory_space<vmem>>, vector<440x128xbf16>
    %c0_1 = arith.constant 0 : index
    %c0_2 = arith.constant 0 : index
    %1 = vector.load %arg2[%c0_1, %c0_2] : memref<128x128xbf16, #tpu.memory_space<vmem>>, vector<128x128xbf16>
    %cst = arith.constant dense<0.000000e+00> : vector<440x128xf32>
    %2 = tpu.matmul %0, %1, %cst {dimension_numbers = #tpu.dot_dimension_numbers<[1], [0], [0], [1], [0, 0, 1, 1], [], []>} : vector<440x128xbf16>, vector<128x128xbf16>, vector<440x128xf32> -> vector<440x128xf32>
    %c0_3 = arith.constant 0 : index
    %c0_4 = arith.constant 0 : index
    %3 = vector.load %arg6[%c0_3, %c0_4] : memref<440x128xf32, #tpu.memory_space<vmem>>, vector<440x128xf32>
    tpu.vector_store %arg6[%c0_3, %c0_4], %2 {strides = array<i32>} : memref<440x128xf32, #tpu.memory_space<vmem>>, vector<440x128xf32>,
    %c0_5 = arith.constant 0 : index
    %c0_6 = arith.constant 0 : index
    %4 = vector.load %arg4[%c0_5, %c0_6] : memref<1x128xf32, #tpu.memory_space<vmem>>, vector<1x128xf32>
    %5 = vector.shape_cast %4 : vector<1x128xf32> to vector<1x128xf32>
    %6 = vector.broadcast %5 : vector<1x128xf32> to vector<360x128xf32>
    %c0_7 = arith.constant 0 : index
    %c0_8 = arith.constant 0 : index
    %7 = vector.load %arg5[%c0_7, %c0_8] : memref<360x128xf32, #tpu.memory_space<vmem>>, vector<360x128xf32>
    tpu.vector_store %arg5[%c0_7, %c0_8], %6 {strides = array<i32>} : memref<360x128xf32, #tpu.memory_space<vmem>>, vector<360x128xf32>,
    %c0_9 = arith.constant 0 : index
    %c0_10 = arith.constant 0 : index
    %8 = vector.load %arg6[%c0_9, %c0_10] : memref<440x128xf32, #tpu.memory_space<vmem>>, vector<360x128xf32>
    %9 = arith.truncf %8 : vector<360x128xf32> to vector<360x128xbf16>
    %c0_11 = arith.constant 0 : index
    %c0_12 = arith.constant 0 : index
    %10 = vector.load %arg5[%c0_11, %c0_12] : memref<360x128xf32, #tpu.memory_space<vmem>>, vector<360x128xf32>
    %c0_13 = arith.constant 0 : index
    %c0_14 = arith.constant 0 : index
    %c0_15 = arith.constant 0 : index
    %11 = vector.load %arg3[%c0_13, %c0_14, %c0_15] : memref<16x128x128xbf16, #tpu.memory_space<vmem>>, vector<1x128x128xbf16>
    %12 = vector.shape_cast %11 : vector<1x128x128xbf16> to vector<128x128xbf16>
    %cst_16 = arith.constant dense<0.000000e+00> : vector<360x128xf32>
    %13 = tpu.matmul %9, %12, %cst_16 {dimension_numbers = #tpu.dot_dimension_numbers<[1], [0], [0], [1], [0, 0, 1, 1], [], []>} : vector<360x128xbf16>, vector<128x128xbf16>, vector<360x128xf32> -> vector<360x128xf32>
    %14 = arith.addf %10, %13 : vector<360x128xf32>
    %c0_17 = arith.constant 0 : index
    %c0_18 = arith.constant 0 : index
    %15 = vector.load %arg5[%c0_17, %c0_18] : memref<360x128xf32, #tpu.memory_space<vmem>>, vector<360x128xf32>
    tpu.vector_store %arg5[%c0_17, %c0_18], %14 {strides = array<i32>} : memref<360x128xf32, #tpu.memory_space<vmem>>, vector<360x128xf32>,
    %c1 = arith.constant 1 : index
    %c0_19 = arith.constant 0 : index
    %16 = vector.load %arg6[%c1, %c0_19] : memref<440x128xf32, #tpu.memory_space<vmem>>, vector<360x128xf32>
    %17 = arith.truncf %16 : vector<360x128xf32> to vector<360x128xbf16>
    %c0_20 = arith.constant 0 : index
    %c0_21 = arith.constant 0 : index
    %18 = vector.load %arg5[%c0_20, %c0_21] : memref<360x128xf32, #tpu.memory_space<vmem>>, vector<360x128xf32>
    %c1_22 = arith.constant 1 : index
    %c0_23 = arith.constant 0 : index
    %c0_24 = arith.constant 0 : index
    %19 = vector.load %arg3[%c1_22, %c0_23, %c0_24] : memref<16x128x128xbf16, #tpu.memory_space<vmem>>, vector<1x128x128xbf16>
    %20 = vector.shape_cast %19 : vector<1x128x128xbf16> to vector<128x128xbf16>
    %cst_25 = arith.constant dense<0.000000e+00> : vector<360x128xf32>
    %21 = tpu.matmul %17, %20, %cst_25 {dimension_numbers = #tpu.dot_dimension_numbers<[1], [0], [0], [1], [0, 0, 1, 1], [], []>} : vector<360x128xbf16>, vector<128x128xbf16>, vector<360x128xf32> -> vector<360x128xf32>
    %22 = arith.addf %18, %21 : vector<360x128xf32>
    %c0_26 = arith.constant 0 : index
    %c0_27 = arith.constant 0 : index
    %23 = vector.load %arg5[%c0_26, %c0_27] : memref<360x128xf32, #tpu.memory_space<vmem>>, vector<360x128xf32>
    tpu.vector_store %arg5[%c0_26, %c0_27], %22 {strides = array<i32>} : memref<360x128xf32, #tpu.memory_space<vmem>>, vector<360x128xf32>,
    %c2 = arith.constant 2 : index
    %c0_28 = arith.constant 0 : index
    %24 = vector.load %arg6[%c2, %c0_28] : memref<440x128xf32, #tpu.memory_space<vmem>>, vector<360x128xf32>
    %25 = arith.truncf %24 : vector<360x128xf32> to vector<360x128xbf16>
    %c0_29 = arith.constant 0 : index
    %c0_30 = arith.constant 0 : index
    %26 = vector.load %arg5[%c0_29, %c0_30] : memref<360x128xf32, #tpu.memory_space<vmem>>, vector<360x128xf32>
    %c2_31 = arith.constant 2 : index
    %c0_32 = arith.constant 0 : index
    %c0_33 = arith.constant 0 : index
    %27 = vector.load %arg3[%c2_31, %c0_32, %c0_33] : memref<16x128x128xbf16, #tpu.memory_space<vmem>>, vector<1x128x128xbf16>
    %28 = vector.shape_cast %27 : vector<1x128x128xbf16> to vector<128x128xbf16>
    %cst_34 = arith.constant dense<0.000000e+00> : vector<360x128xf32>
    %29 = tpu.matmul %25, %28, %cst_34 {dimension_numbers = #tpu.dot_dimension_numbers<[1], [0], [0], [1], [0, 0, 1, 1], [], []>} : vector<360x128xbf16>, vector<128x128xbf16>, vector<360x128xf32> -> vector<360x128xf32>
    %30 = arith.addf %26, %29 : vector<360x128xf32>
    %c0_35 = arith.constant 0 : index
    %c0_36 = arith.constant 0 : index
    %31 = vector.load %arg5[%c0_35, %c0_36] : memref<360x128xf32, #tpu.memory_space<vmem>>, vector<360x128xf32>
    tpu.vector_store %arg5[%c0_35, %c0_36], %30 {strides = array<i32>} : memref<360x128xf32, #tpu.memory_space<vmem>>, vector<360x128xf32>,
    %c3 = arith.constant 3 : index
    %c0_37 = arith.constant 0 : index
    %32 = vector.load %arg6[%c3, %c0_37] : memref<440x128xf32, #tpu.memory_space<vmem>>, vector<360x128xf32>
    %33 = arith.truncf %32 : vector<360x128xf32> to vector<360x128xbf16>
    %c0_38 = arith.constant 0 : index
    %c0_39 = arith.constant 0 : index
    %34 = vector.load %arg5[%c0_38, %c0_39] : memref<360x128xf32, #tpu.memory_space<vmem>>, vector<360x128xf32>
    %c3_40 = arith.constant 3 : index
    %c0_41 = arith.constant 0 : index
    %c0_42 = arith.constant 0 : index
    %35 = vector.load %arg3[%c3_40, %c0_41, %c0_42] : memref<16x128x128xbf16, #tpu.memory_space<vmem>>, vector<1x128x128xbf16>
    %36 = vector.shape_cast %35 : vector<1x128x128xbf16> to vector<128x128xbf16>
    %cst_43 = arith.constant dense<0.000000e+00> : vector<360x128xf32>
    %37 = tpu.matmul %33, %36, %cst_43 {dimension_numbers = #tpu.dot_dimension_numbers<[1], [0], [0], [1], [0, 0, 1, 1], [], []>} : vector<360x128xbf16>, vector<128x128xbf16>, vector<360x128xf32> -> vector<360x128xf32>
    %38 = arith.addf %34, %37 : vector<360x128xf32>
    %c0_44 = arith.constant 0 : index
    %c0_45 = arith.constant 0 : index
    %39 = vector.load %arg5[%c0_44, %c0_45] : memref<360x128xf32, #tpu.memory_space<vmem>>, vector<360x128xf32>
    tpu.vector_store %arg5[%c0_44, %c0_45], %38 {strides = array<i32>} : memref<360x128xf32, #tpu.memory_space<vmem>>, vector<360x128xf32>,
    %c24 = arith.constant 24 : index
    %c0_46 = arith.constant 0 : index
    %40 = vector.load %arg6[%c24, %c0_46] : memref<440x128xf32, #tpu.memory_space<vmem>>, vector<360x128xf32>
    %41 = arith.truncf %40 : vector<360x128xf32> to vector<360x128xbf16>
    %c0_47 = arith.constant 0 : index
    %c0_48 = arith.constant 0 : index
    %42 = vector.load %arg5[%c0_47, %c0_48] : memref<360x128xf32, #tpu.memory_space<vmem>>, vector<360x128xf32>
    %c4 = arith.constant 4 : index
    %c0_49 = arith.constant 0 : index
    %c0_50 = arith.constant 0 : index
    %43 = vector.load %arg3[%c4, %c0_49, %c0_50] : memref<16x128x128xbf16, #tpu.memory_space<vmem>>, vector<1x128x128xbf16>
    %44 = vector.shape_cast %43 : vector<1x128x128xbf16> to vector<128x128xbf16>
    %cst_51 = arith.constant dense<0.000000e+00> : vector<360x128xf32>
    %45 = tpu.matmul %41, %44, %cst_51 {dimension_numbers = #tpu.dot_dimension_numbers<[1], [0], [0], [1], [0, 0, 1, 1], [], []>} : vector<360x128xbf16>, vector<128x128xbf16>, vector<360x128xf32> -> vector<360x128xf32>
    %46 = arith.addf %42, %45 : vector<360x128xf32>
    %c0_52 = arith.constant 0 : index
    %c0_53 = arith.constant 0 : index
    %47 = vector.load %arg5[%c0_52, %c0_53] : memref<360x128xf32, #tpu.memory_space<vmem>>, vector<360x128xf32>
    tpu.vector_store %arg5[%c0_52, %c0_53], %46 {strides = array<i32>} : memref<360x128xf32, #tpu.memory_space<vmem>>, vector<360x128xf32>,
    %c25 = arith.constant 25 : index
    %c0_54 = arith.constant 0 : index
    %48 = vector.load %arg6[%c25, %c0_54] : memref<440x128xf32, #tpu.memory_space<vmem>>, vector<360x128xf32>
    %49 = arith.truncf %48 : vector<360x128xf32> to vector<360x128xbf16>
    %c0_55 = arith.constant 0 : index
    %c0_56 = arith.constant 0 : index
    %50 = vector.load %arg5[%c0_55, %c0_56] : memref<360x128xf32, #tpu.memory_space<vmem>>, vector<360x128xf32>
    %c5 = arith.constant 5 : index
    %c0_57 = arith.constant 0 : index
    %c0_58 = arith.constant 0 : index
    %51 = vector.load %arg3[%c5, %c0_57, %c0_58] : memref<16x128x128xbf16, #tpu.memory_space<vmem>>, vector<1x128x128xbf16>
    %52 = vector.shape_cast %51 : vector<1x128x128xbf16> to vector<128x128xbf16>
    %cst_59 = arith.constant dense<0.000000e+00> : vector<360x128xf32>
    %53 = tpu.matmul %49, %52, %cst_59 {dimension_numbers = #tpu.dot_dimension_numbers<[1], [0], [0], [1], [0, 0, 1, 1], [], []>} : vector<360x128xbf16>, vector<128x128xbf16>, vector<360x128xf32> -> vector<360x128xf32>
    %54 = arith.addf %50, %53 : vector<360x128xf32>
    %c0_60 = arith.constant 0 : index
    %c0_61 = arith.constant 0 : index
    %55 = vector.load %arg5[%c0_60, %c0_61] : memref<360x128xf32, #tpu.memory_space<vmem>>, vector<360x128xf32>
    tpu.vector_store %arg5[%c0_60, %c0_61], %54 {strides = array<i32>} : memref<360x128xf32, #tpu.memory_space<vmem>>, vector<360x128xf32>,
    %c26 = arith.constant 26 : index
    %c0_62 = arith.constant 0 : index
    %56 = vector.load %arg6[%c26, %c0_62] : memref<440x128xf32, #tpu.memory_space<vmem>>, vector<360x128xf32>
    %57 = arith.truncf %56 : vector<360x128xf32> to vector<360x128xbf16>
    %c0_63 = arith.constant 0 : index
    %c0_64 = arith.constant 0 : index
    %58 = vector.load %arg5[%c0_63, %c0_64] : memref<360x128xf32, #tpu.memory_space<vmem>>, vector<360x128xf32>
    %c6 = arith.constant 6 : index
    %c0_65 = arith.constant 0 : index
    %c0_66 = arith.constant 0 : index
    %59 = vector.load %arg3[%c6, %c0_65, %c0_66] : memref<16x128x128xbf16, #tpu.memory_space<vmem>>, vector<1x128x128xbf16>
    %60 = vector.shape_cast %59 : vector<1x128x128xbf16> to vector<128x128xbf16>
    %cst_67 = arith.constant dense<0.000000e+00> : vector<360x128xf32>
    %61 = tpu.matmul %57, %60, %cst_67 {dimension_numbers = #tpu.dot_dimension_numbers<[1], [0], [0], [1], [0, 0, 1, 1], [], []>} : vector<360x128xbf16>, vector<128x128xbf16>, vector<360x128xf32> -> vector<360x128xf32>
    %62 = arith.addf %58, %61 : vector<360x128xf32>
    %c0_68 = arith.constant 0 : index
    %c0_69 = arith.constant 0 : index
    %63 = vector.load %arg5[%c0_68, %c0_69] : memref<360x128xf32, #tpu.memory_space<vmem>>, vector<360x128xf32>
    tpu.vector_store %arg5[%c0_68, %c0_69], %62 {strides = array<i32>} : memref<360x128xf32, #tpu.memory_space<vmem>>, vector<360x128xf32>,
    %c27 = arith.constant 27 : index
    %c0_70 = arith.constant 0 : index
    %64 = vector.load %arg6[%c27, %c0_70] : memref<440x128xf32, #tpu.memory_space<vmem>>, vector<360x128xf32>
    %65 = arith.truncf %64 : vector<360x128xf32> to vector<360x128xbf16>
    %c0_71 = arith.constant 0 : index
    %c0_72 = arith.constant 0 : index
    %66 = vector.load %arg5[%c0_71, %c0_72] : memref<360x128xf32, #tpu.memory_space<vmem>>, vector<360x128xf32>
    %c7 = arith.constant 7 : index
    %c0_73 = arith.constant 0 : index
    %c0_74 = arith.constant 0 : index
    %67 = vector.load %arg3[%c7, %c0_73, %c0_74] : memref<16x128x128xbf16, #tpu.memory_space<vmem>>, vector<1x128x128xbf16>
    %68 = vector.shape_cast %67 : vector<1x128x128xbf16> to vector<128x128xbf16>
    %cst_75 = arith.constant dense<0.000000e+00> : vector<360x128xf32>
    %69 = tpu.matmul %65, %68, %cst_75 {dimension_numbers = #tpu.dot_dimension_numbers<[1], [0], [0], [1], [0, 0, 1, 1], [], []>} : vector<360x128xbf16>, vector<128x128xbf16>, vector<360x128xf32> -> vector<360x128xf32>
    %70 = arith.addf %66, %69 : vector<360x128xf32>
    %c0_76 = arith.constant 0 : index
    %c0_77 = arith.constant 0 : index
    %71 = vector.load %arg5[%c0_76, %c0_77] : memref<360x128xf32, #tpu.memory_space<vmem>>, vector<360x128xf32>
    tpu.vector_store %arg5[%c0_76, %c0_77], %70 {strides = array<i32>} : memref<360x128xf32, #tpu.memory_space<vmem>>, vector<360x128xf32>,
    %c48 = arith.constant 48 : index
    %c0_78 = arith.constant 0 : index
    %72 = vector.load %arg6[%c48, %c0_78] : memref<440x128xf32, #tpu.memory_space<vmem>>, vector<360x128xf32>
    %73 = arith.truncf %72 : vector<360x128xf32> to vector<360x128xbf16>
    %c0_79 = arith.constant 0 : index
    %c0_80 = arith.constant 0 : index
    %74 = vector.load %arg5[%c0_79, %c0_80] : memref<360x128xf32, #tpu.memory_space<vmem>>, vector<360x128xf32>
    %c8 = arith.constant 8 : index
    %c0_81 = arith.constant 0 : index
    %c0_82 = arith.constant 0 : index
    %75 = vector.load %arg3[%c8, %c0_81, %c0_82] : memref<16x128x128xbf16, #tpu.memory_space<vmem>>, vector<1x128x128xbf16>
    %76 = vector.shape_cast %75 : vector<1x128x128xbf16> to vector<128x128xbf16>
    %cst_83 = arith.constant dense<0.000000e+00> : vector<360x128xf32>
    %77 = tpu.matmul %73, %76, %cst_83 {dimension_numbers = #tpu.dot_dimension_numbers<[1], [0], [0], [1], [0, 0, 1, 1], [], []>} : vector<360x128xbf16>, vector<128x128xbf16>, vector<360x128xf32> -> vector<360x128xf32>
    %78 = arith.addf %74, %77 : vector<360x128xf32>
    %c0_84 = arith.constant 0 : index
    %c0_85 = arith.constant 0 : index
    %79 = vector.load %arg5[%c0_84, %c0_85] : memref<360x128xf32, #tpu.memory_space<vmem>>, vector<360x128xf32>
    tpu.vector_store %arg5[%c0_84, %c0_85], %78 {strides = array<i32>} : memref<360x128xf32, #tpu.memory_space<vmem>>, vector<360x128xf32>,
    %c49 = arith.constant 49 : index
    %c0_86 = arith.constant 0 : index
    %80 = vector.load %arg6[%c49, %c0_86] : memref<440x128xf32, #tpu.memory_space<vmem>>, vector<360x128xf32>
    %81 = arith.truncf %80 : vector<360x128xf32> to vector<360x128xbf16>
    %c0_87 = arith.constant 0 : index
    %c0_88 = arith.constant 0 : index
    %82 = vector.load %arg5[%c0_87, %c0_88] : memref<360x128xf32, #tpu.memory_space<vmem>>, vector<360x128xf32>
    %c9 = arith.constant 9 : index
    %c0_89 = arith.constant 0 : index
    %c0_90 = arith.constant 0 : index
    %83 = vector.load %arg3[%c9, %c0_89, %c0_90] : memref<16x128x128xbf16, #tpu.memory_space<vmem>>, vector<1x128x128xbf16>
    %84 = vector.shape_cast %83 : vector<1x128x128xbf16> to vector<128x128xbf16>
    %cst_91 = arith.constant dense<0.000000e+00> : vector<360x128xf32>
    %85 = tpu.matmul %81, %84, %cst_91 {dimension_numbers = #tpu.dot_dimension_numbers<[1], [0], [0], [1], [0, 0, 1, 1], [], []>} : vector<360x128xbf16>, vector<128x128xbf16>, vector<360x128xf32> -> vector<360x128xf32>
    %86 = arith.addf %82, %85 : vector<360x128xf32>
    %c0_92 = arith.constant 0 : index
    %c0_93 = arith.constant 0 : index
    %87 = vector.load %arg5[%c0_92, %c0_93] : memref<360x128xf32, #tpu.memory_space<vmem>>, vector<360x128xf32>
    tpu.vector_store %arg5[%c0_92, %c0_93], %86 {strides = array<i32>} : memref<360x128xf32, #tpu.memory_space<vmem>>, vector<360x128xf32>,
    %c50 = arith.constant 50 : index
    %c0_94 = arith.constant 0 : index
    %88 = vector.load %arg6[%c50, %c0_94] : memref<440x128xf32, #tpu.memory_space<vmem>>, vector<360x128xf32>
    %89 = arith.truncf %88 : vector<360x128xf32> to vector<360x128xbf16>
    %c0_95 = arith.constant 0 : index
    %c0_96 = arith.constant 0 : index
    %90 = vector.load %arg5[%c0_95, %c0_96] : memref<360x128xf32, #tpu.memory_space<vmem>>, vector<360x128xf32>
    %c10 = arith.constant 10 : index
    %c0_97 = arith.constant 0 : index
    %c0_98 = arith.constant 0 : index
    %91 = vector.load %arg3[%c10, %c0_97, %c0_98] : memref<16x128x128xbf16, #tpu.memory_space<vmem>>, vector<1x128x128xbf16>
    %92 = vector.shape_cast %91 : vector<1x128x128xbf16> to vector<128x128xbf16>
    %cst_99 = arith.constant dense<0.000000e+00> : vector<360x128xf32>
    %93 = tpu.matmul %89, %92, %cst_99 {dimension_numbers = #tpu.dot_dimension_numbers<[1], [0], [0], [1], [0, 0, 1, 1], [], []>} : vector<360x128xbf16>, vector<128x128xbf16>, vector<360x128xf32> -> vector<360x128xf32>
    %94 = arith.addf %90, %93 : vector<360x128xf32>
    %c0_100 = arith.constant 0 : index
    %c0_101 = arith.constant 0 : index
    %95 = vector.load %arg5[%c0_100, %c0_101] : memref<360x128xf32, #tpu.memory_space<vmem>>, vector<360x128xf32>
    tpu.vector_store %arg5[%c0_100, %c0_101], %94 {strides = array<i32>} : memref<360x128xf32, #tpu.memory_space<vmem>>, vector<360x128xf32>,
    %c51 = arith.constant 51 : index
    %c0_102 = arith.constant 0 : index
    %96 = vector.load %arg6[%c51, %c0_102] : memref<440x128xf32, #tpu.memory_space<vmem>>, vector<360x128xf32>
    %97 = arith.truncf %96 : vector<360x128xf32> to vector<360x128xbf16>
    %c0_103 = arith.constant 0 : index
    %c0_104 = arith.constant 0 : index
    %98 = vector.load %arg5[%c0_103, %c0_104] : memref<360x128xf32, #tpu.memory_space<vmem>>, vector<360x128xf32>
    %c11 = arith.constant 11 : index
    %c0_105 = arith.constant 0 : index
    %c0_106 = arith.constant 0 : index
    %99 = vector.load %arg3[%c11, %c0_105, %c0_106] : memref<16x128x128xbf16, #tpu.memory_space<vmem>>, vector<1x128x128xbf16>
    %100 = vector.shape_cast %99 : vector<1x128x128xbf16> to vector<128x128xbf16>
    %cst_107 = arith.constant dense<0.000000e+00> : vector<360x128xf32>
    %101 = tpu.matmul %97, %100, %cst_107 {dimension_numbers = #tpu.dot_dimension_numbers<[1], [0], [0], [1], [0, 0, 1, 1], [], []>} : vector<360x128xbf16>, vector<128x128xbf16>, vector<360x128xf32> -> vector<360x128xf32>
    %102 = arith.addf %98, %101 : vector<360x128xf32>
    %c0_108 = arith.constant 0 : index
    %c0_109 = arith.constant 0 : index
    %103 = vector.load %arg5[%c0_108, %c0_109] : memref<360x128xf32, #tpu.memory_space<vmem>>, vector<360x128xf32>
    tpu.vector_store %arg5[%c0_108, %c0_109], %102 {strides = array<i32>} : memref<360x128xf32, #tpu.memory_space<vmem>>, vector<360x128xf32>,
    %c72 = arith.constant 72 : index
    %c0_110 = arith.constant 0 : index
    %104 = vector.load %arg6[%c72, %c0_110] : memref<440x128xf32, #tpu.memory_space<vmem>>, vector<360x128xf32>
    %105 = arith.truncf %104 : vector<360x128xf32> to vector<360x128xbf16>
    %c0_111 = arith.constant 0 : index
    %c0_112 = arith.constant 0 : index
    %106 = vector.load %arg5[%c0_111, %c0_112] : memref<360x128xf32, #tpu.memory_space<vmem>>, vector<360x128xf32>
    %c12 = arith.constant 12 : index
    %c0_113 = arith.constant 0 : index
    %c0_114 = arith.constant 0 : index
    %107 = vector.load %arg3[%c12, %c0_113, %c0_114] : memref<16x128x128xbf16, #tpu.memory_space<vmem>>, vector<1x128x128xbf16>
    %108 = vector.shape_cast %107 : vector<1x128x128xbf16> to vector<128x128xbf16>
    %cst_115 = arith.constant dense<0.000000e+00> : vector<360x128xf32>
    %109 = tpu.matmul %105, %108, %cst_115 {dimension_numbers = #tpu.dot_dimension_numbers<[1], [0], [0], [1], [0, 0, 1, 1], [], []>} : vector<360x128xbf16>, vector<128x128xbf16>, vector<360x128xf32> -> vector<360x128xf32>
    %110 = arith.addf %106, %109 : vector<360x128xf32>
    %c0_116 = arith.constant 0 : index
    %c0_117 = arith.constant 0 : index
    %111 = vector.load %arg5[%c0_116, %c0_117] : memref<360x128xf32, #tpu.memory_space<vmem>>, vector<360x128xf32>
    tpu.vector_store %arg5[%c0_116, %c0_117], %110 {strides = array<i32>} : memref<360x128xf32, #tpu.memory_space<vmem>>, vector<360x128xf32>,
    %c73 = arith.constant 73 : index
    %c0_118 = arith.constant 0 : index
    %112 = vector.load %arg6[%c73, %c0_118] : memref<440x128xf32, #tpu.memory_space<vmem>>, vector<360x128xf32>
    %113 = arith.truncf %112 : vector<360x128xf32> to vector<360x128xbf16>
    %c0_119 = arith.constant 0 : index
    %c0_120 = arith.constant 0 : index
    %114 = vector.load %arg5[%c0_119, %c0_120] : memref<360x128xf32, #tpu.memory_space<vmem>>, vector<360x128xf32>
    %c13 = arith.constant 13 : index
    %c0_121 = arith.constant 0 : index
    %c0_122 = arith.constant 0 : index
    %115 = vector.load %arg3[%c13, %c0_121, %c0_122] : memref<16x128x128xbf16, #tpu.memory_space<vmem>>, vector<1x128x128xbf16>
    %116 = vector.shape_cast %115 : vector<1x128x128xbf16> to vector<128x128xbf16>
    %cst_123 = arith.constant dense<0.000000e+00> : vector<360x128xf32>
    %117 = tpu.matmul %113, %116, %cst_123 {dimension_numbers = #tpu.dot_dimension_numbers<[1], [0], [0], [1], [0, 0, 1, 1], [], []>} : vector<360x128xbf16>, vector<128x128xbf16>, vector<360x128xf32> -> vector<360x128xf32>
    %118 = arith.addf %114, %117 : vector<360x128xf32>
    %c0_124 = arith.constant 0 : index
    %c0_125 = arith.constant 0 : index
    %119 = vector.load %arg5[%c0_124, %c0_125] : memref<360x128xf32, #tpu.memory_space<vmem>>, vector<360x128xf32>
    tpu.vector_store %arg5[%c0_124, %c0_125], %118 {strides = array<i32>} : memref<360x128xf32, #tpu.memory_space<vmem>>, vector<360x128xf32>,
    %c74 = arith.constant 74 : index
    %c0_126 = arith.constant 0 : index
    %120 = vector.load %arg6[%c74, %c0_126] : memref<440x128xf32, #tpu.memory_space<vmem>>, vector<360x128xf32>
    %121 = arith.truncf %120 : vector<360x128xf32> to vector<360x128xbf16>
    %c0_127 = arith.constant 0 : index
    %c0_128 = arith.constant 0 : index
    %122 = vector.load %arg5[%c0_127, %c0_128] : memref<360x128xf32, #tpu.memory_space<vmem>>, vector<360x128xf32>
    %c14 = arith.constant 14 : index
    %c0_129 = arith.constant 0 : index
    %c0_130 = arith.constant 0 : index
    %123 = vector.load %arg3[%c14, %c0_129, %c0_130] : memref<16x128x128xbf16, #tpu.memory_space<vmem>>, vector<1x128x128xbf16>
    %124 = vector.shape_cast %123 : vector<1x128x128xbf16> to vector<128x128xbf16>
    %cst_131 = arith.constant dense<0.000000e+00> : vector<360x128xf32>
    %125 = tpu.matmul %121, %124, %cst_131 {dimension_numbers = #tpu.dot_dimension_numbers<[1], [0], [0], [1], [0, 0, 1, 1], [], []>} : vector<360x128xbf16>, vector<128x128xbf16>, vector<360x128xf32> -> vector<360x128xf32>
    %126 = arith.addf %122, %125 : vector<360x128xf32>
    %c0_132 = arith.constant 0 : index
    %c0_133 = arith.constant 0 : index
    %127 = vector.load %arg5[%c0_132, %c0_133] : memref<360x128xf32, #tpu.memory_space<vmem>>, vector<360x128xf32>
    tpu.vector_store %arg5[%c0_132, %c0_133], %126 {strides = array<i32>} : memref<360x128xf32, #tpu.memory_space<vmem>>, vector<360x128xf32>,
    %c75 = arith.constant 75 : index
    %c0_134 = arith.constant 0 : index
    %128 = vector.load %arg6[%c75, %c0_134] : memref<440x128xf32, #tpu.memory_space<vmem>>, vector<360x128xf32>
    %129 = arith.truncf %128 : vector<360x128xf32> to vector<360x128xbf16>
    %c0_135 = arith.constant 0 : index
    %c0_136 = arith.constant 0 : index
    %130 = vector.load %arg5[%c0_135, %c0_136] : memref<360x128xf32, #tpu.memory_space<vmem>>, vector<360x128xf32>
    %c15 = arith.constant 15 : index
    %c0_137 = arith.constant 0 : index
    %c0_138 = arith.constant 0 : index
    %131 = vector.load %arg3[%c15, %c0_137, %c0_138] : memref<16x128x128xbf16, #tpu.memory_space<vmem>>, vector<1x128x128xbf16>
    %132 = vector.shape_cast %131 : vector<1x128x128xbf16> to vector<128x128xbf16>
    %cst_139 = arith.constant dense<0.000000e+00> : vector<360x128xf32>
    %133 = tpu.matmul %129, %132, %cst_139 {dimension_numbers = #tpu.dot_dimension_numbers<[1], [0], [0], [1], [0, 0, 1, 1], [], []>} : vector<360x128xbf16>, vector<128x128xbf16>, vector<360x128xf32> -> vector<360x128xf32>
    %134 = arith.addf %130, %133 : vector<360x128xf32>
    %c0_140 = arith.constant 0 : index
    %c0_141 = arith.constant 0 : index
    %135 = vector.load %arg5[%c0_140, %c0_141] : memref<360x128xf32, #tpu.memory_space<vmem>>, vector<360x128xf32>
    tpu.vector_store %arg5[%c0_140, %c0_141], %134 {strides = array<i32>} : memref<360x128xf32, #tpu.memory_space<vmem>>, vector<360x128xf32>,
    %c0_142 = arith.constant 0 : index
    %c0_143 = arith.constant 0 : index
    %136 = vector.load %arg5[%c0_142, %c0_143] : memref<360x128xf32, #tpu.memory_space<vmem>>, vector<360x128xf32>
    %cst_144 = arith.constant 3.000000e+00 : f32
    %137 = vector.broadcast %cst_144 : f32 to vector<360x128xf32>
    %138 = arith.addf %136, %137 : vector<360x128xf32>
    %cst_145 = arith.constant 0.000000e+00 : f32
    %cst_146 = arith.constant 6.000000e+00 : f32
    %139 = vector.broadcast %cst_145 : f32 to vector<360x128xf32>
    %140 = arith.maximumf %139, %138 : vector<360x128xf32>
    %141 = vector.broadcast %cst_146 : f32 to vector<360x128xf32>
    %142 = arith.minimumf %141, %140 : vector<360x128xf32>
    %143 = arith.mulf %136, %142 : vector<360x128xf32>
    %cst_147 = arith.constant 0.166666672 : f32
    %144 = vector.broadcast %cst_147 : f32 to vector<360x128xf32>
    %145 = arith.mulf %143, %144 : vector<360x128xf32>
    %c0_148 = arith.constant 0 : index
    %c0_149 = arith.constant 0 : index
    %146 = vector.load %arg5[%c0_148, %c0_149] : memref<360x128xf32, #tpu.memory_space<vmem>>, vector<360x128xf32>
    tpu.vector_store %arg5[%c0_148, %c0_149], %145 {strides = array<i32>} : memref<360x128xf32, #tpu.memory_space<vmem>>, vector<360x128xf32>,
    return
  }
  func.func @transform_0(%arg0: i32) -> (i32, i32) {
    %c0_i32 = arith.constant 0 : i32
    %c0_i32_0 = arith.constant 0 : i32
    return %arg0, %c0_i32 : i32, i32
  }
  func.func @transform_1(%arg0: i32) -> (i32, i32) {
    %c0_i32 = arith.constant 0 : i32
    %c0_i32_0 = arith.constant 0 : i32
    %c0_i32_1 = arith.constant 0 : i32
    return %c0_i32, %c0_i32_0 : i32, i32
  }
  func.func @transform_2(%arg0: i32) -> (i32, i32, i32) {
    %c0_i32 = arith.constant 0 : i32
    %c0_i32_0 = arith.constant 0 : i32
    %c0_i32_1 = arith.constant 0 : i32
    %c0_i32_2 = arith.constant 0 : i32
    return %c0_i32, %c0_i32_0, %c0_i32_1 : i32, i32, i32
  }
  func.func @transform_3(%arg0: i32) -> (i32, i32) {
    %c0_i32 = arith.constant 0 : i32
    %c0_i32_0 = arith.constant 0 : i32
    %c0_i32_1 = arith.constant 0 : i32
    return %c0_i32, %c0_i32_0 : i32, i32
  }
  func.func @transform_4(%arg0: i32) -> (i32, i32) {
    %c0_i32 = arith.constant 0 : i32
    %c0_i32_0 = arith.constant 0 : i32
    return %arg0, %c0_i32 : i32, i32
  }
}

</mosaic_0001>

<bundles_post_ra>
// kernel: _fused_conv_conv_hardswish.1
= control target key start
LH: loop header
LB: loop body
LE: loop exit
PB: predicated region body
PF: predicated region fallthrough
CT: control target
= control target key end

     0   :  { %s13501_s15 = smov 0   ;;  %s15729_s0 = inlined_call_operand.vmem [shape: bf16[880,128], index: 0, kind: input, shape index: {}]   ;;  %s15730_s1 = inlined_call_operand.vmem [shape: bf16[128,128], index: 1, kind: input, shape index: {}]   ;;  %s15731_s2 = inlined_call_operand.vmem [shape: bf16[16,128,128], index: 2, kind: input, shape index: {}]   ;;  %s15732_s3 = inlined_call_operand.vmem [shape: f32[1,128], index: 3, kind: input, shape index: {}]   ;;  %s15733_s4 = inlined_call_operand.vmem [shape: f32[720,128], index: 4, kind: output, shape index: {}]  }
   0x1 LB: > { %s8964_s16 = sadd.s32 4294967295, %s13472_s15   ;;  %p8968_p0 = scmp.ge.s32.totalorder %s13472_s15, 1  ;;  %s13472_s15 = sphi %s13501_s15, %s14_s15  }
   0x2   : > { %p163_p1 = scmp.lt.s32.totalorder %s13472_s15, 3 }
   0x4   : > { %p164_p2 = pnand %p8968_p0, %p163_p1 }
   0x5   : > { %v13294_v0 = vld [vmem:[%s15730_s1] sm:$0xff] (!%p164_p2)   ;;  %s189_s19 = smul.u32 (!%p164_p2), 55, %s8964_s16  ;;  %v13295_v1 = vld [vmem:[%s15730_s1 + $0x8] sm:$0xff] (!%p164_p2)   ;;  %v13296_v2 = vld [vmem:[%s15730_s1 + $0x10] sm:$0xff] (!%p164_p2)   ;;  %v13474_v5 = vmov (!%p164_p2), 0.0   ;;  %vm13475_vm0 = vmmov (!%p164_p2), 0  }
   0x6   : > { %167 = sbr.rel (%p164_p2) target bundleno = 2080 (0x820), region = 36  ;;  %9910 = vmatprep.subr.bf16.mxu0 (!%p164_p2), %v13294_v0  ;;  %v13297_v3 = vld [vmem:[%s15730_s1 + $0x18] sm:$0xff] (!%p164_p2)   ;;  %11710 = vmatprep.subr.bf16.mxu1 (!%p164_p2), %v13474_v5  ;;  %v13298_v6 = vld [vmem:[%s15730_s1 + $0x20] sm:$0xff] (!%p164_p2)   ;;  %v13299_v7 = vld [vmem:[%s15730_s1 + $0x28] sm:$0xff] (!%p164_p2)  }
   0x7   : > { %p190_p3 = scmp.lt.s32.totalorder (!%p164_p2), %s189_s19, 109  ;;  %9911 = vmatpush3.bf16.msra.mxu0 (!%p164_p2), %v13294_v0  ;;  %v13300_v8 = vld [vmem:[%s15730_s1 + $0x30] sm:$0xff] (!%p164_p2)   ;;  %v13301_v9 = vld [vmem:[%s15730_s1 + $0x38] sm:$0xff] (!%p164_p2)   ;;  %v13330_v12 = vld [vmem:[%s15731_s2] sm:$0xff] (!%p164_p2)   ;;  %10818 = vmatprep.mubr.msk.bf16.mxu1 (!%p164_p2), %vm13475_vm0, %v13474_v5  ;;  %s195_s22 = smul.u32 (!%p164_p2), 45, %s8964_s16 }
   0x8   : > { %9912 = vmatprep.subr.bf16.mxu0 (!%p164_p2), %v13295_v1  ;;  %v13331_v15 = vld [vmem:[%s15731_s2 + $0x8] sm:$0xff] (!%p164_p2)   ;;  %v13332_v16 = vld [vmem:[%s15731_s2 + $0x10] sm:$0xff] (!%p164_p2)   ;;  %v13333_v19 = vld [vmem:[%s15731_s2 + $0x18] sm:$0xff] (!%p164_p2)  }
   0x9   : > { %v13334_v20 = vld [vmem:[%s15731_s2 + $0x20] sm:$0xff] (!%p164_p2)   ;;  %v13335_v37 = vld [vmem:[%s15731_s2 + $0x28] sm:$0xff] (!%p164_p2)   ;;  %v13336_v38 = vld [vmem:[%s15731_s2 + $0x30] sm:$0xff] (!%p164_p2)   ;;  %p196_p4 = scmp.lt.s32.totalorder (!%p164_p2), %s195_s22, 89 }
   0xa   : > { %v13337_v41 = vld [vmem:[%s15731_s2 + $0x38] sm:$0xff] (!%p164_p2)   ;;  %v13338_v45 = vld [vmem:[%s15731_s2 + $0x1c0] sm:$0xff] (!%p164_p2)   ;;  %v13339_v46 = vld [vmem:[%s15731_s2 + $0x1c8] sm:$0xff] (!%p164_p2)  }
   0xb   : > { %9913 = vmatpush3.bf16.msra.mxu0 (!%p164_p2), %v13295_v1  ;;  %11718 = vmatpush3.bf16.msra.mxu1 (!%p164_p2), %v13338_v45  ;;  %v13340_v47 = vld [vmem:[%s15731_s2 + $0x1d0] sm:$0xff] (!%p164_p2)   ;;  %v13341_v48 = vld [vmem:[%s15731_s2 + $0x1d8] sm:$0xff] (!%p164_p2)   ;;  %v13342_v49 = vld [vmem:[%s15731_s2 + $0x1e0] sm:$0xff] (!%p164_p2)  }
   0xc   : > { %9914 = vmatprep.subr.bf16.mxu0 (!%p164_p2), %v13296_v2  ;;  %11711 = vmatprep.subr.bf16.mxu1 (!%p164_p2), %v13474_v5  ;;  %v13343_v50 = vld [vmem:[%s15731_s2 + $0x1e8] sm:$0xff] (!%p164_p2)   ;;  %v13344_v51 = vld [vmem:[%s15731_s2 + $0x1f0] sm:$0xff] (!%p164_p2)   ;;  %v13345_v52 = vld [vmem:[%s15731_s2 + $0x1f8] sm:$0xff] (!%p164_p2)  }
   0xd   : > { %s15735_s19 = smov (!%p190_p3, %s189_s19), 109  ;;  %s15737_s22 = smov (!%p196_p4, %s195_s22), 89 }
   0xe   : > { %s8969_s24 = sshll.u32 %s15735_s19, 2  ;;  %s8970_s23 = sshll.u32 %s15737_s22, 3 }
   0xf   : > { %s13526_s29 = scalar_lea.vmem %s15729_s0, %s8969_s24  ;;  %9915 = vmatpush3.bf16.msra.mxu0 %v13296_v2  ;;  %11719 = vmatpush3.bf16.msra.mxu1 %v13339_v46  ;;  %s15464_s27 = scalar_lea.vmem %s15733_s4, %s8970_s23 }
  0x10   : > { %v13302_v4 = vld [vmem:[%s13526_s29] sm:$0xff]   ;;  %9916 = vmatprep.subr.bf16.mxu0 %v13297_v3  ;;  %v13303_v10 = vld [vmem:[%s13526_s29 + $0x8] sm:$0xff]   ;;  %v13304_v11 = vld [vmem:[%s13526_s29 + $0x10] sm:$0xff]   ;;  %11712 = vmatprep.subr.bf16.mxu1 %v13474_v5 }
  0x11   : > { %9926 = vmatprep.mubr.bf16.mxu0 %v13302_v4  ;;  %v13305_v13 = vld [vmem:[%s13526_s29 + $0x18] sm:$0xff]   ;;  %v13306_v14 = vld [vmem:[%s13526_s29 + $0x20] sm:$0xff]   ;;  %v13307_v17 = vld [vmem:[%s13526_s29 + $0x28] sm:$0xff]  }
  0x12   : > { %v13308_v18 = vld [vmem:[%s13526_s29 + $0x30] sm:$0xff]   ;;  %v13309_v21 = vld [vmem:[%s13526_s29 + $0x38] sm:$0xff]   ;;  %v13310_v22 = vld [vmem:[%s13526_s29 + $0x40] sm:$0xff]  }
  0x13   : > { %9917 = vmatpush3.bf16.msra.mxu0 %v13297_v3  ;;  %v13311_v23 = vld [vmem:[%s13526_s29 + $0x48] sm:$0xff]   ;;  %v13312_v24 = vld [vmem:[%s13526_s29 + $0x50] sm:$0xff]   ;;  %v13313_v25 = vld [vmem:[%s13526_s29 + $0x58] sm:$0xff]   ;;  %11720 = vmatpush3.bf16.msra.mxu1 %v13340_v47 }
  0x14   : > { %9918 = vmatprep.subr.bf16.mxu0 %v13298_v6  ;;  %v13314_v26 = vld [vmem:[%s13526_s29 + $0x60] sm:$0xff]   ;;  %v13315_v27 = vld [vmem:[%s13526_s29 + $0x68] sm:$0xff]   ;;  %v13316_v28 = vld [vmem:[%s13526_s29 + $0x70] sm:$0xff]   ;;  %11713 = vmatprep.subr.bf16.mxu1 %v13474_v5 }
  0x15   : > { %v13317_v29 = vld [vmem:[%s13526_s29 + $0x78] sm:$0xff]   ;;  %v13318_v30 = vld [vmem:[%s13526_s29 + $0x80] sm:$0xff]   ;;  %v13319_v31 = vld [vmem:[%s13526_s29 + $0x88] sm:$0xff]  }
  0x16   : > { %v13320_v32 = vld [vmem:[%s13526_s29 + $0x90] sm:$0xff]   ;;  %v13321_v33 = vld [vmem:[%s13526_s29 + $0x98] sm:$0xff]   ;;  %v13322_v34 = vld [vmem:[%s13526_s29 + $0xa0] sm:$0xff]  }
  0x17   : > { %9919 = vmatpush3.bf16.msra.mxu0 %v13298_v6  ;;  %v13323_v35 = vld [vmem:[%s13526_s29 + $0xa8] sm:$0xff]   ;;  %v13324_v36 = vld [vmem:[%s13526_s29 + $0xb0] sm:$0xff]   ;;  %v13325_v39 = vld [vmem:[%s13526_s29 + $0xb8] sm:$0xff]   ;;  %11721 = vmatpush3.bf16.msra.mxu1 %v13341_v48 }
  0x18   : > { %9920 = vmatprep.subr.bf16.mxu0 %v13299_v7  ;;  %v13326_v40 = vld [vmem:[%s13526_s29 + $0xc0] sm:$0xff]   ;;  %v13327_v42 = vld [vmem:[%s13526_s29 + $0xc8] sm:$0xff]   ;;  %v13328_v43 = vld [vmem:[%s13526_s29 + $0xd0] sm:$0xff]   ;;  %11714 = vmatprep.subr.bf16.mxu1 %v13474_v5 }
  0x19   : > { %v13329_v44 = vld [vmem:[%s13526_s29 + $0xd8] ss:$0 sps:$4 sm:$0xff]  }
  0x1b   : > { %9921 = vmatpush3.bf16.msra.mxu0 %v13299_v7  ;;  %11722 = vmatpush3.bf16.msra.mxu1 %v13342_v49 }
  0x1c   : > { %9922 = vmatprep.subr.bf16.mxu0 %v13300_v8  ;;  %11715 = vmatprep.subr.bf16.mxu1 %v13474_v5 }
  0x1f   : > { %9923 = vmatpush3.bf16.msra.mxu0 %v13300_v8  ;;  %11723 = vmatpush3.bf16.msra.mxu1 %v13343_v50 }
  0x20   : > { %9924 = vmatprep.subr.bf16.mxu0 %v13301_v9  ;;  %11716 = vmatprep.subr.bf16.mxu1 %v13474_v5 }
  0x23   : > { %9925 = vmatpush3.bf16.msra.mxu0 %v13301_v9  ;;  %11724 = vmatpush3.bf16.msra.mxu1 %v13344_v51 }
  0x24   : > { %9982 = vmatprep.subr.bf16.mxu0 %v13474_v5  ;;  %11717 = vmatprep.subr.bf16.mxu1 %v13474_v5 }
  0x26   : > { %9927 = vmatmul.mubr.bf16.vlgmr.msra.gmra.mrb[0].mxu0 %v13303_v10 }
  0x27   : > { %9930 = vmatprep.mubr.bf16.mxu0 %v13304_v11  ;;  %9983 = vmatpush3.bf16.msra.mxu0 %v13330_v12 }
  0x28   : > { %9984 = vmatprep.subr.bf16.mxu0 %v13474_v5  ;;  %11725 = vmatpush3.bf16.msra.mxu1 %v13345_v52 }
  0x29   : > { %10846 = vmatprep.subr.bf16.mxu1 %v13474_v5 }
  0x2b   : > { %9985 = vmatpush3.bf16.msra.mxu0 %v13331_v15 }
  0x2c   : > { %9986 = vmatprep.subr.bf16.mxu0 %v13474_v5 }
  0x2e   : > { %9931 = vmatmul.mubr.bf16.gmra.mrb[4].mxu0 %v13305_v13 }
  0x2f   : > { %9934 = vmatprep.mubr.bf16.mxu0 %v13306_v14  ;;  %9987 = vmatpush3.bf16.msra.mxu0 %v13332_v16  ;;  %v13356_v14 = vld [vmem:[%s15731_s2 + $0x40] sm:$0xff]  }
  0x30   : > { %9988 = vmatprep.subr.bf16.mxu0 %v13474_v5 }
  0x33   : > { %9989 = vmatpush3.bf16.msra.mxu0 %v13333_v19 }
  0x34   : > { %9990 = vmatprep.subr.bf16.mxu0 %v13474_v5 }
  0x36   : > { %9935 = vmatmul.mubr.bf16.gmra.mrb[8].mxu0 %v13307_v17  ;;  %v13357_v17 = vld [vmem:[%s15731_s2 + $0x48] sm:$0xff]  }
  0x37   : > { %9938 = vmatprep.mubr.bf16.mxu0 %v13308_v18  ;;  %9991 = vmatpush3.bf16.msra.mxu0 %v13334_v20 }
  0x38   : > { %9992 = vmatprep.subr.bf16.mxu0 %v13474_v5 }
  0x3b   : > { %9993 = vmatpush3.bf16.msra.mxu0 %v13335_v37 }
  0x3c   : > { %9994 = vmatprep.subr.bf16.mxu0 %v13474_v5 }
  0x3e   : > { %9939 = vmatmul.mubr.bf16.gmra.mrb[12].mxu0 %v13309_v21 }
  0x3f   : > { %9942 = vmatprep.mubr.bf16.mxu0 %v13310_v22  ;;  %9995 = vmatpush3.bf16.msra.mxu0 %v13336_v38  ;;  %v13358_v22 = vld [vmem:[%s15731_s2 + $0x50] sm:$0xff]  }
  0x40   : > { %9996 = vmatprep.subr.bf16.mxu0 %v13474_v5  ;;  %v13363_v38 = vld [vmem:[%s15731_s2 + $0x70] sm:$0xff]  }
  0x43   : > { %9997 = vmatpush3.bf16.msra.mxu0 %v13337_v41  ;;  %v13364_v41 = vld [vmem:[%s15731_s2 + $0x78] sm:$0xff]  }
  0x44   : > { %10090 = vmatprep.subr.bf16.mxu0 %v13474_v5 }
  0x46   : > { %9943 = vmatmul.mubr.bf16.gmra.mrb[16].mxu0 %v13311_v23 }
  0x47   : > { %9946 = vmatprep.mubr.bf16.mxu0 %v13312_v24 }
  0x4e   : > { %9947 = vmatmul.mubr.bf16.gmra.mrb[20].mxu0 %v13313_v25  ;;  %v13359_v25 = vld [vmem:[%s15731_s2 + $0x58] sm:$0xff]  }
  0x4f   : > { %9950 = vmatprep.mubr.bf16.mxu0 %v13314_v26 }
  0x56   : > { %9951 = vmatmul.mubr.bf16.gmra.mrb[24].mxu0 %v13315_v27 }
  0x57   : > { %9954 = vmatprep.mubr.bf16.mxu0 %v13316_v28 }
  0x5e   : > { %9955 = vmatmul.mubr.bf16.gmra.mrb[28].mxu0 %v13317_v29 }
  0x5f   : > { %9958 = vmatprep.mubr.bf16.mxu0 %v13318_v30  ;;  %v13360_v30 = vld [vmem:[%s15731_s2 + $0x60] sm:$0xff]  }
  0x66   : > { %9959 = vmatmul.mubr.bf16.gmra.mrb[32].mxu0 %v13319_v31 }
  0x67   : > { %9962 = vmatprep.mubr.bf16.mxu0 %v13320_v32 }
  0x6e   : > { %9963 = vmatmul.mubr.bf16.gmra.mrb[36].mxu0 %v13321_v33  ;;  %v13361_v33 = vld [vmem:[%s15731_s2 + $0x68] sm:$0xff]  }
  0x6f   : > { %9966 = vmatprep.mubr.bf16.mxu0 %v13322_v34 }
  0x76   : > { %9967 = vmatmul.mubr.bf16.gmra.mrb[40].mxu0 %v13323_v35 }
  0x77   : > { %9970 = vmatprep.mubr.bf16.mxu0 %v13324_v36 }
  0x7e   : > { %9971 = vmatmul.mubr.bf16.gmra.mrb[44].mxu0 %v13325_v39 }
  0x7f   : > { %9974 = vmatprep.mubr.bf16.mxu0 %v13326_v40 }
  0x86   : > { %9975 = vmatmul.mubr.bf16.gmra.mrb[48].mxu0 %v13327_v42 }
  0x87   : > { %9978 = vmatprep.mubr.bf16.mxu0 %v13328_v43 }
  0x8e   : > { %9979 = vmatmul.mubr.bf16.gmra.mrb[52].mxu0 %v13329_v44 }
  0x8f   : > { %9998 = vmatprep.mubr.msk.bf16.mxu0 %vm13475_vm0, %v13474_v5 }
  0xf9   : > { %v9928_v53 = vpop.f32.mrb[0].mxu0 }
  0xfa   : > { %745 = vst [vmem:[#allocation2 + $0x10] sm:$0xff] %v9928_v53  ;;  %v521_v54 = vpop.f32.mrb[1].mxu0 }
  0xfb   : > { %743 = vst [vmem:[#allocation2] sm:$0xff] %v521_v54  ;;  %v9929_v55 = vpop.f32.mrb[2].mxu0 }
  0xfc   : > { %746 = vst [vmem:[#allocation2 + $0x18] sm:$0xff] %v9929_v55  ;;  %v524_v56 = vpop.f32.mrb[3].mxu0  ;;  %v896_v57 = vpack.c.bf16 %v9929_v55, %v9928_v53 }
  0xfd   : > { %744 = vst [vmem:[#allocation2 + $0x8] sm:$0xff] %v524_v56  ;;  %v895_v58 = vpack.c.bf16 %v524_v56, %v521_v54 }
  0xff   : > { %9999 = vmatmul.mubr.bf16.vlgmr.msra.gmra.mrb[56].mxu0 %v895_v58 }
 0x100   : > { %10002 = vmatprep.mubr.msk.bf16.mxu0 %vm13475_vm0, %v13474_v5  ;;  %10091 = vmatpush3.bf16.msra.mxu0 %v13356_v14 }
 0x101   : > { %v9932_v59 = vpop.f32.mrb[4].mxu0  ;;  %10092 = vmatprep.subr.bf16.mxu0 %v13474_v5 }
 0x102   : > { %749 = vst [vmem:[#allocation2 + $0x30] sm:$0xff] %v9932_v59  ;;  %v537_v60 = vpop.f32.mrb[5].mxu0 }
 0x103   : > { %747 = vst [vmem:[#allocation2 + $0x20] sm:$0xff] %v537_v60  ;;  %v9933_v61 = vpop.f32.mrb[6].mxu0 }
 0x104   : > { %750 = vst [vmem:[#allocation2 + $0x38] sm:$0xff] %v9933_v61  ;;  %v540_v62 = vpop.f32.mrb[7].mxu0  ;;  %v13640_v63 = vpack.c.bf16 %v9933_v61, %v9932_v59  ;;  %10093 = vmatpush3.bf16.msra.mxu0 %v13357_v17  ;;  %v13348_v17 = vld [vmem:[%s15731_s2 + $0x210] sm:$0xff]  }
 0x105   : > { %748 = vst [vmem:[#allocation2 + $0x28] sm:$0xff] %v540_v62  ;;  %v897_v0 = vpack.c.bf16 %v540_v62, %v537_v60  ;;  %10094 = vmatprep.subr.bf16.mxu0 %v13474_v5 }
 0x107   : > { %10003 = vmatmul.mubr.bf16.gmra.mrb[60].mxu0 %v896_v57 }
 0x108   : > { %10006 = vmatprep.mubr.msk.bf16.mxu0 %vm13475_vm0, %v13474_v5  ;;  %10095 = vmatpush3.bf16.msra.mxu0 %v13358_v22 }
 0x109   : > { %v9936_v1 = vpop.f32.mrb[8].mxu0  ;;  %10096 = vmatprep.subr.bf16.mxu0 %v13474_v5 }
 0x10a   : > { %753 = vst [vmem:[#allocation2 + $0x50] sm:$0xff] %v9936_v1  ;;  %v553_v2 = vpop.f32.mrb[9].mxu0 }
 0x10b   : > { %751 = vst [vmem:[#allocation2 + $0x40] sm:$0xff] %v553_v2  ;;  %v9937_v3 = vpop.f32.mrb[10].mxu0 }
 0x10c   : > { %754 = vst [vmem:[#allocation2 + $0x58] sm:$0xff] %v9937_v3  ;;  %v556_v4 = vpop.f32.mrb[11].mxu0  ;;  %v13644_v6 = vpack.c.bf16 %v9937_v3, %v9936_v1  ;;  %10097 = vmatpush3.bf16.msra.mxu0 %v13359_v25  ;;  %v13346_v1 = vld [vmem:[%s15731_s2 + $0x200] sm:$0xff]  }
 0x10d   : > { %752 = vst [vmem:[#allocation2 + $0x48] sm:$0xff] %v556_v4  ;;  %v13646_v7 = vpack.c.bf16 %v556_v4, %v553_v2  ;;  %10098 = vmatprep.subr.bf16.mxu0 %v13474_v5 }
 0x10f   : > { %10007 = vmatmul.mubr.bf16.gmra.mrb[64].mxu0 %v897_v0 }
 0x110   : > { %10010 = vmatprep.mubr.msk.bf16.mxu0 %vm13475_vm0, %v13474_v5  ;;  %10099 = vmatpush3.bf16.msra.mxu0 %v13360_v30 }
 0x111   : > { %v9940_v8 = vpop.f32.mrb[12].mxu0  ;;  %10100 = vmatprep.subr.bf16.mxu0 %v13474_v5 }
 0x112   : > { %757 = vst [vmem:[#allocation2 + $0x70] sm:$0xff] %v9940_v8  ;;  %v569_v9 = vpop.f32.mrb[13].mxu0 }
 0x113   : > { %755 = vst [vmem:[#allocation2 + $0x60] sm:$0xff] %v569_v9  ;;  %v9941_v10 = vpop.f32.mrb[14].mxu0 }
 0x114   : > { %758 = vst [vmem:[#allocation2 + $0x78] sm:$0xff] %v9941_v10  ;;  %v572_v11 = vpop.f32.mrb[15].mxu0  ;;  %v13650_v12 = vpack.c.bf16 %v9941_v10, %v9940_v8  ;;  %10101 = vmatpush3.bf16.msra.mxu0 %v13361_v33  ;;  %v13347_v8 = vld [vmem:[%s15731_s2 + $0x208] sm:$0xff]  }
 0x115   : > { %756 = vst [vmem:[#allocation2 + $0x68] sm:$0xff] %v572_v11  ;;  %v13652_v13 = vpack.c.bf16 %v572_v11, %v569_v9  ;;  %10102 = vmatprep.subr.bf16.mxu0 %v13474_v5 }
 0x117   : > { %10011 = vmatmul.mubr.bf16.gmra.mrb[68].mxu0 %v13640_v63 }
 0x118   : > { %10014 = vmatprep.mubr.msk.bf16.mxu0 %vm13475_vm0, %v13474_v5  ;;  %10103 = vmatpush3.bf16.msra.mxu0 %v13363_v38 }
 0x119   : > { %v9944_v15 = vpop.f32.mrb[16].mxu0  ;;  %10104 = vmatprep.subr.bf16.mxu0 %v13474_v5 }
 0x11a   : > { %761 = vst [vmem:[#allocation2 + $0x90] sm:$0xff] %v9944_v15  ;;  %v585_v16 = vpop.f32.mrb[17].mxu0 }
 0x11b   : > { %759 = vst [vmem:[#allocation2 + $0x80] sm:$0xff] %v585_v16  ;;  %v9945_v18 = vpop.f32.mrb[18].mxu0 }
 0x11c   : > { %762 = vst [vmem:[#allocation2 + $0x98] sm:$0xff] %v9945_v18  ;;  %v588_v19 = vpop.f32.mrb[19].mxu0  ;;  %v13664_v20 = vpack.c.bf16 %v9945_v18, %v9944_v15  ;;  %10105 = vmatpush3.bf16.msra.mxu0 %v13364_v41 }
 0x11d   : > { %760 = vst [vmem:[#allocation2 + $0x88] sm:$0xff] %v588_v19  ;;  %v13666_v21 = vpack.c.bf16 %v588_v19, %v585_v16  ;;  %10198 = vmatprep.subr.bf16.mxu0 %v13474_v5 }
 0x11f   : > { %10015 = vmatmul.mubr.bf16.gmra.mrb[72].mxu0 %v13646_v7 }
 0x120   : > { %10018 = vmatprep.mubr.msk.bf16.mxu0 %vm13475_vm0, %v13474_v5 }
 0x121   : > { %v9948_v23 = vpop.f32.mrb[20].mxu0 }
 0x122   : > { %765 = vst [vmem:[#allocation2 + $0xb0] sm:$0xff] %v9948_v23  ;;  %v601_v24 = vpop.f32.mrb[21].mxu0 }
 0x123   : > { %763 = vst [vmem:[#allocation2 + $0xa0] sm:$0xff] %v601_v24  ;;  %v9949_v26 = vpop.f32.mrb[22].mxu0 }
 0x124   : > { %766 = vst [vmem:[#allocation2 + $0xb8] sm:$0xff] %v9949_v26  ;;  %v604_v27 = vpop.f32.mrb[23].mxu0  ;;  %v13679_v28 = vpack.c.bf16 %v9949_v26, %v9948_v23  ;;  %v13349_v23 = vld [vmem:[%s15731_s2 + $0x218] sm:$0xff]  }
 0x125   : > { %764 = vst [vmem:[#allocation2 + $0xa8] sm:$0xff] %v604_v27  ;;  %v13681_v29 = vpack.c.bf16 %v604_v27, %v601_v24 }
 0x127   : > { %10019 = vmatmul.mubr.bf16.gmra.mrb[76].mxu0 %v13644_v6 }
 0x128   : > { %10022 = vmatprep.mubr.msk.bf16.mxu0 %vm13475_vm0, %v13474_v5 }
 0x129   : > { %v9952_v31 = vpop.f32.mrb[24].mxu0 }
 0x12a   : > { %769 = vst [vmem:[#allocation2 + $0xd0] sm:$0xff] %v9952_v31  ;;  %v617_v32 = vpop.f32.mrb[25].mxu0 }
 0x12b   : > { %767 = vst [vmem:[#allocation2 + $0xc0] sm:$0xff] %v617_v32  ;;  %v9953_v34 = vpop.f32.mrb[26].mxu0 }
 0x12c   : > { %770 = vst [vmem:[#allocation2 + $0xd8] sm:$0xff] %v9953_v34  ;;  %v620_v35 = vpop.f32.mrb[27].mxu0  ;;  %v13694_v36 = vpack.c.bf16 %v9953_v34, %v9952_v31 }
 0x12d   : > { %768 = vst [vmem:[#allocation2 + $0xc8] sm:$0xff] %v620_v35  ;;  %v13696_v37 = vpack.c.bf16 %v620_v35, %v617_v32  ;;  %v13350_v32 = vld [vmem:[%s15731_s2 + $0x220] sm:$0xff]   ;;  %v13351_v35 = vld [vmem:[%s15731_s2 + $0x228] sm:$0xff]  }
 0x12f   : > { %10023 = vmatmul.mubr.bf16.gmra.mrb[80].mxu0 %v13652_v13 }
 0x130   : > { %10026 = vmatprep.mubr.msk.bf16.mxu0 %vm13475_vm0, %v13474_v5 }
 0x131   : > { %v9956_v39 = vpop.f32.mrb[28].mxu0 }
 0x132   : > { %773 = vst [vmem:[#allocation2 + $0xf0] sm:$0xff] %v9956_v39  ;;  %v633_v40 = vpop.f32.mrb[29].mxu0 }
 0x133   : > { %771 = vst [vmem:[#allocation2 + $0xe0] sm:$0xff] %v633_v40  ;;  %v9957_v42 = vpop.f32.mrb[30].mxu0 }
 0x134   : > { %774 = vst [vmem:[#allocation2 + $0xf8] sm:$0xff] %v9957_v42  ;;  %v636_v43 = vpop.f32.mrb[31].mxu0  ;;  %v13709_v44 = vpack.c.bf16 %v9957_v42, %v9956_v39 }
 0x135   : > { %772 = vst [vmem:[#allocation2 + $0xe8] sm:$0xff] %v636_v43  ;;  %v13711_v45 = vpack.c.bf16 %v636_v43, %v633_v40 }
 0x137   : > { %10027 = vmatmul.mubr.bf16.gmra.mrb[84].mxu0 %v13650_v12 }
 0x138   : > { %10030 = vmatprep.mubr.msk.bf16.mxu0 %vm13475_vm0, %v13474_v5 }
 0x139   : > { %v9960_v46 = vpop.f32.mrb[32].mxu0 }
 0x13a   : > { %777 = vst [vmem:[#allocation2 + $0x110] sm:$0xff] %v9960_v46  ;;  %v649_v47 = vpop.f32.mrb[33].mxu0 }
 0x13b   : > { %775 = vst [vmem:[#allocation2 + $0x100] sm:$0xff] %v649_v47  ;;  %v9961_v48 = vpop.f32.mrb[34].mxu0 }
 0x13c   : > { %778 = vst [vmem:[#allocation2 + $0x118] sm:$0xff] %v9961_v48  ;;  %v652_v49 = vpop.f32.mrb[35].mxu0  ;;  %v13717_v50 = vpack.c.bf16 %v9961_v48, %v9960_v46  ;;  %v13353_v48 = vld [vmem:[%s15731_s2 + $0x238] sm:$0xff]  }
 0x13d   : > { %776 = vst [vmem:[#allocation2 + $0x108] sm:$0xff] %v652_v49  ;;  %v13719_v51 = vpack.c.bf16 %v652_v49, %v649_v47  ;;  %v13352_v47 = vld [vmem:[%s15731_s2 + $0x230] sm:$0xff]  }
 0x13f   : > { %10031 = vmatmul.mubr.bf16.gmra.mrb[88].mxu0 %v13666_v21 }
 0x140   : > { %10034 = vmatprep.mubr.msk.bf16.mxu0 %vm13475_vm0, %v13474_v5 }
 0x141   : > { %v9964_v52 = vpop.f32.mrb[36].mxu0 }
 0x142   : > { %781 = vst [vmem:[#allocation2 + $0x130] sm:$0xff] %v9964_v52  ;;  %v665_v53 = vpop.f32.mrb[37].mxu0 }
 0x143   : > { %779 = vst [vmem:[#allocation2 + $0x120] sm:$0xff] %v665_v53  ;;  %v9965_v54 = vpop.f32.mrb[38].mxu0 }
 0x144   : > { %782 = vst [vmem:[#allocation2 + $0x138] sm:$0xff] %v9965_v54  ;;  %v668_v55 = vpop.f32.mrb[39].mxu0  ;;  %v13724_v56 = vpack.c.bf16 %v9965_v54, %v9964_v52 }
 0x145   : > { %780 = vst [vmem:[#allocation2 + $0x128] sm:$0xff] %v668_v55  ;;  %v13726_v57 = vpack.c.bf16 %v668_v55, %v665_v53 }
 0x147   : > { %10035 = vmatmul.mubr.bf16.gmra.mrb[92].mxu0 %v13664_v20 }
 0x148   : > { %10038 = vmatprep.mubr.msk.bf16.mxu0 %vm13475_vm0, %v13474_v5 }
 0x149   : > { %v9968_v58 = vpop.f32.mrb[40].mxu0 }
 0x14a   : > { %785 = vst [vmem:[#allocation2 + $0x150] sm:$0xff] %v9968_v58  ;;  %v681_v59 = vpop.f32.mrb[41].mxu0  ;;  %v4269_v62 = vld [vmem:[#allocation2 + $0x11b] sm:$0xff] }
 0x14b   : > { %783 = vst [vmem:[#allocation2 + $0x140] sm:$0xff] %v681_v59  ;;  %v9969_v60 = vpop.f32.mrb[42].mxu0  ;;  %v4272_v14 = vld [vmem:[#allocation2 + $0x133] sm:$0xff] }
 0x14c   : > { %786 = vst [vmem:[#allocation2 + $0x158] sm:$0xff] %v9969_v60  ;;  %v684_v61 = vpop.f32.mrb[43].mxu0  ;;  %v4270_v0 = vld [vmem:[#allocation2 + $0x123] sm:$0xff]  ;;  %v13734_v2 = vpack.c.bf16 %v9969_v60, %v9968_v58  ;;  %v4271_v11 = vld [vmem:[#allocation2 + $0x12b] sm:$0xff] }
 0x14d   : > { %784 = vst [vmem:[#allocation2 + $0x148] sm:$0xff] %v684_v61  ;;  %v4298_v3 = vpack.c.bf16 %v4270_v0, %v4269_v62  ;;  %v13736_v4 = vpack.c.bf16 %v684_v61, %v681_v59  ;;  %v4299_v19 = vpack.c.bf16 %v4272_v14, %v4271_v11  ;;  %v13354_v61 = vld [vmem:[%s15731_s2 + $0x240] sm:$0xff]   ;;  %v13355_v62 = vld [vmem:[%s15731_s2 + $0x248] sm:$0xff]   ;;  %v13365_v0 = vld [vmem:[%s15731_s2 + $0x258] sm:$0xff]  }
 0x14e   : > { %v1335_v14 = vld [vmem:[#allocation2 + $0x11] sm:$0xff] }
 0x14f   : > { %10819 = vmatmul.mubr.bf16.vlgmr.msra.gmra.mrb[0].mxu1 %v4298_v3  ;;  %10039 = vmatmul.mubr.bf16.gmra.mrb[96].mxu0 %v13681_v29  ;;  %v13369_v3 = vld [vmem:[%s15731_s2 + $0x278] sm:$0xff]  }
 0x150   : > { %10847 = vmatpush3.bf16.msra.mxu1 %v13346_v1  ;;  %10822 = vmatprep.mubr.msk.bf16.mxu1 %vm13475_vm0, %v13474_v5  ;;  %v13367_v1 = vld [vmem:[%s15731_s2 + $0x268] sm:$0xff]  }
 0x151   : > { %v13744_v9 = vpop.f32.mrb[44].mxu0  ;;  %10848 = vmatprep.subr.bf16.mxu1 %v13474_v5  ;;  %10042 = vmatprep.mubr.msk.bf16.mxu0 %vm13475_vm0, %v13474_v5 }
 0x152   : > { %789 = vst [vmem:[#allocation2 + $0x170] sm:$0xff] %v13744_v9  ;;  %v13750_v10 = vpop.f32.mrb[45].mxu0  ;;  %v4273_v30 = vld [vmem:[#allocation2 + $0x13b] sm:$0xff] }
 0x153   : > { %787 = vst [vmem:[#allocation2 + $0x160] sm:$0xff] %v13750_v10  ;;  %v13753_v15 = vpop.f32.mrb[46].mxu0  ;;  %v4276_v40 = vld [vmem:[#allocation2 + $0x153] sm:$0xff] }
 0x154   : > { %790 = vst [vmem:[#allocation2 + $0x178] sm:$0xff] %v13753_v15  ;;  %v13756_v16 = vpop.f32.mrb[47].mxu0  ;;  %10849 = vmatpush3.bf16.msra.mxu1 %v13347_v8  ;;  %v4786_v18 = vpack.c.bf16 %v13753_v15, %v13744_v9  ;;  %v4274_v26 = vld [vmem:[#allocation2 + $0x143] sm:$0xff]  ;;  %v4275_v39 = vld [vmem:[#allocation2 + $0x14b] sm:$0xff] }
 0x155   : > { %788 = vst [vmem:[#allocation2 + $0x168] sm:$0xff] %v13756_v16  ;;  %10850 = vmatprep.subr.bf16.mxu1 %v13474_v5  ;;  %v4785_v22 = vpack.c.bf16 %v13756_v16, %v13750_v10  ;;  %v4300_v33 = vpack.c.bf16 %v4274_v26, %v4273_v30  ;;  %v4301_v46 = vpack.c.bf16 %v4276_v40, %v4275_v39  ;;  %v1334_v8 = vld [vmem:[#allocation2 + $0x9] sm:$0xff]  ;;  %v1339_v26 = vld [vmem:[#allocation2 + $0x31] sm:$0xff]  ;;  %v13372_v30 = vld [vmem:[%s15731_s2 + $0x80] sm:$0xff]  }
 0x156   : > { %v1343_v39 = vld [vmem:[#allocation2 + $0x51] sm:$0xff]  ;;  %v1365_v9 = vld [vmem:[#allocation2 + $0x101] sm:$0xff]  ;;  %v1366_v15 = vld [vmem:[#allocation2 + $0x109] sm:$0xff] }
 0x157   : > { %10823 = vmatmul.mubr.bf16.gmra.mrb[4].mxu1 %v4299_v19  ;;  %10043 = vmatmul.mubr.bf16.gmra.mrb[100].mxu0 %v13679_v28  ;;  %v1338_v19 = vld [vmem:[#allocation2 + $0x29] sm:$0xff]  ;;  %v1363_v16 = vld [vmem:[#allocation2 + $0xf1] sm:$0xff] }
 0x158   : > { %10851 = vmatpush3.bf16.msra.mxu1 %v13348_v17  ;;  %10826 = vmatprep.mubr.msk.bf16.mxu1 %vm13475_vm0, %v13474_v5 }
 0x159   : > { %v13773_v24 = vpop.f32.mrb[48].mxu0  ;;  %10852 = vmatprep.subr.bf16.mxu1 %v13474_v5  ;;  %10046 = vmatprep.mubr.msk.bf16.mxu0 %vm13475_vm0, %v13474_v5 }
 0x15a   : > { %793 = vst [vmem:[#allocation2 + $0x190] sm:$0xff] %v13773_v24  ;;  %v13779_v25 = vpop.f32.mrb[49].mxu0  ;;  %v4277_v52 = vld [vmem:[#allocation2 + $0x15b] sm:$0xff] }
 0x15b   : > { %791 = vst [vmem:[#allocation2 + $0x180] sm:$0xff] %v13779_v25  ;;  %v9977_v27 = vpop.f32.mrb[50].mxu0  ;;  %v4280_v55 = vld [vmem:[#allocation2 + $0x173] sm:$0xff] }
 0x15c   : > { %794 = vst [vmem:[#allocation2 + $0x198] sm:$0xff] %v9977_v27  ;;  %v13782_v31 = vpop.f32.mrb[51].mxu0  ;;  %10853 = vmatpush3.bf16.msra.mxu1 %v13349_v23  ;;  %v4278_v49 = vld [vmem:[#allocation2 + $0x163] sm:$0xff]  ;;  %v4279_v54 = vld [vmem:[#allocation2 + $0x16b] sm:$0xff] }
 0x15d   : > { %792 = vst [vmem:[#allocation2 + $0x188] sm:$0xff] %v13782_v31  ;;  %10854 = vmatprep.subr.bf16.mxu1 %v13474_v5  ;;  %v4787_v34 = vpack.c.bf16 %v13782_v31, %v13779_v25  ;;  %v4302_v53 = vpack.c.bf16 %v4278_v49, %v4277_v52  ;;  %v4303_v58 = vpack.c.bf16 %v4280_v55, %v4279_v54  ;;  %v1347_v49 = vld [vmem:[#allocation2 + $0x71] sm:$0xff]  ;;  %v1350_v54 = vld [vmem:[#allocation2 + $0x89] sm:$0xff]  ;;  %v1368_v25 = vld [vmem:[#allocation2 + $0x119] sm:$0xff] }
 0x15e   : > { %v13370_v31 = vld [vmem:[%s15731_s2 + $0x280] sm:$0xff]  }
 0x15f   : > { %10827 = vmatmul.mubr.bf16.gmra.mrb[8].mxu1 %v4300_v33  ;;  %10047 = vmatmul.mubr.bf16.gmra.mrb[104].mxu0 %v13696_v37 }
 0x160   : > { %10830 = vmatprep.mubr.msk.bf16.mxu1 %vm13475_vm0, %v13474_v5  ;;  %10855 = vmatpush3.bf16.msra.mxu1 %v13350_v32  ;;  %v1342_v32 = vld [vmem:[#allocation2 + $0x49] sm:$0xff] }
 0x161   : > { %10050 = vmatprep.mubr.msk.bf16.mxu0 %vm13475_vm0, %v13474_v5  ;;  %v9980_v38 = vpop.f32.mrb[52].mxu0  ;;  %10856 = vmatprep.subr.bf16.mxu1 %v13474_v5 }
 0x162   : > { %797 = vst [vmem:[#allocation2 + $0x1b0] sm:$0xff] %v9980_v38  ;;  %v729_v41 = vpop.f32.mrb[53].mxu0  ;;  %v4281_v59 = vld [vmem:[#allocation2 + $0x17b] sm:$0xff] }
 0x163   : > { %795 = vst [vmem:[#allocation2 + $0x1a0] sm:$0xff] %v729_v41  ;;  %v9981_v42 = vpop.f32.mrb[54].mxu0  ;;  %v4304_v60 = vpack.c.bf16 %v4281_v59, %v4281_v59  ;;  %v1344_v38 = vld [vmem:[#allocation2 + $0x59] sm:$0xff] }
 0x164   : > { %10857 = vmatpush3.bf16.msra.mxu1 %v13351_v35  ;;  %v732_v43 = vpop.f32.mrb[55].mxu0  ;;  %v13374_v35 = vld [vmem:[%s15731_s2 + $0x90] sm:$0xff]   ;;  %v13944_v40 = vpack.c.bf16 %v1344_v38, %v1343_v39  ;;  %v13376_v41 = vld [vmem:[%s15731_s2 + $0xa0] sm:$0xff]  }
 0x165   : > { %796 = vst [vmem:[#allocation2 + $0x1a8] sm:$0xff] %v732_v43  ;;  %10858 = vmatprep.subr.bf16.mxu1 %v13474_v5  ;;  %v1345_v42 = vld [vmem:[#allocation2 + $0x61] sm:$0xff]  ;;  %v1346_v43 = vld [vmem:[#allocation2 + $0x69] sm:$0xff] }
 0x166   : > { %v14135_v39 = vld [vmem:[#allocation2 + $0x161] sm:$0xff] }
 0x167   : > { %10831 = vmatmul.mubr.bf16.gmra.mrb[12].mxu1 %v4301_v46  ;;  %10051 = vmatmul.mubr.bf16.gmra.mrb[108].mxu0 %v13694_v36  ;;  %v13960_v46 = vpack.c.bf16 %v1346_v43, %v1345_v42  ;;  %v1818_v42 = vld [vmem:[#allocation2 + $0xa] sm:$0xff] }
 0x168   : > { %10834 = vmatprep.mubr.msk.bf16.mxu1 %vm13475_vm0, %v13474_v5  ;;  %10054 = vmatprep.mubr.msk.bf16.mxu0 %vm13475_vm0, %v13474_v5 }
 0x169   : > { %10859 = vmatpush3.bf16.msra.mxu1 %v13352_v47  ;;  %v13379_v47 = vld [vmem:[%s15731_s2 + $0xb0] sm:$0xff]  }
 0x16a   : > { %10860 = vmatprep.subr.bf16.mxu1 %v13474_v5 }
 0x16d   : > { %10861 = vmatpush3.bf16.msra.mxu1 %v13353_v48  ;;  %v1348_v48 = vld [vmem:[#allocation2 + $0x79] sm:$0xff] }
 0x16e   : > { %10954 = vmatprep.subr.bf16.mxu1 %v13474_v5  ;;  %v13976_v52 = vpack.c.bf16 %v1348_v48, %v1347_v49  ;;  %v1821_v48 = vld [vmem:[#allocation2 + $0x22] sm:$0xff] }
 0x16f   : > { %10835 = vmatmul.mubr.bf16.gmra.mrb[16].mxu1 %v4302_v53  ;;  %10055 = vmatmul.mubr.bf16.gmra.mrb[112].mxu0 %v13711_v45  ;;  %v1349_v53 = vld [vmem:[#allocation2 + $0x81] sm:$0xff] }
 0x170   : > { %10838 = vmatprep.mubr.msk.bf16.mxu1 %vm13475_vm0, %v13474_v5  ;;  %10058 = vmatprep.mubr.msk.bf16.mxu0 %vm13475_vm0, %v13474_v5  ;;  %v13985_v55 = vpack.c.bf16 %v1350_v54, %v1349_v53  ;;  %v1823_v53 = vld [vmem:[#allocation2 + $0x32] sm:$0xff] }
 0x177   : > { %10839 = vmatmul.mubr.bf16.gmra.mrb[20].mxu1 %v4303_v58  ;;  %10059 = vmatmul.mubr.bf16.gmra.mrb[116].mxu0 %v13709_v44  ;;  %v1351_v58 = vld [vmem:[#allocation2 + $0x91] sm:$0xff] }
 0x178   : > { %10842 = vmatprep.mubr.msk.bf16.mxu1 %vm13475_vm0, %v13474_v5  ;;  %10062 = vmatprep.mubr.msk.bf16.mxu0 %vm13475_vm0, %v13474_v5 }
 0x17f   : > { %10843 = vmatmul.mubr.bf16.gmra.mrb[24].mxu1 %v4304_v60  ;;  %10063 = vmatmul.mubr.bf16.gmra.mrb[120].mxu0 %v13719_v51  ;;  %v1354_v60 = vld [vmem:[#allocation2 + $0xa9] sm:$0xff] }
 0x180   : > { %10862 = vmatprep.mubr.msk.bf16.mxu1 %vm13475_vm0, %v13474_v5  ;;  %10066 = vmatprep.mubr.msk.bf16.mxu0 %vm13475_vm0, %v13474_v5 }
 0x187   : > { %10863 = vmatmul.mubr.bf16.vlgmr.msra.gmra.mrb[28].mxu1 %v13640_v63  ;;  %10067 = vmatmul.mubr.bf16.gmra.mrb[124].mxu0 %v13717_v50  ;;  %v13362_v63 = vld [vmem:[%s15731_s2 + $0x250] sm:$0xff]  }
 0x188   : > { %10955 = vmatpush3.bf16.msra.mxu1 %v13354_v61  ;;  %10866 = vmatprep.mubr.msk.bf16.mxu1 %vm13475_vm0, %v13474_v5 }
 0x189   : > { %10070 = vmatprep.mubr.msk.bf16.mxu0 %vm13475_vm0, %v13474_v5  ;;  %10956 = vmatprep.subr.bf16.mxu1 %v13474_v5 }
 0x18c   : > { %10957 = vmatpush3.bf16.msra.mxu1 %v13355_v62  ;;  %v1355_v62 = vld [vmem:[#allocation2 + $0xb1] sm:$0xff] }
 0x18d   : > { %10958 = vmatprep.subr.bf16.mxu1 %v13474_v5 }
 0x18f   : > { %10867 = vmatmul.mubr.bf16.gmra.mrb[32].mxu1 %v13646_v7  ;;  %10071 = vmatmul.mubr.bf16.gmra.mrb[128].mxu0 %v13726_v57  ;;  %v13366_v7 = vld [vmem:[%s15731_s2 + $0x260] sm:$0xff]  }
 0x190   : > { %10870 = vmatprep.mubr.msk.bf16.mxu1 %vm13475_vm0, %v13474_v5  ;;  %10074 = vmatprep.mubr.msk.bf16.mxu0 %vm13475_vm0, %v13474_v5 }
 0x191   : > { %10959 = vmatpush3.bf16.msra.mxu1 %v13362_v63 }
 0x192   : > { %10960 = vmatprep.subr.bf16.mxu1 %v13474_v5 }
 0x195   : > { %10961 = vmatpush3.bf16.msra.mxu1 %v13365_v0  ;;  %v1358_v0 = vld [vmem:[#allocation2 + $0xc9] sm:$0xff] }
 0x196   : > { %10962 = vmatprep.subr.bf16.mxu1 %v13474_v5 }
 0x197   : > { %10871 = vmatmul.mubr.bf16.gmra.mrb[36].mxu1 %v13644_v6  ;;  %10075 = vmatmul.mubr.bf16.gmra.mrb[132].mxu0 %v13724_v56  ;;  %v13368_v6 = vld [vmem:[%s15731_s2 + $0x270] sm:$0xff]  }
 0x198   : > { %10874 = vmatprep.mubr.msk.bf16.mxu1 %vm13475_vm0, %v13474_v5  ;;  %10078 = vmatprep.mubr.msk.bf16.mxu0 %vm13475_vm0, %v13474_v5 }
 0x199   : > { %10963 = vmatpush3.bf16.msra.mxu1 %v13366_v7 }
 0x19a   : > { %10964 = vmatprep.subr.bf16.mxu1 %v13474_v5 }
 0x19d   : > { %10965 = vmatpush3.bf16.msra.mxu1 %v13367_v1  ;;  %v1359_v1 = vld [vmem:[#allocation2 + $0xd1] sm:$0xff] }
 0x19e   : > { %10966 = vmatprep.subr.bf16.mxu1 %v13474_v5 }
 0x19f   : > { %10875 = vmatmul.mubr.bf16.gmra.mrb[40].mxu1 %v13652_v13  ;;  %10079 = vmatmul.mubr.bf16.gmra.mrb[136].mxu0 %v13736_v4  ;;  %v917_v13 = vpack.c.bf16 %v13750_v10, %v13750_v10  ;;  %v1364_v10 = vld [vmem:[#allocation2 + $0xf9] sm:$0xff] }
 0x1a0   : > { %10878 = vmatprep.mubr.msk.bf16.mxu1 %vm13475_vm0, %v13474_v5  ;;  %10082 = vmatprep.mubr.msk.bf16.mxu0 %vm13475_vm0, %v13474_v5 }
 0x1a1   : > { %10967 = vmatpush3.bf16.msra.mxu1 %v13368_v6 }
 0x1a2   : > { %10968 = vmatprep.subr.bf16.mxu1 %v13474_v5 }
 0x1a5   : > { %10969 = vmatpush3.bf16.msra.mxu1 %v13369_v3  ;;  %v1362_v3 = vld [vmem:[#allocation2 + $0xe9] sm:$0xff] }
 0x1a6   : > { %11062 = vmatprep.subr.bf16.mxu1 %v13474_v5 }
 0x1a7   : > { %10879 = vmatmul.mubr.bf16.gmra.mrb[44].mxu1 %v13650_v12  ;;  %10083 = vmatmul.mubr.bf16.gmra.mrb[140].mxu0 %v13734_v2  ;;  %v1333_v12 = vld [vmem:[#allocation2 + $0x1] sm:$0xff] }
 0x1a8   : > { %10882 = vmatprep.mubr.msk.bf16.mxu1 %vm13475_vm0, %v13474_v5  ;;  %10086 = vmatprep.mubr.msk.bf16.mxu0 %vm13475_vm0, %v13474_v5  ;;  %v1378_v11 = vpack.c.bf16 %v1334_v8, %v1333_v12  ;;  %v14057_v12 = vpack.c.bf16 %v1366_v15, %v1365_v9  ;;  %v1836_v15 = vld [vmem:[#allocation2 + $0x9a] sm:$0xff] }
 0x1af   : > { %10883 = vmatmul.mubr.bf16.gmra.mrb[48].mxu1 %v13666_v21  ;;  %10087 = vmatmul.mubr.bf16.gmra.mrb[144].mxu0 %v917_v13  ;;  %v1336_v21 = vld [vmem:[#allocation2 + $0x19] sm:$0xff] }
 0x1b0   : > { %10886 = vmatprep.mubr.msk.bf16.mxu1 %vm13475_vm0, %v13474_v5  ;;  %10106 = vmatprep.mubr.msk.bf16.mxu0 %vm13475_vm0, %v13474_v5  ;;  %v1379_v17 = vpack.c.bf16 %v1336_v21, %v1335_v14  ;;  %v1370_v21 = vld [vmem:[#allocation2 + $0x129] sm:$0xff] }
 0x1b7   : > { %10887 = vmatmul.mubr.bf16.gmra.mrb[52].mxu1 %v13664_v20  ;;  %10107 = vmatmul.mubr.bf16.vlgmr.msra.gmra.mrb[56].mxu0 %v1378_v11  ;;  %v1337_v20 = vld [vmem:[#allocation2 + $0x21] sm:$0xff] }
 0x1b8   : > { %10890 = vmatprep.mubr.msk.bf16.mxu1 %vm13475_vm0, %v13474_v5  ;;  %10110 = vmatprep.mubr.msk.bf16.mxu0 %vm13475_vm0, %v13474_v5  ;;  %v1380_v23 = vpack.c.bf16 %v1338_v19, %v1337_v20  ;;  %v1369_v11 = vld [vmem:[#allocation2 + $0x121] sm:$0xff]  ;;  %v13381_v20 = vld [vmem:[%s15731_s2 + $0x298] sm:$0xff]  }
 0x1b9   : > { %10199 = vmatpush3.bf16.msra.mxu0 %v13372_v30  ;;  %v14079_v14 = vpack.c.bf16 %v1370_v21, %v1369_v11  ;;  %v1372_v19 = vld [vmem:[#allocation2 + $0x139] sm:$0xff]  ;;  %v1373_v30 = vld [vmem:[#allocation2 + $0x141] sm:$0xff] }
 0x1ba   : > { %10200 = vmatprep.subr.bf16.mxu0 %v13474_v5  ;;  %v1841_v21 = vld [vmem:[#allocation2 + $0xc2] sm:$0xff] }
 0x1bf   : > { %10891 = vmatmul.mubr.bf16.gmra.mrb[56].mxu1 %v13681_v29  ;;  %10111 = vmatmul.mubr.bf16.gmra.mrb[60].mxu0 %v1379_v17  ;;  %v1340_v29 = vld [vmem:[#allocation2 + $0x39] sm:$0xff]  ;;  %v13378_v17 = vld [vmem:[%s15731_s2 + $0x290] sm:$0xff]  }
 0x1c0   : > { %10894 = vmatprep.mubr.msk.bf16.mxu1 %vm13475_vm0, %v13474_v5  ;;  %10114 = vmatprep.mubr.msk.bf16.mxu0 %vm13475_vm0, %v13474_v5  ;;  %v13913_v27 = vpack.c.bf16 %v1340_v29, %v1339_v26  ;;  %v13382_v26 = vld [vmem:[%s15731_s2 + $0x2a0] sm:$0xff]  }
 0x1c7   : > { %10895 = vmatmul.mubr.bf16.gmra.mrb[60].mxu1 %v13679_v28  ;;  %10115 = vmatmul.mubr.bf16.gmra.mrb[64].mxu0 %v1380_v23  ;;  %v1341_v28 = vld [vmem:[#allocation2 + $0x41] sm:$0xff]  ;;  %v1371_v23 = vld [vmem:[#allocation2 + $0x131] sm:$0xff] }
 0x1c8   : > { %10898 = vmatprep.mubr.msk.bf16.mxu1 %vm13475_vm0, %v13474_v5  ;;  %10118 = vmatprep.mubr.msk.bf16.mxu0 %vm13475_vm0, %v13474_v5  ;;  %v13928_v33 = vpack.c.bf16 %v1342_v32, %v1341_v28  ;;  %v14095_v29 = vpack.c.bf16 %v1372_v19, %v1371_v23  ;;  %v1374_v28 = vld [vmem:[#allocation2 + $0x149] sm:$0xff]  ;;  %v1844_v19 = vld [vmem:[#allocation2 + $0xda] sm:$0xff]  ;;  %v1843_v23 = vld [vmem:[#allocation2 + $0xd2] sm:$0xff] }
 0x1c9   : > { %v14111_v32 = vpack.c.bf16 %v1374_v28, %v1373_v30  ;;  %v5245_v30 = vld [vmem:[#allocation2 + $0x171] sm:$0xff]  ;;  %v5246_v28 = vld [vmem:[#allocation2 + $0x179] sm:$0xff] }
 0x1cf   : > { %10899 = vmatmul.mubr.bf16.gmra.mrb[64].mxu1 %v13696_v37  ;;  %10119 = vmatmul.mubr.bf16.gmra.mrb[68].mxu0 %v13913_v27  ;;  %v13373_v37 = vld [vmem:[%s15731_s2 + $0x88] sm:$0xff]  }
 0x1d0   : > { %10902 = vmatprep.mubr.msk.bf16.mxu1 %vm13475_vm0, %v13474_v5  ;;  %10122 = vmatprep.mubr.msk.bf16.mxu0 %vm13475_vm0, %v13474_v5 }
 0x1d1   : > { %10201 = vmatpush3.bf16.msra.mxu0 %v13373_v37  ;;  %v13384_v37 = vld [vmem:[%s15731_s2 + $0x2b0] sm:$0xff]  }
 0x1d2   : > { %10202 = vmatprep.subr.bf16.mxu0 %v13474_v5 }
 0x1d5   : > { %10203 = vmatpush3.bf16.msra.mxu0 %v13374_v35  ;;  %v1376_v35 = vld [vmem:[#allocation2 + $0x159] sm:$0xff] }
 0x1d6   : > { %10204 = vmatprep.subr.bf16.mxu0 %v13474_v5 }
 0x1d7   : > { %10903 = vmatmul.mubr.bf16.gmra.mrb[68].mxu1 %v13694_v36  ;;  %10123 = vmatmul.mubr.bf16.gmra.mrb[72].mxu0 %v13928_v33  ;;  %v13375_v36 = vld [vmem:[%s15731_s2 + $0x98] sm:$0xff]  }
 0x1d8   : > { %10906 = vmatprep.mubr.msk.bf16.mxu1 %vm13475_vm0, %v13474_v5  ;;  %10126 = vmatprep.mubr.msk.bf16.mxu0 %vm13475_vm0, %v13474_v5 }
 0x1d9   : > { %10205 = vmatpush3.bf16.msra.mxu0 %v13375_v36  ;;  %v13385_v36 = vld [vmem:[%s15731_s2 + $0x2b8] sm:$0xff]  }
 0x1da   : > { %10206 = vmatprep.subr.bf16.mxu0 %v13474_v5 }
 0x1dd   : > { %10207 = vmatpush3.bf16.msra.mxu0 %v13376_v41  ;;  %v1817_v41 = vld [vmem:[#allocation2 + $0x2] sm:$0xff] }
 0x1de   : > { %10208 = vmatprep.subr.bf16.mxu0 %v13474_v5  ;;  %v1862_v43 = vpack.c.bf16 %v1818_v42, %v1817_v41  ;;  %v5249_v42 = vld [vmem:[#allocation2 + $0x191] sm:$0xff] }
 0x1df   : > { %10907 = vmatmul.mubr.bf16.gmra.mrb[72].mxu1 %v13711_v45  ;;  %10127 = vmatmul.mubr.bf16.gmra.mrb[76].mxu0 %v13944_v40  ;;  %v13377_v45 = vld [vmem:[%s15731_s2 + $0xa8] sm:$0xff]  }
 0x1e0   : > { %10910 = vmatprep.mubr.msk.bf16.mxu1 %vm13475_vm0, %v13474_v5  ;;  %10130 = vmatprep.mubr.msk.bf16.mxu0 %vm13475_vm0, %v13474_v5 }
 0x1e1   : > { %10209 = vmatpush3.bf16.msra.mxu0 %v13377_v45  ;;  %v1820_v45 = vld [vmem:[#allocation2 + $0x1a] sm:$0xff] }
 0x1e2   : > { %10210 = vmatprep.subr.bf16.mxu0 %v13474_v5 }
 0x1e5   : > { %10211 = vmatpush3.bf16.msra.mxu0 %v13379_v47 }
 0x1e6   : > { %10212 = vmatprep.subr.bf16.mxu0 %v13474_v5 }
 0x1e7   : > { %10911 = vmatmul.mubr.bf16.gmra.mrb[76].mxu1 %v13709_v44  ;;  %10131 = vmatmul.mubr.bf16.gmra.mrb[80].mxu0 %v13960_v46  ;;  %v13380_v44 = vld [vmem:[%s15731_s2 + $0xb8] sm:$0xff]  }
 0x1e8   : > { %10914 = vmatprep.mubr.msk.bf16.mxu1 %vm13475_vm0, %v13474_v5  ;;  %10134 = vmatprep.mubr.msk.bf16.mxu0 %vm13475_vm0, %v13474_v5 }
 0x1e9   : > { %10213 = vmatpush3.bf16.msra.mxu0 %v13380_v44  ;;  %v1822_v44 = vld [vmem:[#allocation2 + $0x2a] sm:$0xff] }
 0x1ea   : > { %10306 = vmatprep.subr.bf16.mxu0 %v13474_v5  ;;  %v1864_v49 = vpack.c.bf16 %v1822_v44, %v1821_v48  ;;  %v1852_v48 = vld [vmem:[#allocation2 + $0x11a] sm:$0xff] }
 0x1eb   : > { %v13386_v44 = vld [vmem:[%s15731_s2 + $0x2c0] sm:$0xff]  }
 0x1ef   : > { %10915 = vmatmul.mubr.bf16.gmra.mrb[80].mxu1 %v13719_v51  ;;  %10135 = vmatmul.mubr.bf16.gmra.mrb[84].mxu0 %v13976_v52  ;;  %v1352_v51 = vld [vmem:[#allocation2 + $0x99] sm:$0xff] }
 0x1f0   : > { %10918 = vmatprep.mubr.msk.bf16.mxu1 %vm13475_vm0, %v13474_v5  ;;  %10138 = vmatprep.mubr.msk.bf16.mxu0 %vm13475_vm0, %v13474_v5  ;;  %v13993_v59 = vpack.c.bf16 %v1352_v51, %v1351_v58  ;;  %v1825_v51 = vld [vmem:[#allocation2 + $0x42] sm:$0xff]  ;;  %v1826_v58 = vld [vmem:[#allocation2 + $0x4a] sm:$0xff] }
 0x1f7   : > { %10919 = vmatmul.mubr.bf16.gmra.mrb[84].mxu1 %v13717_v50  ;;  %10139 = vmatmul.mubr.bf16.gmra.mrb[88].mxu0 %v13985_v55  ;;  %v1353_v50 = vld [vmem:[#allocation2 + $0xa1] sm:$0xff] }
 0x1f8   : > { %10922 = vmatprep.mubr.msk.bf16.mxu1 %vm13475_vm0, %v13474_v5  ;;  %10142 = vmatprep.mubr.msk.bf16.mxu0 %vm13475_vm0, %v13474_v5  ;;  %v14001_v61 = vpack.c.bf16 %v1354_v60, %v1353_v50  ;;  %v14175_v50 = vpack.c.bf16 %v1826_v58, %v1825_v51  ;;  %v13390_v60 = vld [vmem:[%s15731_s2 + $0xd0] sm:$0xff]  }
 0x1f9   : > { %v1854_v51 = vld [vmem:[#allocation2 + $0x12a] sm:$0xff] }
 0x1ff   : > { %10923 = vmatmul.mubr.bf16.gmra.mrb[88].mxu1 %v13726_v57  ;;  %10143 = vmatmul.mubr.bf16.gmra.mrb[92].mxu0 %v13993_v59  ;;  %v1356_v57 = vld [vmem:[#allocation2 + $0xb9] sm:$0xff] }
 0x200   : > { %10926 = vmatprep.mubr.msk.bf16.mxu1 %vm13475_vm0, %v13474_v5  ;;  %10146 = vmatprep.mubr.msk.bf16.mxu0 %vm13475_vm0, %v13474_v5  ;;  %v14009_v63 = vpack.c.bf16 %v1356_v57, %v1355_v62  ;;  %v13391_v57 = vld [vmem:[%s15731_s2 + $0xd8] sm:$0xff]  }
 0x201   : > { %v1827_v62 = vld [vmem:[#allocation2 + $0x52] sm:$0xff] }
 0x207   : > { %10927 = vmatmul.mubr.bf16.gmra.mrb[0].mxu1 %v13724_v56  ;;  %10147 = vmatmul.mubr.bf16.gmra.mrb[96].mxu0 %v14001_v61  ;;  %v1357_v56 = vld [vmem:[#allocation2 + $0xc1] sm:$0xff] }
 0x208   : > { %10930 = vmatprep.mubr.msk.bf16.mxu1 %vm13475_vm0, %v13474_v5  ;;  %10150 = vmatprep.mubr.msk.bf16.mxu0 %vm13475_vm0, %v13474_v5  ;;  %v14017_v7 = vpack.c.bf16 %v1358_v0, %v1357_v56  ;;  %v13392_v56 = vld [vmem:[%s15731_s2 + $0xe0] sm:$0xff]  }
 0x209   : > { %v1829_v0 = vld [vmem:[#allocation2 + $0x62] sm:$0xff] }
 0x20f   : > { %10931 = vmatmul.mubr.bf16.gmra.mrb[4].mxu1 %v13736_v4  ;;  %10151 = vmatmul.mubr.bf16.gmra.mrb[100].mxu0 %v14009_v63  ;;  %v1360_v4 = vld [vmem:[#allocation2 + $0xd9] sm:$0xff] }
 0x210   : > { %10934 = vmatprep.mubr.msk.bf16.mxu1 %vm13475_vm0, %v13474_v5  ;;  %10154 = vmatprep.mubr.msk.bf16.mxu0 %vm13475_vm0, %v13474_v5  ;;  %v14025_v6 = vpack.c.bf16 %v1360_v4, %v1359_v1  ;;  %v13393_v4 = vld [vmem:[%s15731_s2 + $0xe8] sm:$0xff]  }
 0x217   : > { %10935 = vmatmul.mubr.bf16.gmra.mrb[8].mxu1 %v13734_v2  ;;  %10155 = vmatmul.mubr.bf16.gmra.mrb[104].mxu0 %v14017_v7  ;;  %v1361_v2 = vld [vmem:[#allocation2 + $0xe1] sm:$0xff] }
 0x218   : > { %10938 = vmatprep.mubr.msk.bf16.mxu1 %vm13475_vm0, %v13474_v5  ;;  %10158 = vmatprep.mubr.msk.bf16.mxu0 %vm13475_vm0, %v13474_v5  ;;  %v14035_v13 = vpack.c.bf16 %v1362_v3, %v1361_v2  ;;  %v1832_v2 = vld [vmem:[#allocation2 + $0x7a] sm:$0xff] }
 0x219   : > { %v13396_v3 = vld [vmem:[%s15731_s2 + $0xf8] sm:$0xff]  }
 0x21f   : > { %10939 = vmatmul.mubr.bf16.gmra.mrb[12].mxu1 %v4785_v22  ;;  %10159 = vmatmul.mubr.bf16.gmra.mrb[108].mxu0 %v14025_v6  ;;  %v14045_v22 = vpack.c.bf16 %v1364_v10, %v1363_v16  ;;  %v1833_v16 = vld [vmem:[#allocation2 + $0x82] sm:$0xff] }
 0x220   : > { %10942 = vmatprep.mubr.msk.bf16.mxu1 %vm13475_vm0, %v13474_v5  ;;  %10162 = vmatprep.mubr.msk.bf16.mxu0 %vm13475_vm0, %v13474_v5 }
 0x227   : > { %10943 = vmatmul.mubr.bf16.gmra.mrb[16].mxu1 %v4786_v18  ;;  %10163 = vmatmul.mubr.bf16.gmra.mrb[112].mxu0 %v14035_v13  ;;  %v4788_v18 = vpack.c.bf16 %v13773_v24, %v13773_v24  ;;  %v13371_v24 = vld [vmem:[%s15731_s2 + $0x288] sm:$0xff]  }
 0x228   : > { %10946 = vmatprep.mubr.msk.bf16.mxu1 %vm13475_vm0, %v13474_v5  ;;  %10166 = vmatprep.mubr.msk.bf16.mxu0 %vm13475_vm0, %v13474_v5 }
 0x22f   : > { %10947 = vmatmul.mubr.bf16.gmra.mrb[20].mxu1 %v4787_v34  ;;  %10167 = vmatmul.mubr.bf16.gmra.mrb[116].mxu0 %v14045_v22  ;;  %v1367_v34 = vld [vmem:[#allocation2 + $0x111] sm:$0xff] }
 0x230   : > { %10950 = vmatprep.mubr.msk.bf16.mxu1 %vm13475_vm0, %v13474_v5  ;;  %10170 = vmatprep.mubr.msk.bf16.mxu0 %vm13475_vm0, %v13474_v5  ;;  %v14067_v8 = vpack.c.bf16 %v1368_v25, %v1367_v34  ;;  %v1837_v25 = vld [vmem:[#allocation2 + $0xa2] sm:$0xff] }
 0x237   : > { %10951 = vmatmul.mubr.bf16.gmra.mrb[24].mxu1 %v4788_v18  ;;  %10171 = vmatmul.mubr.bf16.gmra.mrb[120].mxu0 %v14057_v12  ;;  %v1835_v18 = vld [vmem:[#allocation2 + $0x92] sm:$0xff] }
 0x238   : > { %10970 = vmatprep.mubr.msk.bf16.mxu1 %vm13475_vm0, %v13474_v5  ;;  %10174 = vmatprep.mubr.msk.bf16.mxu0 %vm13475_vm0, %v13474_v5 }
 0x23f   : > { %10971 = vmatmul.mubr.bf16.vlgmr.msra.gmra.mrb[28].mxu1 %v13913_v27  ;;  %10175 = vmatmul.mubr.bf16.gmra.mrb[124].mxu0 %v14067_v8  ;;  %v13383_v27 = vld [vmem:[%s15731_s2 + $0x2a8] sm:$0xff]  }
 0x240   : > { %11063 = vmatpush3.bf16.msra.mxu1 %v13370_v31  ;;  %10974 = vmatprep.mubr.msk.bf16.mxu1 %vm13475_vm0, %v13474_v5  ;;  %v1838_v31 = vld [vmem:[#allocation2 + $0xaa] sm:$0xff] }
 0x241   : > { %10178 = vmatprep.mubr.msk.bf16.mxu0 %vm13475_vm0, %v13474_v5  ;;  %11064 = vmatprep.subr.bf16.mxu1 %v13474_v5  ;;  %v14248_v34 = vpack.c.bf16 %v1838_v31, %v1837_v25  ;;  %v2306_v25 = vld [vmem:[#allocation2 + $0x2b] sm:$0xff] }
 0x244   : > { %11065 = vmatpush3.bf16.msra.mxu1 %v13371_v24  ;;  %v1839_v24 = vld [vmem:[#allocation2 + $0xb2] sm:$0xff] }
 0x245   : > { %11066 = vmatprep.subr.bf16.mxu1 %v13474_v5 }
 0x247   : > { %10975 = vmatmul.mubr.bf16.gmra.mrb[32].mxu1 %v13928_v33  ;;  %10179 = vmatmul.mubr.bf16.gmra.mrb[128].mxu0 %v14079_v14  ;;  %v1375_v33 = vld [vmem:[#allocation2 + $0x151] sm:$0xff] }
 0x248   : > { %10978 = vmatprep.mubr.msk.bf16.mxu1 %vm13475_vm0, %v13474_v5  ;;  %10182 = vmatprep.mubr.msk.bf16.mxu0 %vm13475_vm0, %v13474_v5  ;;  %v14124_v38 = vpack.c.bf16 %v1376_v35, %v1375_v33  ;;  %v5247_v35 = vld [vmem:[#allocation2 + $0x181] sm:$0xff] }
 0x249   : > { %11067 = vmatpush3.bf16.msra.mxu1 %v13378_v17 }
 0x24a   : > { %11068 = vmatprep.subr.bf16.mxu1 %v13474_v5 }
 0x24d   : > { %11069 = vmatpush3.bf16.msra.mxu1 %v13381_v20  ;;  %v5244_v20 = vld [vmem:[#allocation2 + $0x169] sm:$0xff] }
 0x24e   : > { %11070 = vmatprep.subr.bf16.mxu1 %v13474_v5 }
 0x24f   : > { %10979 = vmatmul.mubr.bf16.gmra.mrb[36].mxu1 %v13944_v40  ;;  %10183 = vmatmul.mubr.bf16.gmra.mrb[132].mxu0 %v14095_v29  ;;  %v1400_v40 = vpack.c.bf16 %v14135_v39, %v14135_v39 }
 0x250   : > { %10982 = vmatprep.mubr.msk.bf16.mxu1 %vm13475_vm0, %v13474_v5  ;;  %10186 = vmatprep.mubr.msk.bf16.mxu0 %vm13475_vm0, %v13474_v5 }
 0x251   : > { %11071 = vmatpush3.bf16.msra.mxu1 %v13382_v26  ;;  %v14273_v26 = vpack.c.bf16 %v1844_v19, %v1843_v23  ;;  %v2312_v19 = vld [vmem:[#allocation2 + $0x5b] sm:$0xff]  ;;  %v13406_v23 = vld [vmem:[%s15731_s2 + $0x110] sm:$0xff]  }
 0x252   : > { %11072 = vmatprep.subr.bf16.mxu1 %v13474_v5 }
 0x255   : > { %11073 = vmatpush3.bf16.msra.mxu1 %v13383_v27  ;;  %v1845_v27 = vld [vmem:[#allocation2 + $0xe2] sm:$0xff] }
 0x256   : > { %11074 = vmatprep.subr.bf16.mxu1 %v13474_v5 }
 0x257   : > { %10983 = vmatmul.mubr.bf16.gmra.mrb[40].mxu1 %v13960_v46  ;;  %10187 = vmatmul.mubr.bf16.gmra.mrb[136].mxu0 %v14111_v32  ;;  %v1819_v46 = vld [vmem:[#allocation2 + $0x12] sm:$0xff] }
 0x258   : > { %10986 = vmatprep.mubr.msk.bf16.mxu1 %vm13475_vm0, %v13474_v5  ;;  %10190 = vmatprep.mubr.msk.bf16.mxu0 %vm13475_vm0, %v13474_v5  ;;  %v1863_v47 = vpack.c.bf16 %v1820_v45, %v1819_v46  ;;  %v1850_v45 = vld [vmem:[#allocation2 + $0x10a] sm:$0xff]  ;;  %v5272_v46 = vpack.c.bf16 %v5249_v42, %v5249_v42 }
 0x259   : > { %11075 = vmatpush3.bf16.msra.mxu1 %v13384_v37  ;;  %v5270_v37 = vpack.c.bf16 %v5246_v28, %v5245_v30  ;;  %v2313_v30 = vld [vmem:[#allocation2 + $0x63] sm:$0xff]  ;;  %v2314_v28 = vld [vmem:[#allocation2 + $0x6b] sm:$0xff] }
 0x25a   : > { %11076 = vmatprep.subr.bf16.mxu1 %v13474_v5  ;;  %v2318_v42 = vld [vmem:[#allocation2 + $0x8b] sm:$0xff] }
 0x25d   : > { %11077 = vmatpush3.bf16.msra.mxu1 %v13385_v36  ;;  %v1848_v36 = vld [vmem:[#allocation2 + $0xfa] sm:$0xff] }
 0x25e   : > { %11170 = vmatprep.subr.bf16.mxu1 %v13474_v5 }
 0x25f   : > { %10987 = vmatmul.mubr.bf16.gmra.mrb[44].mxu1 %v13976_v52  ;;  %10191 = vmatmul.mubr.bf16.gmra.mrb[140].mxu0 %v14124_v38  ;;  %v1824_v52 = vld [vmem:[#allocation2 + $0x3a] sm:$0xff] }
 0x260   : > { %10990 = vmatprep.mubr.msk.bf16.mxu1 %vm13475_vm0, %v13474_v5  ;;  %10194 = vmatprep.mubr.msk.bf16.mxu0 %vm13475_vm0, %v13474_v5  ;;  %v14160_v54 = vpack.c.bf16 %v1824_v52, %v1823_v53  ;;  %v13387_v53 = vld [vmem:[%s15731_s2 + $0x2c8] sm:$0xff]  }
 0x267   : > { %10991 = vmatmul.mubr.bf16.gmra.mrb[48].mxu1 %v13985_v55  ;;  %10195 = vmatmul.mubr.bf16.gmra.mrb[144].mxu0 %v1400_v40  ;;  %v13388_v55 = vld [vmem:[%s15731_s2 + $0xc0] sm:$0xff]  }
 0x268   : > { %10994 = vmatprep.mubr.msk.bf16.mxu1 %vm13475_vm0, %v13474_v5  ;;  %10214 = vmatprep.mubr.msk.bf16.mxu0 %vm13475_vm0, %v13474_v5 }
 0x26f   : > { %10995 = vmatmul.mubr.bf16.gmra.mrb[52].mxu1 %v13993_v59  ;;  %10215 = vmatmul.mubr.bf16.vlgmr.msra.gmra.mrb[56].mxu0 %v1862_v43  ;;  %v13389_v59 = vld [vmem:[%s15731_s2 + $0xc8] sm:$0xff]  }
 0x270   : > { %10998 = vmatprep.mubr.msk.bf16.mxu1 %vm13475_vm0, %v13474_v5  ;;  %10218 = vmatprep.mubr.msk.bf16.mxu0 %vm13475_vm0, %v13474_v5  ;;  %v1849_v43 = vld [vmem:[#allocation2 + $0x102] sm:$0xff] }
 0x271   : > { %10307 = vmatpush3.bf16.msra.mxu0 %v13388_v55  ;;  %v1853_v55 = vld [vmem:[#allocation2 + $0x122] sm:$0xff] }
 0x272   : > { %10308 = vmatprep.subr.bf16.mxu0 %v13474_v5  ;;  %v14316_v58 = vpack.c.bf16 %v1854_v51, %v1853_v55  ;;  %v2325_v51 = vld [vmem:[#allocation2 + $0xc3] sm:$0xff] }
 0x275   : > { %10309 = vmatpush3.bf16.msra.mxu0 %v13389_v59  ;;  %v13397_v59 = vld [vmem:[%s15731_s2 + $0x2d8] sm:$0xff]  }
 0x276   : > { %10310 = vmatprep.subr.bf16.mxu0 %v13474_v5 }
 0x277   : > { %10999 = vmatmul.mubr.bf16.gmra.mrb[56].mxu1 %v14001_v61  ;;  %10219 = vmatmul.mubr.bf16.gmra.mrb[60].mxu0 %v1863_v47  ;;  %v1828_v61 = vld [vmem:[#allocation2 + $0x5a] sm:$0xff]  ;;  %v14294_v47 = vpack.c.bf16 %v1850_v45, %v1849_v43 }
 0x278   : > { %11002 = vmatprep.mubr.msk.bf16.mxu1 %vm13475_vm0, %v13474_v5  ;;  %10222 = vmatprep.mubr.msk.bf16.mxu0 %vm13475_vm0, %v13474_v5  ;;  %v2320_v45 = vld [vmem:[#allocation2 + $0x9b] sm:$0xff] }
 0x279   : > { %10311 = vmatpush3.bf16.msra.mxu0 %v13390_v60  ;;  %v1856_v60 = vld [vmem:[#allocation2 + $0x13a] sm:$0xff] }
 0x27a   : > { %10312 = vmatprep.subr.bf16.mxu0 %v13474_v5 }
 0x27d   : > { %10313 = vmatpush3.bf16.msra.mxu0 %v13391_v57 }
 0x27e   : > { %10314 = vmatprep.subr.bf16.mxu0 %v13474_v5 }
 0x27f   : > { %11003 = vmatmul.mubr.bf16.gmra.mrb[60].mxu1 %v14009_v63  ;;  %10223 = vmatmul.mubr.bf16.gmra.mrb[64].mxu0 %v1864_v49  ;;  %v14191_v63 = vpack.c.bf16 %v1828_v61, %v1827_v62  ;;  %v1851_v49 = vld [vmem:[#allocation2 + $0x112] sm:$0xff]  ;;  %v13399_v62 = vld [vmem:[%s15731_s2 + $0x2e8] sm:$0xff]  }
 0x280   : > { %11006 = vmatprep.mubr.msk.bf16.mxu1 %vm13475_vm0, %v13474_v5  ;;  %10226 = vmatprep.mubr.msk.bf16.mxu0 %vm13475_vm0, %v13474_v5  ;;  %v14304_v52 = vpack.c.bf16 %v1852_v48, %v1851_v49  ;;  %v1855_v61 = vld [vmem:[#allocation2 + $0x132] sm:$0xff]  ;;  %v2321_v48 = vld [vmem:[#allocation2 + $0xa3] sm:$0xff] }
 0x281   : > { %10315 = vmatpush3.bf16.msra.mxu0 %v13392_v56  ;;  %v14332_v57 = vpack.c.bf16 %v1856_v60, %v1855_v61  ;;  %v1857_v56 = vld [vmem:[#allocation2 + $0x142] sm:$0xff]  ;;  %v2327_v61 = vld [vmem:[#allocation2 + $0xd3] sm:$0xff] }
 0x282   : > { %10316 = vmatprep.subr.bf16.mxu0 %v13474_v5  ;;  %v2328_v60 = vld [vmem:[#allocation2 + $0xdb] sm:$0xff] }
 0x285   : > { %10317 = vmatpush3.bf16.msra.mxu0 %v13393_v4  ;;  %v1859_v4 = vld [vmem:[#allocation2 + $0x152] sm:$0xff] }
 0x286   : > { %10318 = vmatprep.subr.bf16.mxu0 %v13474_v5 }
 0x287   : > { %11007 = vmatmul.mubr.bf16.gmra.mrb[64].mxu1 %v14017_v7  ;;  %10227 = vmatmul.mubr.bf16.gmra.mrb[68].mxu0 %v14160_v54  ;;  %v1830_v7 = vld [vmem:[#allocation2 + $0x6a] sm:$0xff] }
 0x288   : > { %11010 = vmatprep.mubr.msk.bf16.mxu1 %vm13475_vm0, %v13474_v5  ;;  %10230 = vmatprep.mubr.msk.bf16.mxu0 %vm13475_vm0, %v13474_v5  ;;  %v14207_v1 = vpack.c.bf16 %v1830_v7, %v1829_v0  ;;  %v1858_v0 = vld [vmem:[#allocation2 + $0x14a] sm:$0xff] }
 0x289   : > { %v14348_v7 = vpack.c.bf16 %v1858_v0, %v1857_v56  ;;  %v5729_v56 = vld [vmem:[#allocation2 + $0x172] sm:$0xff]  ;;  %v5730_v0 = vld [vmem:[#allocation2 + $0x17a] sm:$0xff] }
 0x28f   : > { %11011 = vmatmul.mubr.bf16.gmra.mrb[68].mxu1 %v14025_v6  ;;  %10231 = vmatmul.mubr.bf16.gmra.mrb[72].mxu0 %v14175_v50  ;;  %v13395_v6 = vld [vmem:[%s15731_s2 + $0xf0] sm:$0xff]  }
 0x290   : > { %11014 = vmatprep.mubr.msk.bf16.mxu1 %vm13475_vm0, %v13474_v5  ;;  %10234 = vmatprep.mubr.msk.bf16.mxu0 %vm13475_vm0, %v13474_v5 }
 0x291   : > { %10319 = vmatpush3.bf16.msra.mxu0 %v13395_v6  ;;  %v1860_v6 = vld [vmem:[#allocation2 + $0x15a] sm:$0xff] }
 0x292   : > { %10320 = vmatprep.subr.bf16.mxu0 %v13474_v5 }
 0x295   : > { %10321 = vmatpush3.bf16.msra.mxu0 %v13396_v3  ;;  %v14372_v3 = vld [vmem:[#allocation2 + $0x162] sm:$0xff] }
 0x296   : > { %10414 = vmatprep.subr.bf16.mxu0 %v13474_v5 }
 0x297   : > { %11015 = vmatmul.mubr.bf16.gmra.mrb[72].mxu1 %v14035_v13  ;;  %10235 = vmatmul.mubr.bf16.gmra.mrb[76].mxu0 %v14191_v63  ;;  %v1831_v13 = vld [vmem:[#allocation2 + $0x72] sm:$0xff] }
 0x298   : > { %11018 = vmatprep.mubr.msk.bf16.mxu1 %vm13475_vm0, %v13474_v5  ;;  %10238 = vmatprep.mubr.msk.bf16.mxu0 %vm13475_vm0, %v13474_v5  ;;  %v14223_v10 = vpack.c.bf16 %v1832_v2, %v1831_v13  ;;  %v14361_v2 = vpack.c.bf16 %v1860_v6, %v1859_v4  ;;  %v1884_v13 = vpack.c.bf16 %v14372_v3, %v14372_v3  ;;  %v5731_v6 = vld [vmem:[#allocation2 + $0x182] sm:$0xff] }
 0x29f   : > { %11019 = vmatmul.mubr.bf16.gmra.mrb[76].mxu1 %v14045_v22  ;;  %10239 = vmatmul.mubr.bf16.gmra.mrb[80].mxu0 %v14207_v1  ;;  %v1834_v22 = vld [vmem:[#allocation2 + $0x8a] sm:$0xff] }
 0x2a0   : > { %11022 = vmatprep.mubr.msk.bf16.mxu1 %vm13475_vm0, %v13474_v5  ;;  %10242 = vmatprep.mubr.msk.bf16.mxu0 %vm13475_vm0, %v13474_v5  ;;  %v14232_v9 = vpack.c.bf16 %v1834_v22, %v1833_v16  ;;  %v2302_v16 = vld [vmem:[#allocation2 + $0xb] sm:$0xff] }
 0x2a7   : > { %11023 = vmatmul.mubr.bf16.gmra.mrb[80].mxu1 %v14057_v12  ;;  %10243 = vmatmul.mubr.bf16.gmra.mrb[84].mxu0 %v14223_v10  ;;  %v14240_v12 = vpack.c.bf16 %v1836_v15, %v1835_v18  ;;  %v2303_v15 = vld [vmem:[#allocation2 + $0x13] sm:$0xff] }
 0x2a8   : > { %11026 = vmatprep.mubr.msk.bf16.mxu1 %vm13475_vm0, %v13474_v5  ;;  %10246 = vmatprep.mubr.msk.bf16.mxu0 %vm13475_vm0, %v13474_v5 }
 0x2af   : > { %11027 = vmatmul.mubr.bf16.gmra.mrb[84].mxu1 %v14067_v8  ;;  %10247 = vmatmul.mubr.bf16.gmra.mrb[88].mxu0 %v14232_v9  ;;  %v1840_v8 = vld [vmem:[#allocation2 + $0xba] sm:$0xff] }
 0x2b0   : > { %11030 = vmatprep.mubr.msk.bf16.mxu1 %vm13475_vm0, %v13474_v5  ;;  %10250 = vmatprep.mubr.msk.bf16.mxu0 %vm13475_vm0, %v13474_v5  ;;  %v14256_v11 = vpack.c.bf16 %v1840_v8, %v1839_v24  ;;  %v2307_v8 = vld [vmem:[#allocation2 + $0x33] sm:$0xff] }
 0x2b7   : > { %11031 = vmatmul.mubr.bf16.gmra.mrb[88].mxu1 %v14079_v14  ;;  %10251 = vmatmul.mubr.bf16.gmra.mrb[92].mxu0 %v14240_v12  ;;  %v1842_v14 = vld [vmem:[#allocation2 + $0xca] sm:$0xff] }
 0x2b8   : > { %11034 = vmatprep.mubr.msk.bf16.mxu1 %vm13475_vm0, %v13474_v5  ;;  %10254 = vmatprep.mubr.msk.bf16.mxu0 %vm13475_vm0, %v13474_v5  ;;  %v14264_v17 = vpack.c.bf16 %v1842_v14, %v1841_v21  ;;  %v2310_v21 = vld [vmem:[#allocation2 + $0x4b] sm:$0xff]  ;;  %v13404_v14 = vld [vmem:[%s15731_s2 + $0x100] sm:$0xff]  }
 0x2bf   : > { %11035 = vmatmul.mubr.bf16.gmra.mrb[0].mxu1 %v14095_v29  ;;  %10255 = vmatmul.mubr.bf16.gmra.mrb[96].mxu0 %v14248_v34  ;;  %v5269_v29 = vpack.c.bf16 %v5244_v20, %v14135_v39  ;;  %v1847_v39 = vld [vmem:[#allocation2 + $0xf2] sm:$0xff] }
 0x2c0   : > { %11038 = vmatprep.mubr.msk.bf16.mxu1 %vm13475_vm0, %v13474_v5  ;;  %10258 = vmatprep.mubr.msk.bf16.mxu0 %vm13475_vm0, %v13474_v5  ;;  %v14287_v41 = vpack.c.bf16 %v1848_v36, %v1847_v39  ;;  %v2315_v36 = vld [vmem:[#allocation2 + $0x73] sm:$0xff] }
 0x2c7   : > { %11039 = vmatmul.mubr.bf16.gmra.mrb[4].mxu1 %v14111_v32  ;;  %10259 = vmatmul.mubr.bf16.gmra.mrb[100].mxu0 %v14256_v11  ;;  %v1846_v32 = vld [vmem:[#allocation2 + $0xea] sm:$0xff] }
 0x2c8   : > { %11042 = vmatprep.mubr.msk.bf16.mxu1 %vm13475_vm0, %v13474_v5  ;;  %10262 = vmatprep.mubr.msk.bf16.mxu0 %vm13475_vm0, %v13474_v5  ;;  %v14280_v33 = vpack.c.bf16 %v1846_v32, %v1845_v27  ;;  %v13408_v32 = vld [vmem:[%s15731_s2 + $0x120] sm:$0xff]  }
 0x2cf   : > { %11043 = vmatmul.mubr.bf16.gmra.mrb[8].mxu1 %v14124_v38  ;;  %10263 = vmatmul.mubr.bf16.gmra.mrb[104].mxu0 %v14264_v17  ;;  %v5248_v38 = vld [vmem:[#allocation2 + $0x189] sm:$0xff] }
 0x2d0   : > { %11046 = vmatprep.mubr.msk.bf16.mxu1 %vm13475_vm0, %v13474_v5  ;;  %10266 = vmatprep.mubr.msk.bf16.mxu0 %vm13475_vm0, %v13474_v5  ;;  %v5271_v40 = vpack.c.bf16 %v5248_v38, %v5247_v35  ;;  %v2316_v35 = vld [vmem:[#allocation2 + $0x7b] sm:$0xff]  ;;  %v13411_v38 = vld [vmem:[%s15731_s2 + $0x130] sm:$0xff]  }
 0x2d1   : > { %v14456_v39 = vpack.c.bf16 %v2316_v35, %v2315_v36  ;;  %v2344_v35 = vld [vmem:[#allocation2 + $0x15b] sm:$0xff]  ;;  %v14609_v36 = vld [vmem:[#allocation2 + $0x163] sm:$0xff] }
 0x2d7   : > { %11047 = vmatmul.mubr.bf16.gmra.mrb[12].mxu1 %v5269_v29  ;;  %10267 = vmatmul.mubr.bf16.gmra.mrb[108].mxu0 %v14273_v26  ;;  %v2311_v29 = vld [vmem:[#allocation2 + $0x53] sm:$0xff] }
 0x2d8   : > { %11050 = vmatprep.mubr.msk.bf16.mxu1 %vm13475_vm0, %v13474_v5  ;;  %10270 = vmatprep.mubr.msk.bf16.mxu0 %vm13475_vm0, %v13474_v5  ;;  %v14424_v27 = vpack.c.bf16 %v2312_v19, %v2311_v29  ;;  %v2340_v19 = vld [vmem:[#allocation2 + $0x13b] sm:$0xff] }
 0x2df   : > { %11051 = vmatmul.mubr.bf16.gmra.mrb[16].mxu1 %v5270_v37  ;;  %10271 = vmatmul.mubr.bf16.gmra.mrb[112].mxu0 %v14280_v33  ;;  %v14440_v37 = vpack.c.bf16 %v2314_v28, %v2313_v30  ;;  %v2341_v30 = vld [vmem:[#allocation2 + $0x143] sm:$0xff]  ;;  %v2342_v28 = vld [vmem:[#allocation2 + $0x14b] sm:$0xff] }
 0x2e0   : > { %11054 = vmatprep.mubr.msk.bf16.mxu1 %vm13475_vm0, %v13474_v5  ;;  %10274 = vmatprep.mubr.msk.bf16.mxu0 %vm13475_vm0, %v13474_v5 }
 0x2e7   : > { %11055 = vmatmul.mubr.bf16.gmra.mrb[20].mxu1 %v5271_v40  ;;  %10275 = vmatmul.mubr.bf16.gmra.mrb[116].mxu0 %v14287_v41  ;;  %v13412_v40 = vld [vmem:[%s15731_s2 + $0x138] sm:$0xff]  }
 0x2e8   : > { %11058 = vmatprep.mubr.msk.bf16.mxu1 %vm13475_vm0, %v13474_v5  ;;  %10278 = vmatprep.mubr.msk.bf16.mxu0 %vm13475_vm0, %v13474_v5 }
 0x2ef   : > { %11059 = vmatmul.mubr.bf16.gmra.mrb[24].mxu1 %v5272_v46  ;;  %10279 = vmatmul.mubr.bf16.gmra.mrb[120].mxu0 %v14294_v47  ;;  %v2319_v46 = vld [vmem:[#allocation2 + $0x93] sm:$0xff] }
 0x2f0   : > { %11078 = vmatprep.mubr.msk.bf16.mxu1 %vm13475_vm0, %v13474_v5  ;;  %10282 = vmatprep.mubr.msk.bf16.mxu0 %vm13475_vm0, %v13474_v5 }
 0x2f7   : > { %11079 = vmatmul.mubr.bf16.vlgmr.msra.gmra.mrb[28].mxu1 %v14160_v54  ;;  %10283 = vmatmul.mubr.bf16.gmra.mrb[124].mxu0 %v14304_v52  ;;  %v13394_v54 = vld [vmem:[%s15731_s2 + $0x2d0] sm:$0xff]  }
 0x2f8   : > { %11171 = vmatpush3.bf16.msra.mxu1 %v13386_v44  ;;  %11082 = vmatprep.mubr.msk.bf16.mxu1 %vm13475_vm0, %v13474_v5  ;;  %v2322_v44 = vld [vmem:[#allocation2 + $0xab] sm:$0xff] }
 0x2f9   : > { %10286 = vmatprep.mubr.msk.bf16.mxu0 %vm13475_vm0, %v13474_v5  ;;  %11172 = vmatprep.subr.bf16.mxu1 %v13474_v5  ;;  %v14485_v49 = vpack.c.bf16 %v2322_v44, %v2321_v48  ;;  %v2789_v48 = vld [vmem:[#allocation2 + $0x38] sm:$0xff] }
 0x2fc   : > { %11173 = vmatpush3.bf16.msra.mxu1 %v13387_v53  ;;  %v2323_v53 = vld [vmem:[#allocation2 + $0xb3] sm:$0xff] }
 0x2fd   : > { %11174 = vmatprep.subr.bf16.mxu1 %v13474_v5 }
 0x2ff   : > { %11083 = vmatmul.mubr.bf16.gmra.mrb[32].mxu1 %v14175_v50  ;;  %10287 = vmatmul.mubr.bf16.gmra.mrb[128].mxu0 %v14316_v58  ;;  %v13398_v50 = vld [vmem:[%s15731_s2 + $0x2e0] sm:$0xff]  }
 0x300   : > { %11086 = vmatprep.mubr.msk.bf16.mxu1 %vm13475_vm0, %v13474_v5  ;;  %10290 = vmatprep.mubr.msk.bf16.mxu0 %vm13475_vm0, %v13474_v5 }
 0x301   : > { %11175 = vmatpush3.bf16.msra.mxu1 %v13394_v54 }
 0x302   : > { %11176 = vmatprep.subr.bf16.mxu1 %v13474_v5 }
 0x305   : > { %11177 = vmatpush3.bf16.msra.mxu1 %v13397_v59  ;;  %v5728_v59 = vld [vmem:[#allocation2 + $0x16a] sm:$0xff] }
 0x306   : > { %11178 = vmatprep.subr.bf16.mxu1 %v13474_v5 }
 0x307   : > { %11087 = vmatmul.mubr.bf16.gmra.mrb[36].mxu1 %v14191_v63  ;;  %10291 = vmatmul.mubr.bf16.gmra.mrb[132].mxu0 %v14332_v57  ;;  %v13400_v63 = vld [vmem:[%s15731_s2 + $0x2f0] sm:$0xff]  }
 0x308   : > { %11090 = vmatprep.mubr.msk.bf16.mxu1 %vm13475_vm0, %v13474_v5  ;;  %10294 = vmatprep.mubr.msk.bf16.mxu0 %vm13475_vm0, %v13474_v5 }
 0x309   : > { %11179 = vmatpush3.bf16.msra.mxu1 %v13398_v50  ;;  %v14510_v50 = vpack.c.bf16 %v2328_v60, %v2327_v61  ;;  %v2795_v60 = vld [vmem:[#allocation2 + $0x68] sm:$0xff]  ;;  %v13422_v61 = vld [vmem:[%s15731_s2 + $0x150] sm:$0xff]  }
 0x30a   : > { %11180 = vmatprep.subr.bf16.mxu1 %v13474_v5 }
 0x30d   : > { %11181 = vmatpush3.bf16.msra.mxu1 %v13399_v62  ;;  %v2329_v62 = vld [vmem:[#allocation2 + $0xe3] sm:$0xff] }
 0x30e   : > { %11182 = vmatprep.subr.bf16.mxu1 %v13474_v5 }
 0x30f   : > { %11091 = vmatmul.mubr.bf16.gmra.mrb[40].mxu1 %v14207_v1  ;;  %10295 = vmatmul.mubr.bf16.gmra.mrb[136].mxu0 %v14348_v7  ;;  %v13401_v1 = vld [vmem:[%s15731_s2 + $0x2f8] sm:$0xff]  }
 0x310   : > { %11094 = vmatprep.mubr.msk.bf16.mxu1 %vm13475_vm0, %v13474_v5  ;;  %10298 = vmatprep.mubr.msk.bf16.mxu0 %vm13475_vm0, %v13474_v5 }
 0x311   : > { %11183 = vmatpush3.bf16.msra.mxu1 %v13400_v63  ;;  %v5754_v63 = vpack.c.bf16 %v5730_v0, %v5729_v56  ;;  %v2798_v56 = vld [vmem:[#allocation2 + $0x80] sm:$0xff] }
 0x312   : > { %11184 = vmatprep.subr.bf16.mxu1 %v13474_v5  ;;  %v13424_v0 = vld [vmem:[%s15731_s2 + $0x160] sm:$0xff]  }
 0x315   : > { %11185 = vmatpush3.bf16.msra.mxu1 %v13401_v1  ;;  %v2332_v1 = vld [vmem:[#allocation2 + $0xfb] sm:$0xff] }
 0x316   : > { %11278 = vmatprep.subr.bf16.mxu1 %v13474_v5 }
 0x317   : > { %11095 = vmatmul.mubr.bf16.gmra.mrb[44].mxu1 %v14223_v10  ;;  %10299 = vmatmul.mubr.bf16.gmra.mrb[140].mxu0 %v14361_v2  ;;  %v2301_v10 = vld [vmem:[#allocation2 + $0x3] sm:$0xff] }
 0x318   : > { %11098 = vmatprep.mubr.msk.bf16.mxu1 %vm13475_vm0, %v13474_v5  ;;  %10302 = vmatprep.mubr.msk.bf16.mxu0 %vm13475_vm0, %v13474_v5  ;;  %v2346_v22 = vpack.c.bf16 %v2302_v16, %v2301_v10  ;;  %v5733_v16 = vld [vmem:[#allocation2 + $0x192] sm:$0xff] }
 0x31f   : > { %11099 = vmatmul.mubr.bf16.gmra.mrb[48].mxu1 %v14232_v9  ;;  %10303 = vmatmul.mubr.bf16.gmra.mrb[144].mxu0 %v1884_v13  ;;  %v2304_v9 = vld [vmem:[#allocation2 + $0x1b] sm:$0xff] }
 0x320   : > { %11102 = vmatprep.mubr.msk.bf16.mxu1 %vm13475_vm0, %v13474_v5  ;;  %10322 = vmatprep.mubr.msk.bf16.mxu0 %vm13475_vm0, %v13474_v5  ;;  %v2347_v18 = vpack.c.bf16 %v2304_v9, %v2303_v15  ;;  %v2334_v9 = vld [vmem:[#allocation2 + $0x10b] sm:$0xff]  ;;  %v5756_v15 = vpack.c.bf16 %v5733_v16, %v5733_v16  ;;  %v2801_v16 = vld [vmem:[#allocation2 + $0x98] sm:$0xff] }
 0x327   : > { %11103 = vmatmul.mubr.bf16.gmra.mrb[52].mxu1 %v14240_v12  ;;  %10323 = vmatmul.mubr.bf16.vlgmr.msra.gmra.mrb[56].mxu0 %v2346_v22  ;;  %v2305_v12 = vld [vmem:[#allocation2 + $0x23] sm:$0xff] }
 0x328   : > { %11106 = vmatprep.mubr.msk.bf16.mxu1 %vm13475_vm0, %v13474_v5  ;;  %10326 = vmatprep.mubr.msk.bf16.mxu0 %vm13475_vm0, %v13474_v5  ;;  %v2348_v31 = vpack.c.bf16 %v2306_v25, %v2305_v12  ;;  %v2333_v22 = vld [vmem:[#allocation2 + $0x103] sm:$0xff]  ;;  %v2336_v12 = vld [vmem:[#allocation2 + $0x11b] sm:$0xff] }
 0x329   : > { %10415 = vmatpush3.bf16.msra.mxu0 %v13404_v14  ;;  %v13402_v25 = vld [vmem:[%s15731_s2 + $0x300] sm:$0xff]  }
 0x32a   : > { %10416 = vmatprep.subr.bf16.mxu0 %v13474_v5 }
 0x32f   : > { %11107 = vmatmul.mubr.bf16.gmra.mrb[56].mxu1 %v14248_v34  ;;  %10327 = vmatmul.mubr.bf16.gmra.mrb[60].mxu0 %v2347_v18  ;;  %v2308_v34 = vld [vmem:[#allocation2 + $0x3b] sm:$0xff]  ;;  %v14531_v18 = vpack.c.bf16 %v2334_v9, %v2333_v22  ;;  %v2803_v9 = vld [vmem:[#allocation2 + $0xa8] sm:$0xff] }
 0x330   : > { %11110 = vmatprep.mubr.msk.bf16.mxu1 %vm13475_vm0, %v13474_v5  ;;  %10330 = vmatprep.mubr.msk.bf16.mxu0 %vm13475_vm0, %v13474_v5  ;;  %v14397_v24 = vpack.c.bf16 %v2308_v34, %v2307_v8  ;;  %v13403_v8 = vld [vmem:[%s15731_s2 + $0x308] sm:$0xff]  }
 0x337   : > { %11111 = vmatmul.mubr.bf16.gmra.mrb[60].mxu1 %v14256_v11  ;;  %10331 = vmatmul.mubr.bf16.gmra.mrb[64].mxu0 %v2348_v31  ;;  %v2309_v11 = vld [vmem:[#allocation2 + $0x43] sm:$0xff]  ;;  %v2335_v31 = vld [vmem:[#allocation2 + $0x113] sm:$0xff] }
 0x338   : > { %11114 = vmatprep.mubr.msk.bf16.mxu1 %vm13475_vm0, %v13474_v5  ;;  %10334 = vmatprep.mubr.msk.bf16.mxu0 %vm13475_vm0, %v13474_v5  ;;  %v14408_v20 = vpack.c.bf16 %v2310_v21, %v2309_v11  ;;  %v14541_v34 = vpack.c.bf16 %v2336_v12, %v2335_v31  ;;  %v2337_v11 = vld [vmem:[#allocation2 + $0x123] sm:$0xff]  ;;  %v2338_v21 = vld [vmem:[#allocation2 + $0x12b] sm:$0xff] }
 0x339   : > { %v14553_v14 = vpack.c.bf16 %v2338_v21, %v2337_v11  ;;  %v2806_v12 = vld [vmem:[#allocation2 + $0xc0] sm:$0xff] }
 0x33a   : > { %v2810_v21 = vld [vmem:[#allocation2 + $0xe0] sm:$0xff] }
 0x33f   : > { %11115 = vmatmul.mubr.bf16.gmra.mrb[64].mxu1 %v14264_v17  ;;  %10335 = vmatmul.mubr.bf16.gmra.mrb[68].mxu0 %v14397_v24  ;;  %v13405_v17 = vld [vmem:[%s15731_s2 + $0x108] sm:$0xff]  }
 0x340   : > { %11118 = vmatprep.mubr.msk.bf16.mxu1 %vm13475_vm0, %v13474_v5  ;;  %10338 = vmatprep.mubr.msk.bf16.mxu0 %vm13475_vm0, %v13474_v5 }
 0x341   : > { %10417 = vmatpush3.bf16.msra.mxu0 %v13405_v17  ;;  %v13413_v17 = vld [vmem:[%s15731_s2 + $0x318] sm:$0xff]  }
 0x342   : > { %10418 = vmatprep.subr.bf16.mxu0 %v13474_v5 }
 0x345   : > { %10419 = vmatpush3.bf16.msra.mxu0 %v13406_v23  ;;  %v2339_v23 = vld [vmem:[#allocation2 + $0x133] sm:$0xff] }
 0x346   : > { %10420 = vmatprep.subr.bf16.mxu0 %v13474_v5  ;;  %v14569_v29 = vpack.c.bf16 %v2340_v19, %v2339_v23  ;;  %v2811_v19 = vld [vmem:[#allocation2 + $0xe8] sm:$0xff]  ;;  %v2812_v23 = vld [vmem:[#allocation2 + $0xf0] sm:$0xff] }
 0x347   : > { %11119 = vmatmul.mubr.bf16.gmra.mrb[68].mxu1 %v14273_v26  ;;  %10339 = vmatmul.mubr.bf16.gmra.mrb[72].mxu0 %v14408_v20  ;;  %v13407_v26 = vld [vmem:[%s15731_s2 + $0x118] sm:$0xff]  }
 0x348   : > { %11122 = vmatprep.mubr.msk.bf16.mxu1 %vm13475_vm0, %v13474_v5  ;;  %10342 = vmatprep.mubr.msk.bf16.mxu0 %vm13475_vm0, %v13474_v5 }
 0x349   : > { %10421 = vmatpush3.bf16.msra.mxu0 %v13407_v26  ;;  %v13415_v26 = vld [vmem:[%s15731_s2 + $0x328] sm:$0xff]  }
 0x34a   : > { %10422 = vmatprep.subr.bf16.mxu0 %v13474_v5 }
 0x34d   : > { %10423 = vmatpush3.bf16.msra.mxu0 %v13408_v32  ;;  %v14585_v32 = vpack.c.bf16 %v2342_v28, %v2341_v30  ;;  %v6214_v30 = vld [vmem:[#allocation2 + $0x17b] sm:$0xff] }
 0x34e   : > { %10424 = vmatprep.subr.bf16.mxu0 %v13474_v5  ;;  %v2814_v28 = vld [vmem:[#allocation2 + $0x100] sm:$0xff] }
 0x34f   : > { %11123 = vmatmul.mubr.bf16.gmra.mrb[72].mxu1 %v14280_v33  ;;  %10343 = vmatmul.mubr.bf16.gmra.mrb[76].mxu0 %v14424_v27  ;;  %v13409_v33 = vld [vmem:[%s15731_s2 + $0x128] sm:$0xff]  }
 0x350   : > { %11126 = vmatprep.mubr.msk.bf16.mxu1 %vm13475_vm0, %v13474_v5  ;;  %10346 = vmatprep.mubr.msk.bf16.mxu0 %vm13475_vm0, %v13474_v5 }
 0x351   : > { %10425 = vmatpush3.bf16.msra.mxu0 %v13409_v33  ;;  %v2343_v33 = vld [vmem:[#allocation2 + $0x153] sm:$0xff] }
 0x352   : > { %10426 = vmatprep.subr.bf16.mxu0 %v13474_v5 }
 0x355   : > { %10427 = vmatpush3.bf16.msra.mxu0 %v13411_v38  ;;  %v14598_v38 = vpack.c.bf16 %v2344_v35, %v2343_v33  ;;  %v6215_v35 = vld [vmem:[#allocation2 + $0x183] sm:$0xff] }
 0x356   : > { %10428 = vmatprep.subr.bf16.mxu0 %v13474_v5 }
 0x357   : > { %11127 = vmatmul.mubr.bf16.gmra.mrb[76].mxu1 %v14287_v41  ;;  %10347 = vmatmul.mubr.bf16.gmra.mrb[80].mxu0 %v14440_v37  ;;  %v2317_v41 = vld [vmem:[#allocation2 + $0x83] sm:$0xff] }
 0x358   : > { %11130 = vmatprep.mubr.msk.bf16.mxu1 %vm13475_vm0, %v13474_v5  ;;  %10350 = vmatprep.mubr.msk.bf16.mxu0 %vm13475_vm0, %v13474_v5  ;;  %v14469_v43 = vpack.c.bf16 %v2318_v42, %v2317_v41  ;;  %v2785_v41 = vld [vmem:[#allocation2 + $0x18] sm:$0xff] }
 0x359   : > { %10429 = vmatpush3.bf16.msra.mxu0 %v13412_v40  ;;  %v2786_v40 = vld [vmem:[#allocation2 + $0x20] sm:$0xff] }
 0x35a   : > { %10522 = vmatprep.subr.bf16.mxu0 %v13474_v5  ;;  %v2830_v42 = vpack.c.bf16 %v2786_v40, %v2785_v41  ;;  %v6217_v41 = vld [vmem:[#allocation2 + $0x193] sm:$0xff] }
 0x35f   : > { %11131 = vmatmul.mubr.bf16.gmra.mrb[80].mxu1 %v14294_v47  ;;  %10351 = vmatmul.mubr.bf16.gmra.mrb[84].mxu0 %v14456_v39  ;;  %v14477_v47 = vpack.c.bf16 %v2320_v45, %v2319_v46  ;;  %v2788_v45 = vld [vmem:[#allocation2 + $0x30] sm:$0xff] }
 0x360   : > { %11134 = vmatprep.mubr.msk.bf16.mxu1 %vm13475_vm0, %v13474_v5  ;;  %10354 = vmatprep.mubr.msk.bf16.mxu0 %vm13475_vm0, %v13474_v5 }
 0x367   : > { %11135 = vmatmul.mubr.bf16.gmra.mrb[84].mxu1 %v14304_v52  ;;  %10355 = vmatmul.mubr.bf16.gmra.mrb[88].mxu0 %v14469_v43  ;;  %v2324_v52 = vld [vmem:[#allocation2 + $0xbb] sm:$0xff] }
 0x368   : > { %11138 = vmatprep.mubr.msk.bf16.mxu1 %vm13475_vm0, %v13474_v5  ;;  %10358 = vmatprep.mubr.msk.bf16.mxu0 %vm13475_vm0, %v13474_v5  ;;  %v14493_v55 = vpack.c.bf16 %v2324_v52, %v2323_v53  ;;  %v2792_v52 = vld [vmem:[#allocation2 + $0x50] sm:$0xff] }
 0x36f   : > { %11139 = vmatmul.mubr.bf16.gmra.mrb[88].mxu1 %v14316_v58  ;;  %10359 = vmatmul.mubr.bf16.gmra.mrb[92].mxu0 %v14477_v47  ;;  %v2326_v58 = vld [vmem:[#allocation2 + $0xcb] sm:$0xff] }
 0x370   : > { %11142 = vmatprep.mubr.msk.bf16.mxu1 %vm13475_vm0, %v13474_v5  ;;  %10362 = vmatprep.mubr.msk.bf16.mxu0 %vm13475_vm0, %v13474_v5  ;;  %v14501_v54 = vpack.c.bf16 %v2326_v58, %v2325_v51  ;;  %v13420_v51 = vld [vmem:[%s15731_s2 + $0x140] sm:$0xff]   ;;  %v2793_v58 = vld [vmem:[#allocation2 + $0x58] sm:$0xff] }
 0x377   : > { %11143 = vmatmul.mubr.bf16.gmra.mrb[0].mxu1 %v14332_v57  ;;  %10363 = vmatmul.mubr.bf16.gmra.mrb[96].mxu0 %v14485_v49  ;;  %v5753_v57 = vpack.c.bf16 %v5728_v59, %v14372_v3  ;;  %v2331_v3 = vld [vmem:[#allocation2 + $0xf3] sm:$0xff] }
 0x378   : > { %11146 = vmatprep.mubr.msk.bf16.mxu1 %vm13475_vm0, %v13474_v5  ;;  %10366 = vmatprep.mubr.msk.bf16.mxu0 %vm13475_vm0, %v13474_v5  ;;  %v14524_v10 = vpack.c.bf16 %v2332_v1, %v2331_v3  ;;  %v2800_v1 = vld [vmem:[#allocation2 + $0x90] sm:$0xff] }
 0x37f   : > { %11147 = vmatmul.mubr.bf16.gmra.mrb[4].mxu1 %v14348_v7  ;;  %10367 = vmatmul.mubr.bf16.gmra.mrb[100].mxu0 %v14493_v55  ;;  %v2330_v7 = vld [vmem:[#allocation2 + $0xeb] sm:$0xff] }
 0x380   : > { %11150 = vmatprep.mubr.msk.bf16.mxu1 %vm13475_vm0, %v13474_v5  ;;  %10370 = vmatprep.mubr.msk.bf16.mxu0 %vm13475_vm0, %v13474_v5  ;;  %v14517_v4 = vpack.c.bf16 %v2330_v7, %v2329_v62  ;;  %v13423_v62 = vld [vmem:[%s15731_s2 + $0x158] sm:$0xff]  }
 0x381   : > { %v2797_v7 = vld [vmem:[#allocation2 + $0x78] sm:$0xff] }
 0x387   : > { %11151 = vmatmul.mubr.bf16.gmra.mrb[8].mxu1 %v14361_v2  ;;  %10371 = vmatmul.mubr.bf16.gmra.mrb[104].mxu0 %v14501_v54  ;;  %v5732_v2 = vld [vmem:[#allocation2 + $0x18a] sm:$0xff] }
 0x388   : > { %11154 = vmatprep.mubr.msk.bf16.mxu1 %vm13475_vm0, %v13474_v5  ;;  %10374 = vmatprep.mubr.msk.bf16.mxu0 %vm13475_vm0, %v13474_v5  ;;  %v5755_v13 = vpack.c.bf16 %v5732_v2, %v5731_v6  ;;  %v2799_v6 = vld [vmem:[#allocation2 + $0x88] sm:$0xff]  ;;  %v13427_v2 = vld [vmem:[%s15731_s2 + $0x170] sm:$0xff]  }
 0x389   : > { %v14693_v3 = vpack.c.bf16 %v2800_v1, %v2799_v6  ;;  %v2828_v6 = vld [vmem:[#allocation2 + $0x170] sm:$0xff]  ;;  %v14846_v1 = vld [vmem:[#allocation2 + $0x178] sm:$0xff] }
 0x38f   : > { %11155 = vmatmul.mubr.bf16.gmra.mrb[12].mxu1 %v5753_v57  ;;  %10375 = vmatmul.mubr.bf16.gmra.mrb[108].mxu0 %v14510_v50  ;;  %v2796_v57 = vld [vmem:[#allocation2 + $0x70] sm:$0xff] }
 0x390   : > { %11158 = vmatprep.mubr.msk.bf16.mxu1 %vm13475_vm0, %v13474_v5  ;;  %10378 = vmatprep.mubr.msk.bf16.mxu0 %vm13475_vm0, %v13474_v5 }
 0x397   : > { %11159 = vmatmul.mubr.bf16.gmra.mrb[16].mxu1 %v5754_v63  ;;  %10379 = vmatmul.mubr.bf16.gmra.mrb[112].mxu0 %v14517_v4  ;;  %v14677_v63 = vpack.c.bf16 %v2798_v56, %v2797_v7  ;;  %v2825_v56 = vld [vmem:[#allocation2 + $0x158] sm:$0xff] }
 0x398   : > { %11162 = vmatprep.mubr.msk.bf16.mxu1 %vm13475_vm0, %v13474_v5  ;;  %10382 = vmatprep.mubr.msk.bf16.mxu0 %vm13475_vm0, %v13474_v5 }
 0x39f   : > { %11163 = vmatmul.mubr.bf16.gmra.mrb[20].mxu1 %v5755_v13  ;;  %10383 = vmatmul.mubr.bf16.gmra.mrb[116].mxu0 %v14524_v10  ;;  %v13428_v13 = vld [vmem:[%s15731_s2 + $0x178] sm:$0xff]  }
 0x3a0   : > { %11166 = vmatprep.mubr.msk.bf16.mxu1 %vm13475_vm0, %v13474_v5  ;;  %10386 = vmatprep.mubr.msk.bf16.mxu0 %vm13475_vm0, %v13474_v5 }
 0x3a7   : > { %11167 = vmatmul.mubr.bf16.gmra.mrb[24].mxu1 %v5756_v15  ;;  %10387 = vmatmul.mubr.bf16.gmra.mrb[120].mxu0 %v14531_v18  ;;  %v2804_v15 = vld [vmem:[#allocation2 + $0xb0] sm:$0xff] }
 0x3a8   : > { %11186 = vmatprep.mubr.msk.bf16.mxu1 %vm13475_vm0, %v13474_v5  ;;  %10390 = vmatprep.mubr.msk.bf16.mxu0 %vm13475_vm0, %v13474_v5 }
 0x3af   : > { %11187 = vmatmul.mubr.bf16.vlgmr.msra.gmra.mrb[28].mxu1 %v14397_v24  ;;  %10391 = vmatmul.mubr.bf16.gmra.mrb[124].mxu0 %v14541_v34  ;;  %v13410_v24 = vld [vmem:[%s15731_s2 + $0x310] sm:$0xff]  }
 0x3b0   : > { %11279 = vmatpush3.bf16.msra.mxu1 %v13402_v25  ;;  %11190 = vmatprep.mubr.msk.bf16.mxu1 %vm13475_vm0, %v13474_v5  ;;  %v2805_v25 = vld [vmem:[#allocation2 + $0xb8] sm:$0xff] }
 0x3b1   : > { %10394 = vmatprep.mubr.msk.bf16.mxu0 %vm13475_vm0, %v13474_v5  ;;  %11280 = vmatprep.subr.bf16.mxu1 %v13474_v5  ;;  %v14722_v31 = vpack.c.bf16 %v2806_v12, %v2805_v25  ;;  %v3273_v12 = vld [vmem:[#allocation2 + $0x39] sm:$0xff] }
 0x3b4   : > { %11281 = vmatpush3.bf16.msra.mxu1 %v13403_v8  ;;  %v2808_v8 = vld [vmem:[#allocation2 + $0xd0] sm:$0xff] }
 0x3b5   : > { %11282 = vmatprep.subr.bf16.mxu1 %v13474_v5 }
 0x3b7   : > { %11191 = vmatmul.mubr.bf16.gmra.mrb[32].mxu1 %v14408_v20  ;;  %10395 = vmatmul.mubr.bf16.gmra.mrb[128].mxu0 %v14553_v14  ;;  %v13414_v20 = vld [vmem:[%s15731_s2 + $0x320] sm:$0xff]  }
 0x3b8   : > { %11194 = vmatprep.mubr.msk.bf16.mxu1 %vm13475_vm0, %v13474_v5  ;;  %10398 = vmatprep.mubr.msk.bf16.mxu0 %vm13475_vm0, %v13474_v5 }
 0x3b9   : > { %11283 = vmatpush3.bf16.msra.mxu1 %v13410_v24 }
 0x3ba   : > { %11284 = vmatprep.subr.bf16.mxu1 %v13474_v5 }
 0x3bd   : > { %11285 = vmatpush3.bf16.msra.mxu1 %v13413_v17  ;;  %v6212_v17 = vld [vmem:[#allocation2 + $0x16b] sm:$0xff] }
 0x3be   : > { %11286 = vmatprep.subr.bf16.mxu1 %v13474_v5 }
 0x3bf   : > { %11195 = vmatmul.mubr.bf16.gmra.mrb[36].mxu1 %v14424_v27  ;;  %10399 = vmatmul.mubr.bf16.gmra.mrb[132].mxu0 %v14569_v29  ;;  %v13416_v27 = vld [vmem:[%s15731_s2 + $0x330] sm:$0xff]  }
 0x3c0   : > { %11198 = vmatprep.mubr.msk.bf16.mxu1 %vm13475_vm0, %v13474_v5  ;;  %10402 = vmatprep.mubr.msk.bf16.mxu0 %vm13475_vm0, %v13474_v5 }
 0x3c1   : > { %11287 = vmatpush3.bf16.msra.mxu1 %v13414_v20  ;;  %v14747_v20 = vpack.c.bf16 %v2812_v23, %v2811_v19  ;;  %v3279_v19 = vld [vmem:[#allocation2 + $0x69] sm:$0xff]  ;;  %v3280_v23 = vld [vmem:[#allocation2 + $0x71] sm:$0xff] }
 0x3c2   : > { %11288 = vmatprep.subr.bf16.mxu1 %v13474_v5 }
 0x3c5   : > { %11289 = vmatpush3.bf16.msra.mxu1 %v13415_v26  ;;  %v6213_v26 = vld [vmem:[#allocation2 + $0x173] sm:$0xff] }
 0x3c6   : > { %11290 = vmatprep.subr.bf16.mxu1 %v13474_v5 }
 0x3c7   : > { %11199 = vmatmul.mubr.bf16.gmra.mrb[40].mxu1 %v14440_v37  ;;  %10403 = vmatmul.mubr.bf16.gmra.mrb[136].mxu0 %v14585_v32  ;;  %v13417_v37 = vld [vmem:[%s15731_s2 + $0x338] sm:$0xff]  }
 0x3c8   : > { %11202 = vmatprep.mubr.msk.bf16.mxu1 %vm13475_vm0, %v13474_v5  ;;  %10406 = vmatprep.mubr.msk.bf16.mxu0 %vm13475_vm0, %v13474_v5 }
 0x3c9   : > { %11291 = vmatpush3.bf16.msra.mxu1 %v13416_v27  ;;  %v6238_v27 = vpack.c.bf16 %v6214_v30, %v6213_v26  ;;  %v13439_v26 = vld [vmem:[%s15731_s2 + $0x198] sm:$0xff]   ;;  %v3282_v30 = vld [vmem:[#allocation2 + $0x81] sm:$0xff] }
 0x3ca   : > { %11292 = vmatprep.subr.bf16.mxu1 %v13474_v5 }
 0x3cd   : > { %11293 = vmatpush3.bf16.msra.mxu1 %v13417_v37  ;;  %v2815_v37 = vld [vmem:[#allocation2 + $0x108] sm:$0xff] }
 0x3ce   : > { %11386 = vmatprep.subr.bf16.mxu1 %v13474_v5 }
 0x3cf   : > { %11203 = vmatmul.mubr.bf16.gmra.mrb[44].mxu1 %v14456_v39  ;;  %10407 = vmatmul.mubr.bf16.gmra.mrb[140].mxu0 %v14598_v38  ;;  %v2368_v39 = vpack.c.bf16 %v14609_v36, %v14609_v36 }
 0x3d0   : > { %11206 = vmatprep.mubr.msk.bf16.mxu1 %vm13475_vm0, %v13474_v5  ;;  %10410 = vmatprep.mubr.msk.bf16.mxu0 %vm13475_vm0, %v13474_v5 }
 0x3d7   : > { %11207 = vmatmul.mubr.bf16.gmra.mrb[48].mxu1 %v14469_v43  ;;  %10411 = vmatmul.mubr.bf16.gmra.mrb[144].mxu0 %v2368_v39  ;;  %v2787_v43 = vld [vmem:[#allocation2 + $0x28] sm:$0xff] }
 0x3d8   : > { %11210 = vmatprep.mubr.msk.bf16.mxu1 %vm13475_vm0, %v13474_v5  ;;  %10430 = vmatprep.mubr.msk.bf16.mxu0 %vm13475_vm0, %v13474_v5  ;;  %v2831_v46 = vpack.c.bf16 %v2788_v45, %v2787_v43  ;;  %v2817_v43 = vld [vmem:[#allocation2 + $0x118] sm:$0xff]  ;;  %v6240_v45 = vpack.c.bf16 %v6217_v41, %v6217_v41 }
 0x3d9   : > { %v3285_v41 = vld [vmem:[#allocation2 + $0x99] sm:$0xff] }
 0x3df   : > { %11211 = vmatmul.mubr.bf16.gmra.mrb[52].mxu1 %v14477_v47  ;;  %10431 = vmatmul.mubr.bf16.vlgmr.msra.gmra.mrb[56].mxu0 %v2830_v42  ;;  %v2790_v47 = vld [vmem:[#allocation2 + $0x40] sm:$0xff] }
 0x3e0   : > { %11214 = vmatprep.mubr.msk.bf16.mxu1 %vm13475_vm0, %v13474_v5  ;;  %10434 = vmatprep.mubr.msk.bf16.mxu0 %vm13475_vm0, %v13474_v5  ;;  %v2832_v44 = vpack.c.bf16 %v2790_v47, %v2789_v48  ;;  %v2818_v42 = vld [vmem:[#allocation2 + $0x120] sm:$0xff]  ;;  %v2819_v47 = vld [vmem:[#allocation2 + $0x128] sm:$0xff] }
 0x3e1   : > { %10523 = vmatpush3.bf16.msra.mxu0 %v13420_v51  ;;  %v13418_v48 = vld [vmem:[%s15731_s2 + $0x340] sm:$0xff]   ;;  %v2821_v51 = vld [vmem:[#allocation2 + $0x138] sm:$0xff] }
 0x3e2   : > { %10524 = vmatprep.subr.bf16.mxu0 %v13474_v5 }
 0x3e7   : > { %11215 = vmatmul.mubr.bf16.gmra.mrb[56].mxu1 %v14485_v49  ;;  %10435 = vmatmul.mubr.bf16.gmra.mrb[60].mxu0 %v2831_v46  ;;  %v2791_v49 = vld [vmem:[#allocation2 + $0x48] sm:$0xff]  ;;  %v14768_v46 = vpack.c.bf16 %v2818_v42, %v2817_v43 }
 0x3e8   : > { %11218 = vmatprep.mubr.msk.bf16.mxu1 %vm13475_vm0, %v13474_v5  ;;  %10438 = vmatprep.mubr.msk.bf16.mxu0 %vm13475_vm0, %v13474_v5  ;;  %v14634_v53 = vpack.c.bf16 %v2792_v52, %v2791_v49  ;;  %v13419_v52 = vld [vmem:[%s15731_s2 + $0x348] sm:$0xff]  }
 0x3e9   : > { %v3287_v43 = vld [vmem:[#allocation2 + $0xa9] sm:$0xff] }
 0x3ef   : > { %11219 = vmatmul.mubr.bf16.gmra.mrb[60].mxu1 %v14493_v55  ;;  %10439 = vmatmul.mubr.bf16.gmra.mrb[64].mxu0 %v2832_v44  ;;  %v2794_v55 = vld [vmem:[#allocation2 + $0x60] sm:$0xff]  ;;  %v2820_v44 = vld [vmem:[#allocation2 + $0x130] sm:$0xff] }
 0x3f0   : > { %11222 = vmatprep.mubr.msk.bf16.mxu1 %vm13475_vm0, %v13474_v5  ;;  %10442 = vmatprep.mubr.msk.bf16.mxu0 %vm13475_vm0, %v13474_v5  ;;  %v14645_v59 = vpack.c.bf16 %v2794_v55, %v2793_v58  ;;  %v14778_v49 = vpack.c.bf16 %v2820_v44, %v2819_v47  ;;  %v2822_v55 = vld [vmem:[#allocation2 + $0x140] sm:$0xff] }
 0x3f1   : > { %v14790_v58 = vpack.c.bf16 %v2822_v55, %v2821_v51  ;;  %v3290_v47 = vld [vmem:[#allocation2 + $0xc1] sm:$0xff] }
 0x3f2   : > { %v3294_v51 = vld [vmem:[#allocation2 + $0xe1] sm:$0xff] }
 0x3f7   : > { %11223 = vmatmul.mubr.bf16.gmra.mrb[64].mxu1 %v14501_v54  ;;  %10443 = vmatmul.mubr.bf16.gmra.mrb[68].mxu0 %v14634_v53  ;;  %v13421_v54 = vld [vmem:[%s15731_s2 + $0x148] sm:$0xff]  }
 0x3f8   : > { %11226 = vmatprep.mubr.msk.bf16.mxu1 %vm13475_vm0, %v13474_v5  ;;  %10446 = vmatprep.mubr.msk.bf16.mxu0 %vm13475_vm0, %v13474_v5 }
 0x3f9   : > { %10525 = vmatpush3.bf16.msra.mxu0 %v13421_v54  ;;  %v13429_v54 = vld [vmem:[%s15731_s2 + $0x358] sm:$0xff]  }
 0x3fa   : > { %10526 = vmatprep.subr.bf16.mxu0 %v13474_v5 }
 0x3fd   : > { %10527 = vmatpush3.bf16.msra.mxu0 %v13422_v61  ;;  %v2824_v61 = vld [vmem:[#allocation2 + $0x150] sm:$0xff] }
 0x3fe   : > { %10528 = vmatprep.subr.bf16.mxu0 %v13474_v5 }
 0x3ff   : > { %11227 = vmatmul.mubr.bf16.gmra.mrb[68].mxu1 %v14510_v50  ;;  %10447 = vmatmul.mubr.bf16.gmra.mrb[72].mxu0 %v14645_v59  ;;  %v14661_v50 = vpack.c.bf16 %v2796_v57, %v2795_v60  ;;  %v2823_v60 = vld [vmem:[#allocation2 + $0x148] sm:$0xff] }
 0x400   : > { %11230 = vmatprep.mubr.msk.bf16.mxu1 %vm13475_vm0, %v13474_v5  ;;  %10450 = vmatprep.mubr.msk.bf16.mxu0 %vm13475_vm0, %v13474_v5  ;;  %v14806_v57 = vpack.c.bf16 %v2824_v61, %v2823_v60  ;;  %v3295_v60 = vld [vmem:[#allocation2 + $0xe9] sm:$0xff]  ;;  %v3296_v61 = vld [vmem:[#allocation2 + $0xf1] sm:$0xff] }
 0x401   : > { %10529 = vmatpush3.bf16.msra.mxu0 %v13423_v62  ;;  %v13431_v62 = vld [vmem:[%s15731_s2 + $0x368] sm:$0xff]  }
 0x402   : > { %10530 = vmatprep.subr.bf16.mxu0 %v13474_v5 }
 0x405   : > { %10531 = vmatpush3.bf16.msra.mxu0 %v13424_v0  ;;  %v2826_v0 = vld [vmem:[#allocation2 + $0x160] sm:$0xff] }
 0x406   : > { %10532 = vmatprep.subr.bf16.mxu0 %v13474_v5  ;;  %v14822_v7 = vpack.c.bf16 %v2826_v0, %v2825_v56  ;;  %v6698_v56 = vld [vmem:[#allocation2 + $0x190] sm:$0xff]  ;;  %v3298_v0 = vld [vmem:[#allocation2 + $0x101] sm:$0xff] }
 0x407   : > { %11231 = vmatmul.mubr.bf16.gmra.mrb[72].mxu1 %v14517_v4  ;;  %10451 = vmatmul.mubr.bf16.gmra.mrb[76].mxu0 %v14661_v50  ;;  %v13425_v4 = vld [vmem:[%s15731_s2 + $0x168] sm:$0xff]  }
 0x408   : > { %11234 = vmatprep.mubr.msk.bf16.mxu1 %vm13475_vm0, %v13474_v5  ;;  %10454 = vmatprep.mubr.msk.bf16.mxu0 %vm13475_vm0, %v13474_v5 }
 0x409   : > { %10533 = vmatpush3.bf16.msra.mxu0 %v13425_v4  ;;  %v2827_v4 = vld [vmem:[#allocation2 + $0x168] sm:$0xff] }
 0x40a   : > { %10534 = vmatprep.subr.bf16.mxu0 %v13474_v5 }
 0x40d   : > { %10535 = vmatpush3.bf16.msra.mxu0 %v13427_v2  ;;  %v14835_v2 = vpack.c.bf16 %v2828_v6, %v2827_v4  ;;  %v3299_v6 = vld [vmem:[#allocation2 + $0x109] sm:$0xff] }
 0x40e   : > { %10536 = vmatprep.subr.bf16.mxu0 %v13474_v5 }
 0x40f   : > { %11235 = vmatmul.mubr.bf16.gmra.mrb[76].mxu1 %v14524_v10  ;;  %10455 = vmatmul.mubr.bf16.gmra.mrb[80].mxu0 %v14677_v63  ;;  %v2802_v10 = vld [vmem:[#allocation2 + $0xa0] sm:$0xff] }
 0x410   : > { %11238 = vmatprep.mubr.msk.bf16.mxu1 %vm13475_vm0, %v13474_v5  ;;  %10458 = vmatprep.mubr.msk.bf16.mxu0 %vm13475_vm0, %v13474_v5  ;;  %v14706_v22 = vpack.c.bf16 %v2802_v10, %v2801_v16  ;;  %v3269_v10 = vld [vmem:[#allocation2 + $0x19] sm:$0xff] }
 0x411   : > { %10537 = vmatpush3.bf16.msra.mxu0 %v13428_v13  ;;  %v3270_v13 = vld [vmem:[#allocation2 + $0x21] sm:$0xff] }
 0x412   : > { %10630 = vmatprep.subr.bf16.mxu0 %v13474_v5  ;;  %v3314_v16 = vpack.c.bf16 %v3270_v13, %v3269_v10  ;;  %v6701_v10 = vld [vmem:[#allocation2 + $0x1a8] sm:$0xff] }
 0x417   : > { %11239 = vmatmul.mubr.bf16.gmra.mrb[80].mxu1 %v14531_v18  ;;  %10459 = vmatmul.mubr.bf16.gmra.mrb[84].mxu0 %v14693_v3  ;;  %v14714_v18 = vpack.c.bf16 %v2804_v15, %v2803_v9  ;;  %v3272_v9 = vld [vmem:[#allocation2 + $0x31] sm:$0xff] }
 0x418   : > { %11242 = vmatprep.mubr.msk.bf16.mxu1 %vm13475_vm0, %v13474_v5  ;;  %10462 = vmatprep.mubr.msk.bf16.mxu0 %vm13475_vm0, %v13474_v5 }
 0x41f   : > { %11243 = vmatmul.mubr.bf16.gmra.mrb[84].mxu1 %v14541_v34  ;;  %10463 = vmatmul.mubr.bf16.gmra.mrb[88].mxu0 %v14706_v22  ;;  %v2807_v34 = vld [vmem:[#allocation2 + $0xc8] sm:$0xff] }
 0x420   : > { %11246 = vmatprep.mubr.msk.bf16.mxu1 %vm13475_vm0, %v13474_v5  ;;  %10466 = vmatprep.mubr.msk.bf16.mxu0 %vm13475_vm0, %v13474_v5  ;;  %v14730_v11 = vpack.c.bf16 %v2808_v8, %v2807_v34  ;;  %v3276_v34 = vld [vmem:[#allocation2 + $0x51] sm:$0xff] }
 0x427   : > { %11247 = vmatmul.mubr.bf16.gmra.mrb[88].mxu1 %v14553_v14  ;;  %10467 = vmatmul.mubr.bf16.gmra.mrb[92].mxu0 %v14714_v18  ;;  %v2809_v14 = vld [vmem:[#allocation2 + $0xd8] sm:$0xff] }
 0x428   : > { %11250 = vmatprep.mubr.msk.bf16.mxu1 %vm13475_vm0, %v13474_v5  ;;  %10470 = vmatprep.mubr.msk.bf16.mxu0 %vm13475_vm0, %v13474_v5  ;;  %v14738_v24 = vpack.c.bf16 %v2810_v21, %v2809_v14  ;;  %v3277_v21 = vld [vmem:[#allocation2 + $0x59] sm:$0xff] }
 0x429   : > { %v13436_v14 = vld [vmem:[%s15731_s2 + $0x180] sm:$0xff]  }
 0x42f   : > { %11251 = vmatmul.mubr.bf16.gmra.mrb[0].mxu1 %v14569_v29  ;;  %10471 = vmatmul.mubr.bf16.gmra.mrb[96].mxu0 %v14722_v31  ;;  %v6237_v29 = vpack.c.bf16 %v6212_v17, %v14609_v36  ;;  %v2816_v36 = vld [vmem:[#allocation2 + $0x110] sm:$0xff] }
 0x430   : > { %11254 = vmatprep.mubr.msk.bf16.mxu1 %vm13475_vm0, %v13474_v5  ;;  %10474 = vmatprep.mubr.msk.bf16.mxu0 %vm13475_vm0, %v13474_v5  ;;  %v14761_v40 = vpack.c.bf16 %v2816_v36, %v2815_v37  ;;  %v13443_v37 = vld [vmem:[%s15731_s2 + $0x1b0] sm:$0xff]  }
 0x437   : > { %11255 = vmatmul.mubr.bf16.gmra.mrb[4].mxu1 %v14585_v32  ;;  %10475 = vmatmul.mubr.bf16.gmra.mrb[100].mxu0 %v14730_v11  ;;  %v2813_v32 = vld [vmem:[#allocation2 + $0xf8] sm:$0xff] }
 0x438   : > { %11258 = vmatprep.mubr.msk.bf16.mxu1 %vm13475_vm0, %v13474_v5  ;;  %10478 = vmatprep.mubr.msk.bf16.mxu0 %vm13475_vm0, %v13474_v5  ;;  %v14754_v33 = vpack.c.bf16 %v2814_v28, %v2813_v32  ;;  %v3281_v28 = vld [vmem:[#allocation2 + $0x79] sm:$0xff] }
 0x439   : > { %v13440_v32 = vld [vmem:[%s15731_s2 + $0x1a0] sm:$0xff]  }
 0x43f   : > { %11259 = vmatmul.mubr.bf16.gmra.mrb[8].mxu1 %v14598_v38  ;;  %10479 = vmatmul.mubr.bf16.gmra.mrb[104].mxu0 %v14738_v24  ;;  %v6216_v38 = vld [vmem:[#allocation2 + $0x18b] sm:$0xff] }
 0x440   : > { %11262 = vmatprep.mubr.msk.bf16.mxu1 %vm13475_vm0, %v13474_v5  ;;  %10482 = vmatprep.mubr.msk.bf16.mxu0 %vm13475_vm0, %v13474_v5  ;;  %v6239_v39 = vpack.c.bf16 %v6216_v38, %v6215_v35  ;;  %v3283_v35 = vld [vmem:[#allocation2 + $0x89] sm:$0xff]  ;;  %v3284_v38 = vld [vmem:[#allocation2 + $0x91] sm:$0xff] }
 0x441   : > { %v14930_v36 = vpack.c.bf16 %v3284_v38, %v3283_v35  ;;  %v3312_v35 = vld [vmem:[#allocation2 + $0x171] sm:$0xff] }
 0x447   : > { %11263 = vmatmul.mubr.bf16.gmra.mrb[12].mxu1 %v6237_v29  ;;  %10483 = vmatmul.mubr.bf16.gmra.mrb[108].mxu0 %v14747_v20  ;;  %v13438_v29 = vld [vmem:[%s15731_s2 + $0x190] sm:$0xff]  }
 0x448   : > { %11266 = vmatprep.mubr.msk.bf16.mxu1 %vm13475_vm0, %v13474_v5  ;;  %10486 = vmatprep.mubr.msk.bf16.mxu0 %vm13475_vm0, %v13474_v5 }
 0x44f   : > { %11267 = vmatmul.mubr.bf16.gmra.mrb[16].mxu1 %v6238_v27  ;;  %10487 = vmatmul.mubr.bf16.gmra.mrb[112].mxu0 %v14754_v33  ;;  %v14914_v27 = vpack.c.bf16 %v3282_v30, %v3281_v28  ;;  %v3310_v30 = vld [vmem:[#allocation2 + $0x161] sm:$0xff]  ;;  %v3309_v28 = vld [vmem:[#allocation2 + $0x159] sm:$0xff] }
 0x450   : > { %11270 = vmatprep.mubr.msk.bf16.mxu1 %vm13475_vm0, %v13474_v5  ;;  %10490 = vmatprep.mubr.msk.bf16.mxu0 %vm13475_vm0, %v13474_v5 }
 0x457   : > { %11271 = vmatmul.mubr.bf16.gmra.mrb[20].mxu1 %v6239_v39  ;;  %10491 = vmatmul.mubr.bf16.gmra.mrb[116].mxu0 %v14761_v40  ;;  %v13444_v39 = vld [vmem:[%s15731_s2 + $0x1b8] sm:$0xff]  }
 0x458   : > { %11274 = vmatprep.mubr.msk.bf16.mxu1 %vm13475_vm0, %v13474_v5  ;;  %10494 = vmatprep.mubr.msk.bf16.mxu0 %vm13475_vm0, %v13474_v5 }
 0x45f   : > { %11275 = vmatmul.mubr.bf16.gmra.mrb[24].mxu1 %v6240_v45  ;;  %10495 = vmatmul.mubr.bf16.gmra.mrb[120].mxu0 %v14768_v46  ;;  %v3288_v45 = vld [vmem:[#allocation2 + $0xb1] sm:$0xff] }
 0x460   : > { %11294 = vmatprep.mubr.msk.bf16.mxu1 %vm13475_vm0, %v13474_v5  ;;  %10498 = vmatprep.mubr.msk.bf16.mxu0 %vm13475_vm0, %v13474_v5 }
 0x467   : > { %11295 = vmatmul.mubr.bf16.vlgmr.msra.gmra.mrb[28].mxu1 %v14634_v53  ;;  %10499 = vmatmul.mubr.bf16.gmra.mrb[124].mxu0 %v14778_v49  ;;  %v13426_v53 = vld [vmem:[%s15731_s2 + $0x350] sm:$0xff]  }
 0x468   : > { %11387 = vmatpush3.bf16.msra.mxu1 %v13418_v48  ;;  %11298 = vmatprep.mubr.msk.bf16.mxu1 %vm13475_vm0, %v13474_v5  ;;  %v3289_v48 = vld [vmem:[#allocation2 + $0xb9] sm:$0xff] }
 0x469   : > { %10502 = vmatprep.mubr.msk.bf16.mxu0 %vm13475_vm0, %v13474_v5  ;;  %11388 = vmatprep.subr.bf16.mxu1 %v13474_v5  ;;  %v14959_v44 = vpack.c.bf16 %v3290_v47, %v3289_v48  ;;  %v13460_v48 = vld [vmem:[%s15731_s2 + $0x1d0] sm:$0xff]  }
 0x46c   : > { %11389 = vmatpush3.bf16.msra.mxu1 %v13419_v52  ;;  %v3292_v52 = vld [vmem:[#allocation2 + $0xd1] sm:$0xff] }
 0x46d   : > { %11390 = vmatprep.subr.bf16.mxu1 %v13474_v5 }
 0x46f   : > { %11299 = vmatmul.mubr.bf16.gmra.mrb[32].mxu1 %v14645_v59  ;;  %10503 = vmatmul.mubr.bf16.gmra.mrb[128].mxu0 %v14790_v58  ;;  %v13430_v59 = vld [vmem:[%s15731_s2 + $0x360] sm:$0xff]  }
 0x470   : > { %11302 = vmatprep.mubr.msk.bf16.mxu1 %vm13475_vm0, %v13474_v5  ;;  %10506 = vmatprep.mubr.msk.bf16.mxu0 %vm13475_vm0, %v13474_v5 }
 0x471   : > { %11391 = vmatpush3.bf16.msra.mxu1 %v13426_v53 }
 0x472   : > { %11392 = vmatprep.subr.bf16.mxu1 %v13474_v5 }
 0x475   : > { %11393 = vmatpush3.bf16.msra.mxu1 %v13429_v54  ;;  %v6696_v54 = vld [vmem:[#allocation2 + $0x180] sm:$0xff] }
 0x476   : > { %11394 = vmatprep.subr.bf16.mxu1 %v13474_v5 }
 0x477   : > { %11303 = vmatmul.mubr.bf16.gmra.mrb[36].mxu1 %v14661_v50  ;;  %10507 = vmatmul.mubr.bf16.gmra.mrb[132].mxu0 %v14806_v57  ;;  %v13432_v50 = vld [vmem:[%s15731_s2 + $0x370] sm:$0xff]  }
 0x478   : > { %11306 = vmatprep.mubr.msk.bf16.mxu1 %vm13475_vm0, %v13474_v5  ;;  %10510 = vmatprep.mubr.msk.bf16.mxu0 %vm13475_vm0, %v13474_v5 }
 0x479   : > { %11395 = vmatpush3.bf16.msra.mxu1 %v13430_v59  ;;  %v14984_v59 = vpack.c.bf16 %v3296_v61, %v3295_v60  ;;  %v3760_v60 = vld [vmem:[#allocation2 + $0x52] sm:$0xff] }
 0x47a   : > { %11396 = vmatprep.subr.bf16.mxu1 %v13474_v5 }
 0x47d   : > { %11397 = vmatpush3.bf16.msra.mxu1 %v13431_v62  ;;  %v6697_v62 = vld [vmem:[#allocation2 + $0x188] sm:$0xff] }
 0x47e   : > { %11398 = vmatprep.subr.bf16.mxu1 %v13474_v5 }
 0x47f   : > { %11307 = vmatmul.mubr.bf16.gmra.mrb[40].mxu1 %v14677_v63  ;;  %10511 = vmatmul.mubr.bf16.gmra.mrb[136].mxu0 %v14822_v7  ;;  %v13433_v63 = vld [vmem:[%s15731_s2 + $0x378] sm:$0xff]  }
 0x480   : > { %11310 = vmatprep.mubr.msk.bf16.mxu1 %vm13475_vm0, %v13474_v5  ;;  %10514 = vmatprep.mubr.msk.bf16.mxu0 %vm13475_vm0, %v13474_v5 }
 0x481   : > { %11399 = vmatpush3.bf16.msra.mxu1 %v13432_v50  ;;  %v6722_v50 = vpack.c.bf16 %v6698_v56, %v6697_v62  ;;  %v3762_v62 = vld [vmem:[#allocation2 + $0x62] sm:$0xff]  ;;  %v3761_v56 = vld [vmem:[#allocation2 + $0x5a] sm:$0xff] }
 0x482   : > { %11400 = vmatprep.subr.bf16.mxu1 %v13474_v5 }
 0x485   : > { %11401 = vmatpush3.bf16.msra.mxu1 %v13433_v63  ;;  %v6700_v63 = vld [vmem:[#allocation2 + $0x1a0] sm:$0xff] }
 0x486   : > { %11494 = vmatprep.subr.bf16.mxu1 %v13474_v5 }
 0x487   : > { %11311 = vmatmul.mubr.bf16.gmra.mrb[44].mxu1 %v14693_v3  ;;  %10515 = vmatmul.mubr.bf16.gmra.mrb[140].mxu0 %v14835_v2  ;;  %v2852_v3 = vpack.c.bf16 %v14846_v1, %v14846_v1 }
 0x488   : > { %11314 = vmatprep.mubr.msk.bf16.mxu1 %vm13475_vm0, %v13474_v5  ;;  %10518 = vmatprep.mubr.msk.bf16.mxu0 %vm13475_vm0, %v13474_v5 }
 0x48f   : > { %11315 = vmatmul.mubr.bf16.gmra.mrb[48].mxu1 %v14706_v22  ;;  %10519 = vmatmul.mubr.bf16.gmra.mrb[144].mxu0 %v2852_v3  ;;  %v3271_v22 = vld [vmem:[#allocation2 + $0x29] sm:$0xff] }
 0x490   : > { %11318 = vmatprep.mubr.msk.bf16.mxu1 %vm13475_vm0, %v13474_v5  ;;  %10538 = vmatprep.mubr.msk.bf16.mxu0 %vm13475_vm0, %v13474_v5  ;;  %v3315_v15 = vpack.c.bf16 %v3272_v9, %v3271_v22  ;;  %v3301_v22 = vld [vmem:[#allocation2 + $0x119] sm:$0xff]  ;;  %v6724_v9 = vpack.c.bf16 %v6701_v10, %v6701_v10 }
 0x491   : > { %v3769_v10 = vld [vmem:[#allocation2 + $0x9a] sm:$0xff] }
 0x497   : > { %11319 = vmatmul.mubr.bf16.gmra.mrb[52].mxu1 %v14714_v18  ;;  %10539 = vmatmul.mubr.bf16.vlgmr.msra.gmra.mrb[56].mxu0 %v3314_v16  ;;  %v3274_v18 = vld [vmem:[#allocation2 + $0x41] sm:$0xff] }
 0x498   : > { %11322 = vmatprep.mubr.msk.bf16.mxu1 %vm13475_vm0, %v13474_v5  ;;  %10542 = vmatprep.mubr.msk.bf16.mxu0 %vm13475_vm0, %v13474_v5  ;;  %v3316_v25 = vpack.c.bf16 %v3274_v18, %v3273_v12  ;;  %v3302_v16 = vld [vmem:[#allocation2 + $0x121] sm:$0xff]  ;;  %v3303_v18 = vld [vmem:[#allocation2 + $0x129] sm:$0xff]  ;;  %v3304_v12 = vld [vmem:[#allocation2 + $0x131] sm:$0xff] }
 0x499   : > { %10631 = vmatpush3.bf16.msra.mxu0 %v13436_v14 }
 0x49a   : > { %10632 = vmatprep.subr.bf16.mxu0 %v13474_v5 }
 0x49f   : > { %11323 = vmatmul.mubr.bf16.gmra.mrb[56].mxu1 %v14722_v31  ;;  %10543 = vmatmul.mubr.bf16.gmra.mrb[60].mxu0 %v3315_v15  ;;  %v3275_v31 = vld [vmem:[#allocation2 + $0x49] sm:$0xff]  ;;  %v15005_v15 = vpack.c.bf16 %v3302_v16, %v3301_v22 }
 0x4a0   : > { %11326 = vmatprep.mubr.msk.bf16.mxu1 %vm13475_vm0, %v13474_v5  ;;  %10546 = vmatprep.mubr.msk.bf16.mxu0 %vm13475_vm0, %v13474_v5  ;;  %v14871_v8 = vpack.c.bf16 %v3276_v34, %v3275_v31  ;;  %v15015_v31 = vpack.c.bf16 %v3304_v12, %v3303_v18  ;;  %v13435_v34 = vld [vmem:[%s15731_s2 + $0x388] sm:$0xff]   ;;  %v3773_v12 = vld [vmem:[#allocation2 + $0xba] sm:$0xff] }
 0x4a1   : > { %v3771_v22 = vld [vmem:[#allocation2 + $0xaa] sm:$0xff]  ;;  %v3774_v18 = vld [vmem:[#allocation2 + $0xc2] sm:$0xff] }
 0x4a7   : > { %11327 = vmatmul.mubr.bf16.gmra.mrb[60].mxu1 %v14730_v11  ;;  %10547 = vmatmul.mubr.bf16.gmra.mrb[64].mxu0 %v3316_v25  ;;  %v3278_v11 = vld [vmem:[#allocation2 + $0x61] sm:$0xff] }
 0x4a8   : > { %11330 = vmatprep.mubr.msk.bf16.mxu1 %vm13475_vm0, %v13474_v5  ;;  %10550 = vmatprep.mubr.msk.bf16.mxu0 %vm13475_vm0, %v13474_v5  ;;  %v14882_v17 = vpack.c.bf16 %v3278_v11, %v3277_v21  ;;  %v13434_v25 = vld [vmem:[%s15731_s2 + $0x380] sm:$0xff]  }
 0x4a9   : > { %v3306_v11 = vld [vmem:[#allocation2 + $0x141] sm:$0xff]  ;;  %v3305_v21 = vld [vmem:[#allocation2 + $0x139] sm:$0xff] }
 0x4aa   : > { %v15027_v14 = vpack.c.bf16 %v3306_v11, %v3305_v21  ;;  %v3778_v21 = vld [vmem:[#allocation2 + $0xe2] sm:$0xff] }
 0x4af   : > { %11331 = vmatmul.mubr.bf16.gmra.mrb[64].mxu1 %v14738_v24  ;;  %10551 = vmatmul.mubr.bf16.gmra.mrb[68].mxu0 %v14871_v8  ;;  %v13437_v24 = vld [vmem:[%s15731_s2 + $0x188] sm:$0xff]  }
 0x4b0   : > { %11334 = vmatprep.mubr.msk.bf16.mxu1 %vm13475_vm0, %v13474_v5  ;;  %10554 = vmatprep.mubr.msk.bf16.mxu0 %vm13475_vm0, %v13474_v5 }
 0x4b1   : > { %10633 = vmatpush3.bf16.msra.mxu0 %v13437_v24  ;;  %v13445_v24 = vld [vmem:[%s15731_s2 + $0x398] sm:$0xff]  }
 0x4b2   : > { %10634 = vmatprep.subr.bf16.mxu0 %v13474_v5 }
 0x4b5   : > { %10635 = vmatpush3.bf16.msra.mxu0 %v13438_v29 }
 0x4b6   : > { %10636 = vmatprep.subr.bf16.mxu0 %v13474_v5 }
 0x4b7   : > { %11335 = vmatmul.mubr.bf16.gmra.mrb[68].mxu1 %v14747_v20  ;;  %10555 = vmatmul.mubr.bf16.gmra.mrb[72].mxu0 %v14882_v17  ;;  %v14898_v20 = vpack.c.bf16 %v3280_v23, %v3279_v19  ;;  %v3307_v19 = vld [vmem:[#allocation2 + $0x149] sm:$0xff]  ;;  %v3308_v23 = vld [vmem:[#allocation2 + $0x151] sm:$0xff] }
 0x4b8   : > { %11338 = vmatprep.mubr.msk.bf16.mxu1 %vm13475_vm0, %v13474_v5  ;;  %10558 = vmatprep.mubr.msk.bf16.mxu0 %vm13475_vm0, %v13474_v5  ;;  %v15043_v29 = vpack.c.bf16 %v3308_v23, %v3307_v19  ;;  %v3779_v19 = vld [vmem:[#allocation2 + $0xea] sm:$0xff]  ;;  %v3780_v23 = vld [vmem:[#allocation2 + $0xf2] sm:$0xff] }
 0x4b9   : > { %10637 = vmatpush3.bf16.msra.mxu0 %v13439_v26  ;;  %v13447_v26 = vld [vmem:[%s15731_s2 + $0x3a8] sm:$0xff]  }
 0x4ba   : > { %10638 = vmatprep.subr.bf16.mxu0 %v13474_v5 }
 0x4bd   : > { %10639 = vmatpush3.bf16.msra.mxu0 %v13440_v32  ;;  %v15059_v32 = vpack.c.bf16 %v3310_v30, %v3309_v28  ;;  %v7182_v30 = vld [vmem:[#allocation2 + $0x191] sm:$0xff]  ;;  %v3782_v28 = vld [vmem:[#allocation2 + $0x102] sm:$0xff] }
 0x4be   : > { %10640 = vmatprep.subr.bf16.mxu0 %v13474_v5 }
 0x4bf   : > { %11339 = vmatmul.mubr.bf16.gmra.mrb[72].mxu1 %v14754_v33  ;;  %10559 = vmatmul.mubr.bf16.gmra.mrb[76].mxu0 %v14898_v20  ;;  %v13441_v33 = vld [vmem:[%s15731_s2 + $0x1a8] sm:$0xff]  }
 0x4c0   : > { %11342 = vmatprep.mubr.msk.bf16.mxu1 %vm13475_vm0, %v13474_v5  ;;  %10562 = vmatprep.mubr.msk.bf16.mxu0 %vm13475_vm0, %v13474_v5 }
 0x4c1   : > { %10641 = vmatpush3.bf16.msra.mxu0 %v13441_v33  ;;  %v3311_v33 = vld [vmem:[#allocation2 + $0x169] sm:$0xff] }
 0x4c2   : > { %10642 = vmatprep.subr.bf16.mxu0 %v13474_v5  ;;  %v15072_v38 = vpack.c.bf16 %v3312_v35, %v3311_v33  ;;  %v7183_v35 = vld [vmem:[#allocation2 + $0x199] sm:$0xff] }
 0x4c5   : > { %10643 = vmatpush3.bf16.msra.mxu0 %v13443_v37  ;;  %v15083_v37 = vld [vmem:[#allocation2 + $0x179] sm:$0xff] }
 0x4c6   : > { %10644 = vmatprep.subr.bf16.mxu0 %v13474_v5 }
 0x4c7   : > { %11343 = vmatmul.mubr.bf16.gmra.mrb[76].mxu1 %v14761_v40  ;;  %10563 = vmatmul.mubr.bf16.gmra.mrb[80].mxu0 %v14914_v27  ;;  %v3286_v40 = vld [vmem:[#allocation2 + $0xa1] sm:$0xff] }
 0x4c8   : > { %11346 = vmatprep.mubr.msk.bf16.mxu1 %vm13475_vm0, %v13474_v5  ;;  %10566 = vmatprep.mubr.msk.bf16.mxu0 %vm13475_vm0, %v13474_v5  ;;  %v14943_v42 = vpack.c.bf16 %v3286_v40, %v3285_v41  ;;  %v3753_v40 = vld [vmem:[#allocation2 + $0x1a] sm:$0xff] }
 0x4c9   : > { %10645 = vmatpush3.bf16.msra.mxu0 %v13444_v39  ;;  %v3754_v39 = vld [vmem:[#allocation2 + $0x22] sm:$0xff] }
 0x4ca   : > { %10738 = vmatprep.subr.bf16.mxu0 %v13474_v5  ;;  %v3798_v41 = vpack.c.bf16 %v3754_v39, %v3753_v40  ;;  %v7185_v40 = vld [vmem:[#allocation2 + $0x1a9] sm:$0xff] }
 0x4cf   : > { %11347 = vmatmul.mubr.bf16.gmra.mrb[80].mxu1 %v14768_v46  ;;  %10567 = vmatmul.mubr.bf16.gmra.mrb[84].mxu0 %v14930_v36  ;;  %v14951_v46 = vpack.c.bf16 %v3288_v45, %v3287_v43  ;;  %v3755_v43 = vld [vmem:[#allocation2 + $0x2a] sm:$0xff]  ;;  %v3756_v45 = vld [vmem:[#allocation2 + $0x32] sm:$0xff] }
 0x4d0   : > { %11350 = vmatprep.mubr.msk.bf16.mxu1 %vm13475_vm0, %v13474_v5  ;;  %10570 = vmatprep.mubr.msk.bf16.mxu0 %vm13475_vm0, %v13474_v5  ;;  %v3799_v47 = vpack.c.bf16 %v3756_v45, %v3755_v43  ;;  %v7208_v43 = vpack.c.bf16 %v7185_v40, %v7185_v40  ;;  %v4259_v40 = vld [vmem:[#allocation2 + $0xcb] sm:$0xff] }
 0x4d7   : > { %11351 = vmatmul.mubr.bf16.gmra.mrb[84].mxu1 %v14778_v49  ;;  %10571 = vmatmul.mubr.bf16.gmra.mrb[88].mxu0 %v14943_v42  ;;  %v3291_v49 = vld [vmem:[#allocation2 + $0xc9] sm:$0xff] }
 0x4d8   : > { %11354 = vmatprep.mubr.msk.bf16.mxu1 %vm13475_vm0, %v13474_v5  ;;  %10574 = vmatprep.mubr.msk.bf16.mxu0 %vm13475_vm0, %v13474_v5  ;;  %v14967_v55 = vpack.c.bf16 %v3292_v52, %v3291_v49  ;;  %v3758_v49 = vld [vmem:[#allocation2 + $0x42] sm:$0xff]  ;;  %v3757_v52 = vld [vmem:[#allocation2 + $0x3a] sm:$0xff] }
 0x4df   : > { %11355 = vmatmul.mubr.bf16.gmra.mrb[88].mxu1 %v14790_v58  ;;  %10575 = vmatmul.mubr.bf16.gmra.mrb[92].mxu0 %v14951_v46  ;;  %v3293_v58 = vld [vmem:[#allocation2 + $0xd9] sm:$0xff] }
 0x4e0   : > { %11358 = vmatprep.mubr.msk.bf16.mxu1 %vm13475_vm0, %v13474_v5  ;;  %10578 = vmatprep.mubr.msk.bf16.mxu0 %vm13475_vm0, %v13474_v5  ;;  %v14975_v53 = vpack.c.bf16 %v3294_v51, %v3293_v58  ;;  %v3800_v51 = vpack.c.bf16 %v3758_v49, %v3757_v52  ;;  %v13462_v58 = vld [vmem:[%s15731_s2 + $0x1e0] sm:$0xff]   ;;  %v13451_v52 = vld [vmem:[%s15731_s2 + $0x3c8] sm:$0xff]  }
 0x4e7   : > { %11359 = vmatmul.mubr.bf16.gmra.mrb[0].mxu1 %v14806_v57  ;;  %10579 = vmatmul.mubr.bf16.gmra.mrb[96].mxu0 %v14959_v44  ;;  %v6721_v57 = vpack.c.bf16 %v6696_v54, %v14846_v1  ;;  %v3300_v1 = vld [vmem:[#allocation2 + $0x111] sm:$0xff] }
 0x4e8   : > { %11362 = vmatprep.mubr.msk.bf16.mxu1 %vm13475_vm0, %v13474_v5  ;;  %10582 = vmatprep.mubr.msk.bf16.mxu0 %vm13475_vm0, %v13474_v5  ;;  %v14998_v13 = vpack.c.bf16 %v3300_v1, %v3299_v6  ;;  %v3759_v54 = vld [vmem:[#allocation2 + $0x4a] sm:$0xff]  ;;  %v3768_v1 = vld [vmem:[#allocation2 + $0x92] sm:$0xff] }
 0x4e9   : > { %v15128_v61 = vpack.c.bf16 %v3760_v60, %v3759_v54  ;;  %v13452_v54 = vld [vmem:[%s15731_s2 + $0x3d0] sm:$0xff]   ;;  %v13453_v60 = vld [vmem:[%s15731_s2 + $0x3d8] sm:$0xff]  }
 0x4ef   : > { %11363 = vmatmul.mubr.bf16.gmra.mrb[4].mxu1 %v14822_v7  ;;  %10583 = vmatmul.mubr.bf16.gmra.mrb[100].mxu0 %v14967_v55  ;;  %v3297_v7 = vld [vmem:[#allocation2 + $0xf9] sm:$0xff] }
 0x4f0   : > { %11366 = vmatprep.mubr.msk.bf16.mxu1 %vm13475_vm0, %v13474_v5  ;;  %10586 = vmatprep.mubr.msk.bf16.mxu0 %vm13475_vm0, %v13474_v5  ;;  %v14991_v4 = vpack.c.bf16 %v3298_v0, %v3297_v7  ;;  %v15144_v0 = vpack.c.bf16 %v3762_v62, %v3761_v56  ;;  %v3763_v7 = vld [vmem:[#allocation2 + $0x6a] sm:$0xff]  ;;  %v13454_v62 = vld [vmem:[%s15731_s2 + $0x3e0] sm:$0xff]  }
 0x4f1   : > { %v13455_v56 = vld [vmem:[%s15731_s2 + $0x3e8] sm:$0xff]  }
 0x4f7   : > { %11367 = vmatmul.mubr.bf16.gmra.mrb[8].mxu1 %v14835_v2  ;;  %10587 = vmatmul.mubr.bf16.gmra.mrb[104].mxu0 %v14975_v53  ;;  %v6699_v2 = vld [vmem:[#allocation2 + $0x198] sm:$0xff] }
 0x4f8   : > { %11370 = vmatprep.mubr.msk.bf16.mxu1 %vm13475_vm0, %v13474_v5  ;;  %10590 = vmatprep.mubr.msk.bf16.mxu0 %vm13475_vm0, %v13474_v5  ;;  %v6723_v3 = vpack.c.bf16 %v6700_v63, %v6699_v2  ;;  %v3765_v2 = vld [vmem:[#allocation2 + $0x7a] sm:$0xff] }
 0x4ff   : > { %11371 = vmatmul.mubr.bf16.gmra.mrb[12].mxu1 %v6721_v57  ;;  %10591 = vmatmul.mubr.bf16.gmra.mrb[108].mxu0 %v14984_v59  ;;  %v13464_v57 = vld [vmem:[%s15731_s2 + $0x1f0] sm:$0xff]  }
 0x500   : > { %11374 = vmatprep.mubr.msk.bf16.mxu1 %vm13475_vm0, %v13474_v5  ;;  %10594 = vmatprep.mubr.msk.bf16.mxu0 %vm13475_vm0, %v13474_v5 }
 0x507   : > { %11375 = vmatmul.mubr.bf16.gmra.mrb[16].mxu1 %v6722_v50  ;;  %10595 = vmatmul.mubr.bf16.gmra.mrb[112].mxu0 %v14991_v4  ;;  %v3764_v50 = vld [vmem:[#allocation2 + $0x72] sm:$0xff] }
 0x508   : > { %11378 = vmatprep.mubr.msk.bf16.mxu1 %vm13475_vm0, %v13474_v5  ;;  %10598 = vmatprep.mubr.msk.bf16.mxu0 %vm13475_vm0, %v13474_v5  ;;  %v15155_v6 = vpack.c.bf16 %v3764_v50, %v3763_v7  ;;  %v13456_v50 = vld [vmem:[%s15731_s2 + $0x3f0] sm:$0xff]  }
 0x50f   : > { %11379 = vmatmul.mubr.bf16.gmra.mrb[20].mxu1 %v6723_v3  ;;  %10599 = vmatmul.mubr.bf16.gmra.mrb[116].mxu0 %v14998_v13 }
 0x510   : > { %11382 = vmatprep.mubr.msk.bf16.mxu1 %vm13475_vm0, %v13474_v5  ;;  %10602 = vmatprep.mubr.msk.bf16.mxu0 %vm13475_vm0, %v13474_v5 }
 0x517   : > { %11383 = vmatmul.mubr.bf16.gmra.mrb[24].mxu1 %v6724_v9  ;;  %10603 = vmatmul.mubr.bf16.gmra.mrb[120].mxu0 %v15005_v15  ;;  %v3772_v9 = vld [vmem:[#allocation2 + $0xb2] sm:$0xff] }
 0x518   : > { %11402 = vmatprep.mubr.msk.bf16.mxu1 %vm13475_vm0, %v13474_v5  ;;  %10606 = vmatprep.mubr.msk.bf16.mxu0 %vm13475_vm0, %v13474_v5 }
 0x51f   : > { %11403 = vmatmul.mubr.bf16.vlgmr.msra.gmra.mrb[28].mxu1 %v14871_v8  ;;  %10607 = vmatmul.mubr.bf16.gmra.mrb[124].mxu0 %v15015_v31  ;;  %v13442_v8 = vld [vmem:[%s15731_s2 + $0x390] sm:$0xff]  }
 0x520   : > { %11495 = vmatpush3.bf16.msra.mxu1 %v13434_v25  ;;  %11406 = vmatprep.mubr.msk.bf16.mxu1 %vm13475_vm0, %v13474_v5  ;;  %v15195_v25 = vpack.c.bf16 %v3774_v18, %v3773_v12  ;;  %v4241_v18 = vld [vmem:[#allocation2 + $0x3b] sm:$0xff] }
 0x521   : > { %10610 = vmatprep.mubr.msk.bf16.mxu0 %vm13475_vm0, %v13474_v5  ;;  %11496 = vmatprep.subr.bf16.mxu1 %v13474_v5 }
 0x524   : > { %11497 = vmatpush3.bf16.msra.mxu1 %v13435_v34  ;;  %v3776_v34 = vld [vmem:[#allocation2 + $0xd2] sm:$0xff] }
 0x525   : > { %11498 = vmatprep.subr.bf16.mxu1 %v13474_v5 }
 0x527   : > { %11407 = vmatmul.mubr.bf16.gmra.mrb[32].mxu1 %v14882_v17  ;;  %10611 = vmatmul.mubr.bf16.gmra.mrb[128].mxu0 %v15027_v14  ;;  %v13446_v17 = vld [vmem:[%s15731_s2 + $0x3a0] sm:$0xff]  }
 0x528   : > { %11410 = vmatprep.mubr.msk.bf16.mxu1 %vm13475_vm0, %v13474_v5  ;;  %10614 = vmatprep.mubr.msk.bf16.mxu0 %vm13475_vm0, %v13474_v5 }
 0x529   : > { %11499 = vmatpush3.bf16.msra.mxu1 %v13442_v8 }
 0x52a   : > { %11500 = vmatprep.subr.bf16.mxu1 %v13474_v5 }
 0x52d   : > { %11501 = vmatpush3.bf16.msra.mxu1 %v13445_v24  ;;  %v7180_v24 = vld [vmem:[#allocation2 + $0x181] sm:$0xff] }
 0x52e   : > { %11502 = vmatprep.subr.bf16.mxu1 %v13474_v5 }
 0x52f   : > { %11411 = vmatmul.mubr.bf16.gmra.mrb[36].mxu1 %v14898_v20  ;;  %10615 = vmatmul.mubr.bf16.gmra.mrb[132].mxu0 %v15043_v29  ;;  %v13448_v20 = vld [vmem:[%s15731_s2 + $0x3b0] sm:$0xff]  }
 0x530   : > { %11414 = vmatprep.mubr.msk.bf16.mxu1 %vm13475_vm0, %v13474_v5  ;;  %10618 = vmatprep.mubr.msk.bf16.mxu0 %vm13475_vm0, %v13474_v5 }
 0x531   : > { %11503 = vmatpush3.bf16.msra.mxu1 %v13446_v17  ;;  %v15220_v17 = vpack.c.bf16 %v3780_v23, %v3779_v19  ;;  %v4250_v23 = vld [vmem:[#allocation2 + $0x83] sm:$0xff] }
 0x532   : > { %11504 = vmatprep.subr.bf16.mxu1 %v13474_v5 }
 0x535   : > { %11505 = vmatpush3.bf16.msra.mxu1 %v13447_v26  ;;  %v7181_v26 = vld [vmem:[#allocation2 + $0x189] sm:$0xff] }
 0x536   : > { %11506 = vmatprep.subr.bf16.mxu1 %v13474_v5 }
 0x537   : > { %11415 = vmatmul.mubr.bf16.gmra.mrb[40].mxu1 %v14914_v27  ;;  %10619 = vmatmul.mubr.bf16.gmra.mrb[136].mxu0 %v15059_v32  ;;  %v13449_v27 = vld [vmem:[%s15731_s2 + $0x3b8] sm:$0xff]  }
 0x538   : > { %11418 = vmatprep.mubr.msk.bf16.mxu1 %vm13475_vm0, %v13474_v5  ;;  %10622 = vmatprep.mubr.msk.bf16.mxu0 %vm13475_vm0, %v13474_v5 }
 0x539   : > { %11507 = vmatpush3.bf16.msra.mxu1 %v13448_v20  ;;  %v7206_v20 = vpack.c.bf16 %v7182_v30, %v7181_v26  ;;  %v4251_v26 = vld [vmem:[#allocation2 + $0x8b] sm:$0xff]  ;;  %v4252_v30 = vld [vmem:[#allocation2 + $0x93] sm:$0xff] }
 0x53a   : > { %11508 = vmatprep.subr.bf16.mxu1 %v13474_v5 }
 0x53d   : > { %11509 = vmatpush3.bf16.msra.mxu1 %v13449_v27  ;;  %v3783_v27 = vld [vmem:[#allocation2 + $0x10a] sm:$0xff] }
 0x53e   : > { %11602 = vmatprep.subr.bf16.mxu1 %v13474_v5 }
 0x53f   : > { %11419 = vmatmul.mubr.bf16.gmra.mrb[44].mxu1 %v14930_v36  ;;  %10623 = vmatmul.mubr.bf16.gmra.mrb[140].mxu0 %v15072_v38  ;;  %v3336_v36 = vpack.c.bf16 %v15083_v37, %v15083_v37 }
 0x540   : > { %11422 = vmatprep.mubr.msk.bf16.mxu1 %vm13475_vm0, %v13474_v5  ;;  %10626 = vmatprep.mubr.msk.bf16.mxu0 %vm13475_vm0, %v13474_v5 }
 0x547   : > { %11423 = vmatmul.mubr.bf16.gmra.mrb[48].mxu1 %v14943_v42  ;;  %10627 = vmatmul.mubr.bf16.gmra.mrb[144].mxu0 %v3336_v36  ;;  %v13458_v42 = vld [vmem:[%s15731_s2 + $0x1c0] sm:$0xff]  }
 0x548   : > { %11426 = vmatprep.mubr.msk.bf16.mxu1 %vm13475_vm0, %v13474_v5  ;;  %10646 = vmatprep.mubr.msk.bf16.mxu0 %vm13475_vm0, %v13474_v5 }
 0x54f   : > { %11427 = vmatmul.mubr.bf16.gmra.mrb[52].mxu1 %v14951_v46  ;;  %10647 = vmatmul.mubr.bf16.vlgmr.msra.gmra.mrb[56].mxu0 %v3798_v41  ;;  %v13459_v46 = vld [vmem:[%s15731_s2 + $0x1c8] sm:$0xff]  }
 0x550   : > { %11430 = vmatprep.mubr.msk.bf16.mxu1 %vm13475_vm0, %v13474_v5  ;;  %10650 = vmatprep.mubr.msk.bf16.mxu0 %vm13475_vm0, %v13474_v5  ;;  %v3786_v41 = vld [vmem:[#allocation2 + $0x122] sm:$0xff] }
 0x551   : > { %10739 = vmatpush3.bf16.msra.mxu0 %v13458_v42  ;;  %v3785_v42 = vld [vmem:[#allocation2 + $0x11a] sm:$0xff] }
 0x552   : > { %10740 = vmatprep.subr.bf16.mxu0 %v13474_v5  ;;  %v15241_v45 = vpack.c.bf16 %v3786_v41, %v3785_v42  ;;  %v4260_v41 = vld [vmem:[#allocation2 + $0xd3] sm:$0xff] }
 0x553   : > { %v15407_v42 = vpack.c.bf16 %v4260_v41, %v4259_v40 }
 0x555   : > { %10741 = vmatpush3.bf16.msra.mxu0 %v13459_v46  ;;  %v3788_v46 = vld [vmem:[#allocation2 + $0x132] sm:$0xff] }
 0x556   : > { %10742 = vmatprep.subr.bf16.mxu0 %v13474_v5 }
 0x557   : > { %11431 = vmatmul.mubr.bf16.gmra.mrb[56].mxu1 %v14959_v44  ;;  %10651 = vmatmul.mubr.bf16.gmra.mrb[60].mxu0 %v3799_v47  ;;  %v13461_v44 = vld [vmem:[%s15731_s2 + $0x1d8] sm:$0xff]   ;;  %v3787_v47 = vld [vmem:[#allocation2 + $0x12a] sm:$0xff] }
 0x558   : > { %11434 = vmatprep.mubr.msk.bf16.mxu1 %vm13475_vm0, %v13474_v5  ;;  %10654 = vmatprep.mubr.msk.bf16.mxu0 %vm13475_vm0, %v13474_v5  ;;  %v15251_v49 = vpack.c.bf16 %v3788_v46, %v3787_v47  ;;  %v7664_v46 = vld [vmem:[#allocation2 + $0x182] sm:$0xff] }
 0x559   : > { %10743 = vmatpush3.bf16.msra.mxu0 %v13460_v48  ;;  %v13450_v48 = vld [vmem:[%s15731_s2 + $0x3c0] sm:$0xff]  }
 0x55a   : > { %10744 = vmatprep.subr.bf16.mxu0 %v13474_v5 }
 0x55d   : > { %10745 = vmatpush3.bf16.msra.mxu0 %v13461_v44  ;;  %v3789_v44 = vld [vmem:[#allocation2 + $0x13a] sm:$0xff] }
 0x55e   : > { %10746 = vmatprep.subr.bf16.mxu0 %v13474_v5 }
 0x55f   : > { %11435 = vmatmul.mubr.bf16.gmra.mrb[60].mxu1 %v14967_v55  ;;  %10655 = vmatmul.mubr.bf16.gmra.mrb[64].mxu0 %v3800_v51  ;;  %v13463_v55 = vld [vmem:[%s15731_s2 + $0x1e8] sm:$0xff]  }
 0x560   : > { %11438 = vmatprep.mubr.msk.bf16.mxu1 %vm13475_vm0, %v13474_v5  ;;  %10658 = vmatprep.mubr.msk.bf16.mxu0 %vm13475_vm0, %v13474_v5  ;;  %v3790_v51 = vld [vmem:[#allocation2 + $0x142] sm:$0xff] }
 0x561   : > { %10747 = vmatpush3.bf16.msra.mxu0 %v13462_v58  ;;  %v15263_v58 = vpack.c.bf16 %v3790_v51, %v3789_v44  ;;  %v7665_v44 = vld [vmem:[#allocation2 + $0x18a] sm:$0xff] }
 0x562   : > { %10748 = vmatprep.subr.bf16.mxu0 %v13474_v5 }
 0x565   : > { %10749 = vmatpush3.bf16.msra.mxu0 %v13463_v55  ;;  %v3792_v55 = vld [vmem:[#allocation2 + $0x152] sm:$0xff] }
 0x566   : > { %10750 = vmatprep.subr.bf16.mxu0 %v13474_v5 }
 0x567   : > { %11439 = vmatmul.mubr.bf16.gmra.mrb[64].mxu1 %v14975_v53  ;;  %10659 = vmatmul.mubr.bf16.gmra.mrb[68].mxu0 %v15128_v61  ;;  %v13465_v53 = vld [vmem:[%s15731_s2 + $0x1f8] sm:$0xff]  }
 0x568   : > { %11442 = vmatprep.mubr.msk.bf16.mxu1 %vm13475_vm0, %v13474_v5  ;;  %10662 = vmatprep.mubr.msk.bf16.mxu0 %vm13475_vm0, %v13474_v5 }
 0x569   : > { %10751 = vmatpush3.bf16.msra.mxu0 %v13464_v57 }
 0x56a   : > { %10752 = vmatprep.subr.bf16.mxu0 %v13474_v5 }
 0x56d   : > { %10753 = vmatpush3.bf16.msra.mxu0 %v13465_v53  ;;  %v3793_v53 = vld [vmem:[#allocation2 + $0x15a] sm:$0xff] }
 0x56f   : > { %11443 = vmatmul.mubr.bf16.gmra.mrb[68].mxu1 %v14984_v59  ;;  %10663 = vmatmul.mubr.bf16.gmra.mrb[72].mxu0 %v15144_v0  ;;  %v3766_v59 = vld [vmem:[#allocation2 + $0x82] sm:$0xff] }
 0x570   : > { %11446 = vmatprep.mubr.msk.bf16.mxu1 %vm13475_vm0, %v13474_v5  ;;  %10666 = vmatprep.mubr.msk.bf16.mxu0 %vm13475_vm0, %v13474_v5  ;;  %v15163_v63 = vpack.c.bf16 %v3766_v59, %v3765_v2  ;;  %v3796_v59 = vld [vmem:[#allocation2 + $0x172] sm:$0xff] }
 0x577   : > { %11447 = vmatmul.mubr.bf16.gmra.mrb[72].mxu1 %v14991_v4  ;;  %10667 = vmatmul.mubr.bf16.gmra.mrb[76].mxu0 %v15155_v6  ;;  %v3767_v4 = vld [vmem:[#allocation2 + $0x8a] sm:$0xff] }
 0x578   : > { %11450 = vmatprep.mubr.msk.bf16.mxu1 %vm13475_vm0, %v13474_v5  ;;  %10670 = vmatprep.mubr.msk.bf16.mxu0 %vm13475_vm0, %v13474_v5  ;;  %v15171_v3 = vpack.c.bf16 %v3768_v1, %v3767_v4  ;;  %v15319_v4 = vld [vmem:[#allocation2 + $0x17a] sm:$0xff] }
 0x579   : > { %v3820_v1 = vpack.c.bf16 %v15319_v4, %v15319_v4 }
 0x57f   : > { %11451 = vmatmul.mubr.bf16.gmra.mrb[76].mxu1 %v14998_v13  ;;  %10671 = vmatmul.mubr.bf16.gmra.mrb[80].mxu0 %v15163_v63  ;;  %v3770_v13 = vld [vmem:[#allocation2 + $0xa2] sm:$0xff] }
 0x580   : > { %11454 = vmatprep.mubr.msk.bf16.mxu1 %vm13475_vm0, %v13474_v5  ;;  %10674 = vmatprep.mubr.msk.bf16.mxu0 %vm13475_vm0, %v13474_v5  ;;  %v15179_v16 = vpack.c.bf16 %v3770_v13, %v3769_v10  ;;  %v4237_v13 = vld [vmem:[#allocation2 + $0x1b] sm:$0xff] }
 0x587   : > { %11455 = vmatmul.mubr.bf16.gmra.mrb[80].mxu1 %v15005_v15  ;;  %10675 = vmatmul.mubr.bf16.gmra.mrb[84].mxu0 %v15171_v3  ;;  %v15187_v15 = vpack.c.bf16 %v3772_v9, %v3771_v22  ;;  %v4240_v22 = vld [vmem:[#allocation2 + $0x33] sm:$0xff] }
 0x588   : > { %11458 = vmatprep.mubr.msk.bf16.mxu1 %vm13475_vm0, %v13474_v5  ;;  %10678 = vmatprep.mubr.msk.bf16.mxu0 %vm13475_vm0, %v13474_v5 }
 0x58f   : > { %11459 = vmatmul.mubr.bf16.gmra.mrb[84].mxu1 %v15015_v31  ;;  %10679 = vmatmul.mubr.bf16.gmra.mrb[88].mxu0 %v15179_v16  ;;  %v3775_v31 = vld [vmem:[#allocation2 + $0xca] sm:$0xff] }
 0x590   : > { %11462 = vmatprep.mubr.msk.bf16.mxu1 %vm13475_vm0, %v13474_v5  ;;  %10682 = vmatprep.mubr.msk.bf16.mxu0 %vm13475_vm0, %v13474_v5  ;;  %v15203_v11 = vpack.c.bf16 %v3776_v34, %v3775_v31  ;;  %v4244_v31 = vld [vmem:[#allocation2 + $0x53] sm:$0xff] }
 0x597   : > { %11463 = vmatmul.mubr.bf16.gmra.mrb[88].mxu1 %v15027_v14  ;;  %10683 = vmatmul.mubr.bf16.gmra.mrb[92].mxu0 %v15187_v15  ;;  %v3777_v14 = vld [vmem:[#allocation2 + $0xda] sm:$0xff] }
 0x598   : > { %11466 = vmatprep.mubr.msk.bf16.mxu1 %vm13475_vm0, %v13474_v5  ;;  %10686 = vmatprep.mubr.msk.bf16.mxu0 %vm13475_vm0, %v13474_v5  ;;  %v15211_v8 = vpack.c.bf16 %v3778_v21, %v3777_v14  ;;  %v4245_v21 = vld [vmem:[#allocation2 + $0x5b] sm:$0xff] }
 0x59f   : > { %11467 = vmatmul.mubr.bf16.gmra.mrb[0].mxu1 %v15043_v29  ;;  %10687 = vmatmul.mubr.bf16.gmra.mrb[96].mxu0 %v15195_v25  ;;  %v7205_v29 = vpack.c.bf16 %v7180_v24, %v15083_v37  ;;  %v3784_v37 = vld [vmem:[#allocation2 + $0x112] sm:$0xff] }
 0x5a0   : > { %11470 = vmatprep.mubr.msk.bf16.mxu1 %vm13475_vm0, %v13474_v5  ;;  %10690 = vmatprep.mubr.msk.bf16.mxu0 %vm13475_vm0, %v13474_v5  ;;  %v15234_v39 = vpack.c.bf16 %v3784_v37, %v3783_v27  ;;  %v4248_v24 = vld [vmem:[#allocation2 + $0x73] sm:$0xff]  ;;  %v4258_v37 = vld [vmem:[#allocation2 + $0xc3] sm:$0xff] }
 0x5a7   : > { %11471 = vmatmul.mubr.bf16.gmra.mrb[4].mxu1 %v15059_v32  ;;  %10691 = vmatmul.mubr.bf16.gmra.mrb[100].mxu0 %v15203_v11  ;;  %v3781_v32 = vld [vmem:[#allocation2 + $0xfa] sm:$0xff] }
 0x5a8   : > { %11474 = vmatprep.mubr.msk.bf16.mxu1 %vm13475_vm0, %v13474_v5  ;;  %10694 = vmatprep.mubr.msk.bf16.mxu0 %vm13475_vm0, %v13474_v5  ;;  %v15227_v33 = vpack.c.bf16 %v3782_v28, %v3781_v32  ;;  %v15375_v28 = vpack.c.bf16 %v4252_v30, %v4251_v26  ;;  %v4254_v32 = vld [vmem:[#allocation2 + $0xa3] sm:$0xff] }
 0x5af   : > { %11475 = vmatmul.mubr.bf16.gmra.mrb[8].mxu1 %v15072_v38  ;;  %10695 = vmatmul.mubr.bf16.gmra.mrb[104].mxu0 %v15211_v8  ;;  %v7184_v38 = vld [vmem:[#allocation2 + $0x1a1] sm:$0xff] }
 0x5b0   : > { %11478 = vmatprep.mubr.msk.bf16.mxu1 %vm13475_vm0, %v13474_v5  ;;  %10698 = vmatprep.mubr.msk.bf16.mxu0 %vm13475_vm0, %v13474_v5  ;;  %v7207_v36 = vpack.c.bf16 %v7184_v38, %v7183_v35  ;;  %v4255_v35 = vld [vmem:[#allocation2 + $0xab] sm:$0xff]  ;;  %v4256_v38 = vld [vmem:[#allocation2 + $0xb3] sm:$0xff] }
 0x5b1   : > { %v15391_v27 = vpack.c.bf16 %v4256_v38, %v4255_v35 }
 0x5b7   : > { %11479 = vmatmul.mubr.bf16.gmra.mrb[12].mxu1 %v7205_v29  ;;  %10699 = vmatmul.mubr.bf16.gmra.mrb[108].mxu0 %v15220_v17  ;;  %v4249_v29 = vld [vmem:[#allocation2 + $0x7b] sm:$0xff] }
 0x5b8   : > { %11482 = vmatprep.mubr.msk.bf16.mxu1 %vm13475_vm0, %v13474_v5  ;;  %10702 = vmatprep.mubr.msk.bf16.mxu0 %vm13475_vm0, %v13474_v5 }
 0x5bf   : > { %11483 = vmatmul.mubr.bf16.gmra.mrb[16].mxu1 %v7206_v20  ;;  %10703 = vmatmul.mubr.bf16.gmra.mrb[112].mxu0 %v15227_v33  ;;  %v4253_v20 = vld [vmem:[#allocation2 + $0x9b] sm:$0xff] }
 0x5c0   : > { %11486 = vmatprep.mubr.msk.bf16.mxu1 %vm13475_vm0, %v13474_v5  ;;  %10706 = vmatprep.mubr.msk.bf16.mxu0 %vm13475_vm0, %v13474_v5 }
 0x5c7   : > { %11487 = vmatmul.mubr.bf16.gmra.mrb[20].mxu1 %v7207_v36  ;;  %10707 = vmatmul.mubr.bf16.gmra.mrb[116].mxu0 %v15234_v39  ;;  %v4257_v36 = vld [vmem:[#allocation2 + $0xbb] sm:$0xff] }
 0x5c8   : > { %11490 = vmatprep.mubr.msk.bf16.mxu1 %vm13475_vm0, %v13474_v5  ;;  %10710 = vmatprep.mubr.msk.bf16.mxu0 %vm13475_vm0, %v13474_v5 }
 0x5cf   : > { %11491 = vmatmul.mubr.bf16.gmra.mrb[24].mxu1 %v7208_v43  ;;  %10711 = vmatmul.mubr.bf16.gmra.mrb[120].mxu0 %v15241_v45  ;;  %v4262_v43 = vld [vmem:[#allocation2 + $0xe3] sm:$0xff] }
 0x5d0   : > { %11510 = vmatprep.mubr.msk.bf16.mxu1 %vm13475_vm0, %v13474_v5  ;;  %10714 = vmatprep.mubr.msk.bf16.mxu0 %vm13475_vm0, %v13474_v5 }
 0x5d7   : > { %11511 = vmatmul.mubr.bf16.vlgmr.msra.gmra.mrb[28].mxu1 %v15128_v61  ;;  %10715 = vmatmul.mubr.bf16.gmra.mrb[124].mxu0 %v15251_v49  ;;  %v3791_v61 = vld [vmem:[#allocation2 + $0x14a] sm:$0xff] }
 0x5d8   : > { %11603 = vmatpush3.bf16.msra.mxu1 %v13450_v48  ;;  %11514 = vmatprep.mubr.msk.bf16.mxu1 %vm13475_vm0, %v13474_v5  ;;  %v15279_v57 = vpack.c.bf16 %v3792_v55, %v3791_v61  ;;  %v4263_v48 = vld [vmem:[#allocation2 + $0xeb] sm:$0xff] }
 0x5d9   : > { %10718 = vmatprep.mubr.msk.bf16.mxu0 %vm13475_vm0, %v13474_v5  ;;  %11604 = vmatprep.subr.bf16.mxu1 %v13474_v5 }
 0x5dc   : > { %11605 = vmatpush3.bf16.msra.mxu1 %v13451_v52  ;;  %v7689_v52 = vpack.c.bf16 %v7664_v46, %v15319_v4 }
 0x5dd   : > { %11606 = vmatprep.subr.bf16.mxu1 %v13474_v5 }
 0x5df   : > { %11515 = vmatmul.mubr.bf16.gmra.mrb[32].mxu1 %v15144_v0  ;;  %10719 = vmatmul.mubr.bf16.gmra.mrb[128].mxu0 %v15263_v58  ;;  %v3794_v0 = vld [vmem:[#allocation2 + $0x162] sm:$0xff] }
 0x5e0   : > { %11518 = vmatprep.mubr.msk.bf16.mxu1 %vm13475_vm0, %v13474_v5  ;;  %10722 = vmatprep.mubr.msk.bf16.mxu0 %vm13475_vm0, %v13474_v5  ;;  %v15295_v7 = vpack.c.bf16 %v3794_v0, %v3793_v53  ;;  %v4268_v0 = vld [vmem:[#allocation2 + $0x113] sm:$0xff] }
 0x5e1   : > { %11607 = vmatpush3.bf16.msra.mxu1 %v13452_v54  ;;  %v4266_v54 = vld [vmem:[#allocation2 + $0x103] sm:$0xff] }
 0x5e2   : > { %11608 = vmatprep.subr.bf16.mxu1 %v13474_v5 }
 0x5e5   : > { %11609 = vmatpush3.bf16.msra.mxu1 %v13453_v60  ;;  %v4265_v60 = vld [vmem:[#allocation2 + $0xfb] sm:$0xff] }
 0x5e6   : > { %11610 = vmatprep.subr.bf16.mxu1 %v13474_v5  ;;  %v15431_v55 = vpack.c.bf16 %v4266_v54, %v4265_v60 }
 0x5e7   : > { %11519 = vmatmul.mubr.bf16.gmra.mrb[36].mxu1 %v15155_v6  ;;  %10723 = vmatmul.mubr.bf16.gmra.mrb[132].mxu0 %v15279_v57  ;;  %v3795_v6 = vld [vmem:[#allocation2 + $0x16a] sm:$0xff] }
 0x5e8   : > { %11522 = vmatprep.mubr.msk.bf16.mxu1 %vm13475_vm0, %v13474_v5  ;;  %10726 = vmatprep.mubr.msk.bf16.mxu0 %vm13475_vm0, %v13474_v5  ;;  %v15308_v2 = vpack.c.bf16 %v3796_v59, %v3795_v6  ;;  %v15459_v59 = vld [vmem:[%s15732_s3] ss:$0 sm:$0xff] }
 0x5e9   : > { %11611 = vmatpush3.bf16.msra.mxu1 %v13454_v62  ;;  %v7668_v62 = vld [vmem:[#allocation2 + $0x1a2] sm:$0xff] }
 0x5ea   : > { %11612 = vmatprep.subr.bf16.mxu1 %v13474_v5 }
 0x5ed   : > { %11613 = vmatpush3.bf16.msra.mxu1 %v13455_v56  ;;  %v4267_v56 = vld [vmem:[#allocation2 + $0x10b] sm:$0xff] }
 0x5ee   : > { %11614 = vmatprep.subr.bf16.mxu1 %v13474_v5 }
 0x5ef   : > { %11523 = vmatmul.mubr.bf16.gmra.mrb[40].mxu1 %v15163_v63  ;;  %10727 = vmatmul.mubr.bf16.gmra.mrb[136].mxu0 %v15295_v7  ;;  %v13457_v63 = vld [vmem:[%s15731_s2 + $0x3f8] sm:$0xff]  }
 0x5f0   : > { %11526 = vmatprep.mubr.msk.bf16.mxu1 %vm13475_vm0, %v13474_v5  ;;  %10730 = vmatprep.mubr.msk.bf16.mxu0 %vm13475_vm0, %v13474_v5 }
 0x5f1   : > { %11615 = vmatpush3.bf16.msra.mxu1 %v13456_v50  ;;  %v7669_v50 = vld [vmem:[#allocation2 + $0x1aa] sm:$0xff] }
 0x5f2   : > { %11616 = vmatprep.subr.bf16.mxu1 %v13474_v5  ;;  %v7692_v6 = vpack.c.bf16 %v7669_v50, %v7669_v50 }
 0x5f5   : > { %11617 = vmatpush3.bf16.msra.mxu1 %v13457_v63 }
 0x5f7   : > { %11527 = vmatmul.mubr.bf16.gmra.mrb[44].mxu1 %v15171_v3  ;;  %10731 = vmatmul.mubr.bf16.gmra.mrb[140].mxu0 %v15308_v2  ;;  %v4238_v3 = vld [vmem:[#allocation2 + $0x23] sm:$0xff] }
 0x5f8   : > { %11530 = vmatprep.mubr.msk.bf16.mxu1 %vm13475_vm0, %v13474_v5  ;;  %10734 = vmatprep.mubr.msk.bf16.mxu0 %vm13475_vm0, %v13474_v5  ;;  %v4282_v10 = vpack.c.bf16 %v4238_v3, %v4237_v13 }
 0x5ff   : > { %11531 = vmatmul.mubr.bf16.gmra.mrb[48].mxu1 %v15179_v16  ;;  %10735 = vmatmul.mubr.bf16.gmra.mrb[144].mxu0 %v3820_v1  ;;  %v4239_v16 = vld [vmem:[#allocation2 + $0x2b] sm:$0xff] }
 0x600   : > { %11534 = vmatprep.mubr.msk.bf16.mxu1 %vm13475_vm0, %v13474_v5  ;;  %10754 = vmatprep.mubr.msk.bf16.mxu0 %vm13475_vm0, %v13474_v5  ;;  %v4283_v9 = vpack.c.bf16 %v4240_v22, %v4239_v16 }
 0x607   : > { %11535 = vmatmul.mubr.bf16.gmra.mrb[52].mxu1 %v15187_v15  ;;  %10755 = vmatmul.mubr.bf16.vlgmr.msra.gmra.mrb[56].mxu0 %v4282_v10  ;;  %v4242_v15 = vld [vmem:[#allocation2 + $0x43] sm:$0xff] }
 0x608   : > { %11538 = vmatprep.mubr.msk.bf16.mxu1 %vm13475_vm0, %v13474_v5  ;;  %10758 = vmatprep.mubr.msk.bf16.mxu0 %vm13475_vm0, %v13474_v5  ;;  %v4284_v12 = vpack.c.bf16 %v4242_v15, %v4241_v18 }
 0x60f   : > { %11539 = vmatmul.mubr.bf16.gmra.mrb[56].mxu1 %v15195_v25  ;;  %10759 = vmatmul.mubr.bf16.gmra.mrb[60].mxu0 %v4283_v9  ;;  %v4243_v25 = vld [vmem:[#allocation2 + $0x4b] sm:$0xff] }
 0x610   : > { %11542 = vmatprep.mubr.msk.bf16.mxu1 %vm13475_vm0, %v13474_v5  ;;  %10762 = vmatprep.mubr.msk.bf16.mxu0 %vm13475_vm0, %v13474_v5  ;;  %v15343_v34 = vpack.c.bf16 %v4244_v31, %v4243_v25 }
 0x617   : > { %11543 = vmatmul.mubr.bf16.gmra.mrb[60].mxu1 %v15203_v11  ;;  %10763 = vmatmul.mubr.bf16.gmra.mrb[64].mxu0 %v4284_v12  ;;  %v4246_v11 = vld [vmem:[#allocation2 + $0x63] sm:$0xff] }
 0x618   : > { %11546 = vmatprep.mubr.msk.bf16.mxu1 %vm13475_vm0, %v13474_v5  ;;  %10766 = vmatprep.mubr.msk.bf16.mxu0 %vm13475_vm0, %v13474_v5  ;;  %v15351_v14 = vpack.c.bf16 %v4246_v11, %v4245_v21 }
 0x61f   : > { %11547 = vmatmul.mubr.bf16.gmra.mrb[64].mxu1 %v15211_v8  ;;  %10767 = vmatmul.mubr.bf16.gmra.mrb[68].mxu0 %v15343_v34  ;;  %v4247_v8 = vld [vmem:[#allocation2 + $0x6b] sm:$0xff] }
 0x620   : > { %11550 = vmatprep.mubr.msk.bf16.mxu1 %vm13475_vm0, %v13474_v5  ;;  %10770 = vmatprep.mubr.msk.bf16.mxu0 %vm13475_vm0, %v13474_v5  ;;  %v15359_v19 = vpack.c.bf16 %v4248_v24, %v4247_v8 }
 0x627   : > { %11551 = vmatmul.mubr.bf16.gmra.mrb[68].mxu1 %v15220_v17  ;;  %10771 = vmatmul.mubr.bf16.gmra.mrb[72].mxu0 %v15351_v14  ;;  %v15367_v17 = vpack.c.bf16 %v4250_v23, %v4249_v29 }
 0x628   : > { %11554 = vmatprep.mubr.msk.bf16.mxu1 %vm13475_vm0, %v13474_v5  ;;  %10774 = vmatprep.mubr.msk.bf16.mxu0 %vm13475_vm0, %v13474_v5 }
 0x62f   : > { %11555 = vmatmul.mubr.bf16.gmra.mrb[72].mxu1 %v15227_v33  ;;  %10775 = vmatmul.mubr.bf16.gmra.mrb[76].mxu0 %v15359_v19  ;;  %v15383_v33 = vpack.c.bf16 %v4254_v32, %v4253_v20 }
 0x630   : > { %11558 = vmatprep.mubr.msk.bf16.mxu1 %vm13475_vm0, %v13474_v5  ;;  %10778 = vmatprep.mubr.msk.bf16.mxu0 %vm13475_vm0, %v13474_v5 }
 0x637   : > { %11559 = vmatmul.mubr.bf16.gmra.mrb[76].mxu1 %v15234_v39  ;;  %10779 = vmatmul.mubr.bf16.gmra.mrb[80].mxu0 %v15367_v17  ;;  %v15399_v39 = vpack.c.bf16 %v4258_v37, %v4257_v36 }
 0x638   : > { %11562 = vmatprep.mubr.msk.bf16.mxu1 %vm13475_vm0, %v13474_v5  ;;  %10782 = vmatprep.mubr.msk.bf16.mxu0 %vm13475_vm0, %v13474_v5 }
 0x63f   : > { %11563 = vmatmul.mubr.bf16.gmra.mrb[80].mxu1 %v15241_v45  ;;  %10783 = vmatmul.mubr.bf16.gmra.mrb[84].mxu0 %v15375_v28  ;;  %v4261_v45 = vld [vmem:[#allocation2 + $0xdb] sm:$0xff] }
 0x640   : > { %11566 = vmatprep.mubr.msk.bf16.mxu1 %vm13475_vm0, %v13474_v5  ;;  %10786 = vmatprep.mubr.msk.bf16.mxu0 %vm13475_vm0, %v13474_v5  ;;  %v15415_v47 = vpack.c.bf16 %v4262_v43, %v4261_v45 }
 0x647   : > { %11567 = vmatmul.mubr.bf16.gmra.mrb[84].mxu1 %v15251_v49  ;;  %10787 = vmatmul.mubr.bf16.gmra.mrb[88].mxu0 %v15383_v33  ;;  %v4264_v49 = vld [vmem:[#allocation2 + $0xf3] sm:$0xff] }
 0x648   : > { %11570 = vmatprep.mubr.msk.bf16.mxu1 %vm13475_vm0, %v13474_v5  ;;  %10790 = vmatprep.mubr.msk.bf16.mxu0 %vm13475_vm0, %v13474_v5  ;;  %v15424_v51 = vpack.c.bf16 %v4264_v49, %v4263_v48 }
 0x64f   : > { %11571 = vmatmul.mubr.bf16.gmra.mrb[88].mxu1 %v15263_v58  ;;  %10791 = vmatmul.mubr.bf16.gmra.mrb[92].mxu0 %v15391_v27  ;;  %v7666_v58 = vld [vmem:[#allocation2 + $0x192] sm:$0xff] }
 0x650   : > { %11574 = vmatprep.mubr.msk.bf16.mxu1 %vm13475_vm0, %v13474_v5  ;;  %10794 = vmatprep.mubr.msk.bf16.mxu0 %vm13475_vm0, %v13474_v5  ;;  %v7690_v61 = vpack.c.bf16 %v7666_v58, %v7665_v44 }
 0x657   : > { %11575 = vmatmul.mubr.bf16.gmra.mrb[0].mxu1 %v15279_v57  ;;  %10795 = vmatmul.mubr.bf16.gmra.mrb[96].mxu0 %v15399_v39  ;;  %v7667_v57 = vld [vmem:[#allocation2 + $0x19a] sm:$0xff] }
 0x658   : > { %11578 = vmatprep.mubr.msk.bf16.mxu1 %vm13475_vm0, %v13474_v5  ;;  %10798 = vmatprep.mubr.msk.bf16.mxu0 %vm13475_vm0, %v13474_v5  ;;  %v7691_v53 = vpack.c.bf16 %v7668_v62, %v7667_v57  ;;  %v8136_v57 = vld [vmem:[#allocation2 + $0x123] sm:$0xff] }
 0x65f   : > { %11579 = vmatmul.mubr.bf16.gmra.mrb[4].mxu1 %v15295_v7  ;;  %10799 = vmatmul.mubr.bf16.gmra.mrb[100].mxu0 %v15407_v42  ;;  %v15438_v7 = vpack.c.bf16 %v4268_v0, %v4267_v56  ;;  %v8135_v0 = vld [vmem:[#allocation2 + $0x11b] sm:$0xff] }
 0x660   : > { %11582 = vmatprep.mubr.msk.bf16.mxu1 %vm13475_vm0, %v13474_v5  ;;  %10802 = vmatprep.mubr.msk.bf16.mxu0 %vm13475_vm0, %v13474_v5 }
 0x667   : > { %11583 = vmatmul.mubr.bf16.gmra.mrb[8].mxu1 %v15308_v2  ;;  %10803 = vmatmul.mubr.bf16.gmra.mrb[104].mxu0 %v15415_v47 }
 0x668   : > { %11586 = vmatprep.mubr.msk.bf16.mxu1 %vm13475_vm0, %v13474_v5  ;;  %10806 = vmatprep.mubr.msk.bf16.mxu0 %vm13475_vm0, %v13474_v5 }
 0x66f   : > { %11587 = vmatmul.mubr.bf16.gmra.mrb[12].mxu1 %v7689_v52  ;;  %10807 = vmatmul.mubr.bf16.gmra.mrb[108].mxu0 %v15424_v51 }
 0x670   : > { %11590 = vmatprep.mubr.msk.bf16.mxu1 %vm13475_vm0, %v13474_v5  ;;  %10810 = vmatprep.mubr.msk.bf16.mxu0 %vm13475_vm0, %v13474_v5 }
 0x677   : > { %11591 = vmatmul.mubr.bf16.gmra.mrb[16].mxu1 %v7690_v61  ;;  %10811 = vmatmul.mubr.bf16.gmra.mrb[112].mxu0 %v15431_v55 }
 0x678   : > { %11594 = vmatprep.mubr.msk.bf16.mxu1 %vm13475_vm0, %v13474_v5  ;;  %10814 = vmatprep.mubr.msk.bf16.mxu0 %vm13475_vm0, %v13474_v5 }
 0x67f   : > { %11595 = vmatmul.mubr.bf16.gmra.mrb[20].mxu1 %v7691_v53  ;;  %10815 = vmatmul.mubr.bf16.gmra.mrb[116].mxu0 %v15438_v7  ;;  %v8167_v53 = vpack.c.bf16 %v8136_v57, %v8135_v0  ;;  %v8151_v57 = vld [vmem:[#allocation2 + $0x19b] sm:$0xff] }
 0x680   : > { %11598 = vmatprep.mubr.msk.bf16.mxu1 %vm13475_vm0, %v13474_v5 }
 0x687   : > { %11599 = vmatmul.mubr.bf16.gmra.mrb[24].mxu1 %v7692_v6  ;;  %v8137_v6 = vld [vmem:[#allocation2 + $0x12b] sm:$0xff] }
 0x688   : > { %11618 = vmatprep.mubr.msk.bf16.mxu1 %vm13475_vm0, %v13474_v5 }
 0x68f   : > { %11619 = vmatmul.mubr.bf16.vlgmr.msra.gmra.mrb[28].mxu1 %v15343_v34 }
 0x690   : > { %11622 = vmatprep.mubr.msk.bf16.mxu1 %vm13475_vm0, %v13474_v5 }
 0x697   : > { %11623 = vmatmul.mubr.bf16.gmra.mrb[32].mxu1 %v15351_v14 }
 0x698   : > { %11626 = vmatprep.mubr.msk.bf16.mxu1 %vm13475_vm0, %v13474_v5 }
 0x69f   : > { %11627 = vmatmul.mubr.bf16.gmra.mrb[36].mxu1 %v15359_v19 }
 0x6a0   : > { %11630 = vmatprep.mubr.msk.bf16.mxu1 %vm13475_vm0, %v13474_v5 }
 0x6a2   : > { %v4093_v2 = vpop.f32.mrb[120].mxu0 }
 0x6a3   : > { %v11920_v63 = vadd.f32 %v15459_v59, %v4093_v2  ;;  %v10712_v4 = vpop.f32.mrb[121].mxu0  ;;  %v8138_v2 = vld [vmem:[#allocation2 + $0x133] sm:$0xff] }
 0x6a4   : > { %v4096_v1 = vpop.f32.mrb[122].mxu0 }
 0x6a5   : > { %11921 = vst [vmem:[%s15464_s27 + $0x100] sm:$0xff] %v11920_v63  ;;  %v11926_v3 = vadd.f32 %v15459_v59, %v4096_v1  ;;  %v10713_v13 = vpop.f32.mrb[123].mxu0  ;;  %v8168_v1 = vpack.c.bf16 %v8138_v2, %v8137_v6 }
 0x6a6   : > { %v8140_v13 = vld [vmem:[#allocation2 + $0x143] sm:$0xff] }
 0x6a7   : > { %11631 = vmatmul.mubr.bf16.gmra.mrb[40].mxu1 %v15367_v17  ;;  %11927 = vst [vmem:[%s15464_s27 + $0x108] sm:$0xff] %v11926_v3 }
 0x6a8   : > { %11634 = vmatprep.mubr.msk.bf16.mxu1 %vm13475_vm0, %v13474_v5 }
 0x6aa   : > { %v4101_v10 = vpop.f32.mrb[124].mxu0 }
 0x6ab   : > { %v11932_v16 = vadd.f32 %v15459_v59, %v4101_v10  ;;  %v10716_v22 = vpop.f32.mrb[125].mxu0 }
 0x6ac   : > { %v4104_v9 = vpop.f32.mrb[126].mxu0  ;;  %v8139_v22 = vld [vmem:[#allocation2 + $0x13b] sm:$0xff] }
 0x6ad   : > { %11933 = vst [vmem:[%s15464_s27 + $0x110] sm:$0xff] %v11932_v16  ;;  %v11938_v15 = vadd.f32 %v15459_v59, %v4104_v9  ;;  %v10717_v18 = vpop.f32.mrb[127].mxu0 }
 0x6af   : > { %11635 = vmatmul.mubr.bf16.gmra.mrb[44].mxu1 %v15375_v28  ;;  %11939 = vst [vmem:[%s15464_s27 + $0x118] sm:$0xff] %v11938_v15  ;;  %v8169_v15 = vpack.c.bf16 %v8140_v13, %v8139_v22 }
 0x6b0   : > { %11638 = vmatprep.mubr.msk.bf16.mxu1 %vm13475_vm0, %v13474_v5 }
 0x6b2   : > { %v4109_v12 = vpop.f32.mrb[128].mxu0 }
 0x6b3   : > { %v11944_v25 = vadd.f32 %v15459_v59, %v4109_v12  ;;  %v10720_v31 = vpop.f32.mrb[129].mxu0  ;;  %v8141_v12 = vld [vmem:[#allocation2 + $0x14b] sm:$0xff] }
 0x6b4   : > { %v4112_v34 = vpop.f32.mrb[130].mxu0 }
 0x6b5   : > { %11945 = vst [vmem:[%s15464_s27 + $0x120] sm:$0xff] %v11944_v25  ;;  %v11950_v11 = vadd.f32 %v15459_v59, %v4112_v34  ;;  %v10721_v21 = vpop.f32.mrb[131].mxu0  ;;  %v8142_v25 = vld [vmem:[#allocation2 + $0x153] sm:$0xff] }
 0x6b6   : > { %v8170_v21 = vpack.c.bf16 %v8142_v25, %v8141_v12 }
 0x6b7   : > { %11639 = vmatmul.mubr.bf16.gmra.mrb[48].mxu1 %v15383_v33  ;;  %11951 = vst [vmem:[%s15464_s27 + $0x128] sm:$0xff] %v11950_v11 }
 0x6b8   : > { %11642 = vmatprep.mubr.msk.bf16.mxu1 %vm13475_vm0, %v13474_v5 }
 0x6ba   : > { %v4117_v14 = vpop.f32.mrb[132].mxu0 }
 0x6bb   : > { %v11956_v8 = vadd.f32 %v15459_v59, %v4117_v14  ;;  %v10724_v24 = vpop.f32.mrb[133].mxu0 }
 0x6bc   : > { %v4120_v19 = vpop.f32.mrb[134].mxu0 }
 0x6bd   : > { %11957 = vst [vmem:[%s15464_s27 + $0x130] sm:$0xff] %v11956_v8  ;;  %v11962_v23 = vadd.f32 %v15459_v59, %v4120_v19  ;;  %v10725_v29 = vpop.f32.mrb[135].mxu0  ;;  %v8144_v8 = vld [vmem:[#allocation2 + $0x163] sm:$0xff] }
 0x6bf   : > { %11643 = vmatmul.mubr.bf16.gmra.mrb[52].mxu1 %v15391_v27  ;;  %11963 = vst [vmem:[%s15464_s27 + $0x138] sm:$0xff] %v11962_v23  ;;  %v8143_v23 = vld [vmem:[#allocation2 + $0x15b] sm:$0xff] }
 0x6c0   : > { %11646 = vmatprep.mubr.msk.bf16.mxu1 %vm13475_vm0, %v13474_v5 }
 0x6c2   : > { %v4125_v17 = vpop.f32.mrb[136].mxu0 }
 0x6c3   : > { %v11968_v26 = vadd.f32 %v15459_v59, %v4125_v17  ;;  %v10728_v30 = vpop.f32.mrb[137].mxu0  ;;  %v8171_v17 = vpack.c.bf16 %v8144_v8, %v8143_v23 }
 0x6c4   : > { %v4128_v28 = vpop.f32.mrb[138].mxu0  ;;  %v8145_v30 = vld [vmem:[#allocation2 + $0x16b] sm:$0xff] }
 0x6c5   : > { %11969 = vst [vmem:[%s15464_s27 + $0x140] sm:$0xff] %v11968_v26  ;;  %v11974_v32 = vadd.f32 %v15459_v59, %v4128_v28  ;;  %v10729_v20 = vpop.f32.mrb[139].mxu0  ;;  %v8146_v28 = vld [vmem:[#allocation2 + $0x173] sm:$0xff] }
 0x6c7   : > { %11647 = vmatmul.mubr.bf16.gmra.mrb[56].mxu1 %v15399_v39  ;;  %11975 = vst [vmem:[%s15464_s27 + $0x148] sm:$0xff] %v11974_v32 }
 0x6c8   : > { %11650 = vmatprep.mubr.msk.bf16.mxu1 %vm13475_vm0, %v13474_v5 }
 0x6ca   : > { %v4133_v33 = vpop.f32.mrb[140].mxu0 }
 0x6cb   : > { %v11980_v35 = vadd.f32 %v15459_v59, %v4133_v33  ;;  %v10732_v38 = vpop.f32.mrb[141].mxu0 }
 0x6cc   : > { %v4136_v27 = vpop.f32.mrb[142].mxu0 }
 0x6cd   : > { %11981 = vst [vmem:[%s15464_s27 + $0x150] sm:$0xff] %v11980_v35  ;;  %v11986_v37 = vadd.f32 %v15459_v59, %v4136_v27  ;;  %v10733_v36 = vpop.f32.mrb[143].mxu0  ;;  %v8172_v35 = vpack.c.bf16 %v8146_v28, %v8145_v30  ;;  %v8147_v27 = vld [vmem:[#allocation2 + $0x17b] sm:$0xff] }
 0x6cf   : > { %11651 = vmatmul.mubr.bf16.gmra.mrb[60].mxu1 %v15407_v42  ;;  %11987 = vst [vmem:[%s15464_s27 + $0x158] sm:$0xff] %v11986_v37  ;;  %v8148_v37 = vld [vmem:[#allocation2 + $0x183] sm:$0xff] }
 0x6d0   : > { %11654 = vmatprep.mubr.msk.bf16.mxu1 %vm13475_vm0, %v13474_v5 }
 0x6d2   : > { %v4141_v39 = vpop.f32.mrb[144].mxu0 }
 0x6d3   : > { %v11992_v40 = vadd.f32 %v15459_v59, %v4141_v39  ;;  %v10736_v41 = vpop.f32.mrb[145].mxu0 }
 0x6d4   : > { %v4144_v43 = vpop.f32.mrb[146].mxu0  ;;  %v8173_v41 = vpack.c.bf16 %v8148_v37, %v8147_v27 }
 0x6d5   : > { %11993 = vst [vmem:[%s15464_s27 + $0x160] sm:$0xff] %v11992_v40  ;;  %v10737_v45 = vpop.f32.mrb[147].mxu0 }
 0x6d6   : > { %v8149_v45 = vld [vmem:[#allocation2 + $0x18b] sm:$0xff] }
 0x6d7   : > { %11655 = vmatmul.mubr.bf16.gmra.mrb[64].mxu1 %v15415_v47 }
 0x6d8   : > { %11658 = vmatprep.mubr.msk.bf16.mxu1 %vm13475_vm0, %v13474_v5 }
 0x6da   : > { %v15513_v46 = vpop.f32.mrb[56].mxu0 }
 0x6db   : > { %v10756_v48 = vpop.f32.mrb[57].mxu0 }
 0x6dc   : > { %v15515_v42 = vpop.f32.mrb[58].mxu0  ;;  %v8150_v48 = vld [vmem:[#allocation2 + $0x193] sm:$0xff] }
 0x6dd   : > { %v10757_v49 = vpop.f32.mrb[59].mxu0  ;;  %v11734_v28 = vadd.f32 %v15459_v59, %v15515_v42 }
 0x6df   : > { %11659 = vmatmul.mubr.bf16.gmra.mrb[68].mxu1 %v15424_v51 }
 0x6e0   : > { %11662 = vmatprep.mubr.msk.bf16.mxu1 %vm13475_vm0, %v13474_v5 }
 0x6e2   : > { %v15520_v52 = vpop.f32.mrb[60].mxu0 }
 0x6e3   : > { %v10760_v44 = vpop.f32.mrb[61].mxu0 }
 0x6e4   : > { %v15522_v58 = vpop.f32.mrb[62].mxu0 }
 0x6e5   : > { %v10761_v47 = vpop.f32.mrb[63].mxu0 }
 0x6e7   : > { %11663 = vmatmul.mubr.bf16.gmra.mrb[72].mxu1 %v15431_v55 }
 0x6e8   : > { %11666 = vmatprep.mubr.msk.bf16.mxu1 %vm13475_vm0, %v13474_v5 }
 0x6ea   : > { %v15527_v54 = vpop.f32.mrb[64].mxu0 }
 0x6eb   : > { %v10764_v60 = vpop.f32.mrb[65].mxu0 }
 0x6ec   : > { %v15529_v61 = vpop.f32.mrb[66].mxu0  ;;  %v8174_v60 = vpack.c.bf16 %v8150_v48, %v8149_v45  ;;  %v11740_v45 = vadd.f32 %v15459_v59, %v15520_v52 }
 0x6ed   : > { %v10765_v51 = vpop.f32.mrb[67].mxu0 }
 0x6ef   : > { %11667 = vmatmul.mubr.bf16.gmra.mrb[76].mxu1 %v15438_v7 }
 0x6f0   : > { %11670 = vmatprep.mubr.msk.bf16.mxu1 %vm13475_vm0, %v13474_v5 }
 0x6f2   : > { %v15534_v62 = vpop.f32.mrb[68].mxu0 }
 0x6f3   : > { %v10768_v56 = vpop.f32.mrb[69].mxu0 }
 0x6f4   : > { %v15536_v55 = vpop.f32.mrb[70].mxu0  ;;  %v8152_v56 = vld [vmem:[#allocation2 + $0x1a3] sm:$0xff] }
 0x6f5   : > { %v10769_v50 = vpop.f32.mrb[71].mxu0  ;;  %v8175_v6 = vpack.c.bf16 %v8152_v56, %v8151_v57 }
 0x6f7   : > { %11671 = vmatmul.mubr.bf16.gmra.mrb[80].mxu1 %v8167_v53 }
 0x6f8   : > { %11674 = vmatprep.mubr.msk.bf16.mxu1 %vm13475_vm0, %v13474_v5 }
 0x6fa   : > { %v15540_v63 = vpop.f32.mrb[72].mxu0 }
 0x6fb   : > { %v10772_v7 = vpop.f32.mrb[73].mxu0 }
 0x6fc   : > { %v15542_v4 = vpop.f32.mrb[74].mxu0  ;;  %v8153_v7 = vld [vmem:[#allocation2 + $0x1ab] sm:$0xff] }
 0x6fd   : > { %v10773_v3 = vpop.f32.mrb[75].mxu0 }
 0x6ff   : > { %11675 = vmatmul.mubr.bf16.gmra.mrb[84].mxu1 %v8168_v1 }
 0x700   : > { %11678 = vmatprep.mubr.msk.bf16.mxu1 %vm13475_vm0, %v13474_v5 }
 0x702   : > { %v15546_v10 = vpop.f32.mrb[76].mxu0 }
 0x703   : > { %v10776_v16 = vpop.f32.mrb[77].mxu0 }
 0x704   : > { %v15548_v9 = vpop.f32.mrb[78].mxu0  ;;  %v8176_v16 = vpack.c.bf16 %v8153_v7, %v8153_v7 }
 0x705   : > { %v10777_v18 = vpop.f32.mrb[79].mxu0 }
 0x707   : > { %11679 = vmatmul.mubr.bf16.gmra.mrb[88].mxu1 %v8169_v15 }
 0x708   : > { %11682 = vmatprep.mubr.msk.bf16.mxu1 %vm13475_vm0, %v13474_v5 }
 0x70a   : > { %v15552_v31 = vpop.f32.mrb[80].mxu0 }
 0x70b   : > { %v10780_v34 = vpop.f32.mrb[81].mxu0 }
 0x70c   : > { %v15554_v11 = vpop.f32.mrb[82].mxu0 }
 0x70d   : > { %v10781_v14 = vpop.f32.mrb[83].mxu0 }
 0x70f   : > { %11683 = vmatmul.mubr.bf16.gmra.mrb[0].mxu1 %v8170_v21 }
 0x710   : > { %11686 = vmatprep.mubr.msk.bf16.mxu1 %vm13475_vm0, %v13474_v5 }
 0x712   : > { %v15558_v24 = vpop.f32.mrb[84].mxu0 }
 0x713   : > { %v10784_v19 = vpop.f32.mrb[85].mxu0 }
 0x714   : > { %v15560_v29 = vpop.f32.mrb[86].mxu0 }
 0x715   : > { %v10785_v26 = vpop.f32.mrb[87].mxu0 }
 0x716   : > { %v11728_v26 = vadd.f32 %v15459_v59, %v15513_v46  ;;  %v11746_v46 = vadd.f32 %v15459_v59, %v15522_v58 }
 0x717   : > { %11687 = vmatmul.mubr.bf16.gmra.mrb[4].mxu1 %v8171_v17 }
 0x718   : > { %11690 = vmatprep.mubr.msk.bf16.mxu1 %vm13475_vm0, %v13474_v5 }
 0x71a   : > { %v15564_v32 = vpop.f32.mrb[88].mxu0 }
 0x71b   : > { %v10788_v20 = vpop.f32.mrb[89].mxu0 }
 0x71c   : > { %v15566_v33 = vpop.f32.mrb[90].mxu0 }
 0x71d   : > { %v10789_v38 = vpop.f32.mrb[91].mxu0 }
 0x71f   : > { %11691 = vmatmul.mubr.bf16.gmra.mrb[8].mxu1 %v8172_v35 }
 0x720   : > { %11694 = vmatprep.mubr.msk.bf16.mxu1 %vm13475_vm0, %v13474_v5 }
 0x722   : > { %v15570_v36 = vpop.f32.mrb[92].mxu0 }
 0x723   : > { %v10792_v39 = vpop.f32.mrb[93].mxu0 }
 0x724   : > { %v15572_v40 = vpop.f32.mrb[94].mxu0 }
 0x725   : > { %v10793_v43 = vpop.f32.mrb[95].mxu0 }
 0x727   : > { %11695 = vmatmul.mubr.bf16.gmra.mrb[12].mxu1 %v8173_v41 }
 0x728   : > { %11698 = vmatprep.mubr.msk.bf16.mxu1 %vm13475_vm0, %v13474_v5 }
 0x72a   : > { %v15576_v49 = vpop.f32.mrb[96].mxu0 }
 0x72b   : > { %v10796_v44 = vpop.f32.mrb[97].mxu0 }
 0x72c   : > { %v15578_v47 = vpop.f32.mrb[98].mxu0 }
 0x72d   : > { %v10797_v51 = vpop.f32.mrb[99].mxu0 }
 0x72f   : > { %11699 = vmatmul.mubr.bf16.gmra.mrb[16].mxu1 %v8174_v60 }
 0x730   : > { %11702 = vmatprep.mubr.msk.bf16.mxu1 %vm13475_vm0, %v13474_v5 }
 0x732   : > { %v15582_v0 = vpop.f32.mrb[100].mxu0 }
 0x733   : > { %v10800_v53 = vpop.f32.mrb[101].mxu0 }
 0x734   : > { %v15584_v50 = vpop.f32.mrb[102].mxu0 }
 0x735   : > { %v10801_v2 = vpop.f32.mrb[103].mxu0 }
 0x737   : > { %11703 = vmatmul.mubr.bf16.gmra.mrb[20].mxu1 %v8175_v6 }
 0x738   : > { %11706 = vmatprep.mubr.msk.bf16.mxu1 %vm13475_vm0, %v13474_v5 }
 0x73a   : > { %v15588_v1 = vpop.f32.mrb[104].mxu0 }
 0x73b   : > { %v10804_v3 = vpop.f32.mrb[105].mxu0 }
 0x73c   : > { %v15590_v13 = vpop.f32.mrb[106].mxu0 }
 0x73d   : > { %v10805_v22 = vpop.f32.mrb[107].mxu0 }
 0x73f   : > { %11707 = vmatmul.mubr.bf16.gmra.mrb[24].mxu1 %v8176_v16 }
 0x742   : > { %v15592_v15 = vpop.f32.mrb[108].mxu0 }
 0x743   : > { %v10808_v18 = vpop.f32.mrb[109].mxu0 }
 0x744   : > { %v15594_v12 = vpop.f32.mrb[110].mxu0 }
 0x745   : > { %v10809_v25 = vpop.f32.mrb[111].mxu0 }
 0x746   : > { %v11752_v25 = vadd.f32 %v15459_v59, %v15527_v54 }
 0x74a   : > { %v15596_v34 = vpop.f32.mrb[112].mxu0 }
 0x74b   : > { %v10812_v21 = vpop.f32.mrb[113].mxu0 }
 0x74c   : > { %v15598_v14 = vpop.f32.mrb[114].mxu0 }
 0x74d   : > { %v10813_v5 = vpop.f32.mrb[115].mxu0 }
 0x752   : > { %v15600_v8 = vpop.f32.mrb[116].mxu0 }
 0x753   : > { %v10816_v19 = vpop.f32.mrb[117].mxu0 }
 0x754   : > { %v15602_v23 = vpop.f32.mrb[118].mxu0  ;;  %v11758_v19 = vadd.f32 %v15459_v59, %v15529_v61 }
 0x755   : > { %v10817_v17 = vpop.f32.mrb[119].mxu0 }
 0x762   : > { %v8321_v30 = vpop.f32.mrb[28].mxu1 }
 0x763   : > { %v11731_v20 = vadd.f32 %v11728_v26, %v8321_v30  ;;  %v11620_v35 = vpop.f32.mrb[29].mxu1 }
 0x764   : > { %v8324_v38 = vpop.f32.mrb[30].mxu1 }
 0x765   : > { %v8638_v27 = vadd.f32 3.0, %v11731_v20  ;;  %v11737_v37 = vadd.f32 %v11734_v28, %v8324_v38  ;;  %v11621_v39 = vpop.f32.mrb[31].mxu1 }
 0x767   : > { %v8683_v41 = vmax.f32 %v8638_v27, 0.0  ;;  %v8639_v43 = vadd.f32 3.0, %v11737_v37 }
 0x769   : > { %v8728_v48 = vmin.f32 %v8683_v41, 6.0  ;;  %v8684_v44 = vmax.f32 %v8639_v43, 0.0 }
 0x76a   : > { %v8329_v60 = vpop.f32.mrb[32].mxu1 }
 0x76b   : > { %v8773_v42 = vmul.f32 %v11731_v20, %v8728_v48  ;;  %v8729_v51 = vmin.f32 %v8684_v44, 6.0  ;;  %v11743_v57 = vadd.f32 %v11740_v45, %v8329_v60  ;;  %v11624_v56 = vpop.f32.mrb[33].mxu1  ;;  %v11764_v45 = vadd.f32 %v15459_v59, %v15534_v62 }
 0x76c   : > { %v8332_v53 = vpop.f32.mrb[34].mxu1  ;;  %v11770_v60 = vadd.f32 %v15459_v59, %v15536_v55 }
 0x76d   : > { %v8818_v6 = vmul.f32 0.16666667, %v8773_v42  ;;  %v8774_v2 = vmul.f32 %v11737_v37, %v8729_v51  ;;  %v8640_v7 = vadd.f32 3.0, %v11743_v57  ;;  %v11749_v3 = vadd.f32 %v11746_v46, %v8332_v53  ;;  %v11625_v16 = vpop.f32.mrb[35].mxu1 }
 0x76f   : > { %8863 = vst [vmem:[%s15464_s27] sm:$0xff] %v8818_v6  ;;  %v8819_v22 = vmul.f32 0.16666667, %v8774_v2  ;;  %v8685_v52 = vmax.f32 %v8640_v7, 0.0  ;;  %v8641_v18 = vadd.f32 3.0, %v11749_v3 }
 0x771   : > { %8864 = vst [vmem:[%s15464_s27 + $0x8] sm:$0xff] %v8819_v22  ;;  %v8730_v58 = vmin.f32 %v8685_v52, 6.0  ;;  %v8686_v21 = vmax.f32 %v8641_v18, 0.0  ;;  %v11776_v52 = vadd.f32 %v15459_v59, %v15540_v63 }
 0x772   : > { %v8337_v5 = vpop.f32.mrb[36].mxu1 }
 0x773   : > { %v8775_v17 = vmul.f32 %v11743_v57, %v8730_v58  ;;  %v8731_v26 = vmin.f32 %v8686_v21, 6.0  ;;  %v11755_v30 = vadd.f32 %v11752_v25, %v8337_v5  ;;  %v11628_v28 = vpop.f32.mrb[37].mxu1  ;;  %v11782_v58 = vadd.f32 %v15459_v59, %v15542_v4 }
 0x774   : > { %v8340_v20 = vpop.f32.mrb[38].mxu1 }
 0x775   : > { %v8820_v35 = vmul.f32 0.16666667, %v8775_v17  ;;  %v8776_v38 = vmul.f32 %v11749_v3, %v8731_v26  ;;  %v8642_v27 = vadd.f32 3.0, %v11755_v30  ;;  %v11761_v37 = vadd.f32 %v11758_v19, %v8340_v20  ;;  %v11629_v39 = vpop.f32.mrb[39].mxu1 }
 0x776   : > { %v11788_v39 = vadd.f32 %v15459_v59, %v15546_v10 }
 0x777   : > { %8865 = vst [vmem:[%s15464_s27 + $0x10] sm:$0xff] %v8820_v35  ;;  %v8821_v54 = vmul.f32 0.16666667, %v8776_v38  ;;  %v8687_v41 = vmax.f32 %v8642_v27, 0.0  ;;  %v8643_v43 = vadd.f32 3.0, %v11761_v37 }
 0x779   : > { %8866 = vst [vmem:[%s15464_s27 + $0x18] sm:$0xff] %v8821_v54  ;;  %v8732_v61 = vmin.f32 %v8687_v41, 6.0  ;;  %v8688_v48 = vmax.f32 %v8643_v43, 0.0  ;;  %v11794_v43 = vadd.f32 %v15459_v59, %v15548_v9 }
 0x77a   : > { %v8345_v44 = vpop.f32.mrb[40].mxu1 }
 0x77b   : > { %v8777_v46 = vmul.f32 %v11755_v30, %v8732_v61  ;;  %v8733_v42 = vmin.f32 %v8688_v48, 6.0  ;;  %v11767_v51 = vadd.f32 %v11764_v45, %v8345_v44  ;;  %v11632_v57 = vpop.f32.mrb[41].mxu1 }
 0x77c   : > { %v8348_v56 = vpop.f32.mrb[42].mxu1 }
 0x77d   : > { %v8822_v53 = vmul.f32 0.16666667, %v8777_v46  ;;  %v8778_v6 = vmul.f32 %v11761_v37, %v8733_v42  ;;  %v8644_v2 = vadd.f32 3.0, %v11767_v51  ;;  %v11773_v7 = vadd.f32 %v11770_v60, %v8348_v56  ;;  %v11633_v3 = vpop.f32.mrb[43].mxu1 }
 0x77f   : > { %8867 = vst [vmem:[%s15464_s27 + $0x20] sm:$0xff] %v8822_v53  ;;  %v8823_v62 = vmul.f32 0.16666667, %v8778_v6  ;;  %v8689_v16 = vmax.f32 %v8644_v2, 0.0  ;;  %v8645_v22 = vadd.f32 3.0, %v11773_v7  ;;  %v11800_v2 = vadd.f32 %v15459_v59, %v15552_v31 }
 0x781   : > { %8868 = vst [vmem:[%s15464_s27 + $0x28] sm:$0xff] %v8823_v62  ;;  %v8734_v55 = vmin.f32 %v8689_v16, 6.0  ;;  %v8690_v18 = vmax.f32 %v8645_v22, 0.0  ;;  %v11806_v62 = vadd.f32 %v15459_v59, %v15554_v11 }
 0x782   : > { %v8353_v25 = vpop.f32.mrb[44].mxu1 }
 0x783   : > { %v8779_v21 = vmul.f32 %v11767_v51, %v8734_v55  ;;  %v8735_v5 = vmin.f32 %v8690_v18, 6.0  ;;  %v11779_v19 = vadd.f32 %v11776_v52, %v8353_v25  ;;  %v11636_v17 = vpop.f32.mrb[45].mxu1 }
 0x784   : > { %v8356_v26 = vpop.f32.mrb[46].mxu1 }
 0x785   : > { %v8824_v30 = vmul.f32 0.16666667, %v8779_v21  ;;  %v8780_v28 = vmul.f32 %v11773_v7, %v8735_v5  ;;  %v8646_v20 = vadd.f32 3.0, %v11779_v19  ;;  %v11785_v35 = vadd.f32 %v11782_v58, %v8356_v26  ;;  %v11637_v38 = vpop.f32.mrb[47].mxu1 }
 0x787   : > { %8869 = vst [vmem:[%s15464_s27 + $0x30] sm:$0xff] %v8824_v30  ;;  %v8825_v63 = vmul.f32 0.16666667, %v8780_v28  ;;  %v8691_v27 = vmax.f32 %v8646_v20, 0.0  ;;  %v8647_v37 = vadd.f32 3.0, %v11785_v35  ;;  %v11812_v30 = vadd.f32 %v15459_v59, %v15558_v24 }
 0x789   : > { %8870 = vst [vmem:[%s15464_s27 + $0x38] sm:$0xff] %v8825_v63  ;;  %v8736_v4 = vmin.f32 %v8691_v27, 6.0  ;;  %v8692_v54 = vmax.f32 %v8647_v37, 0.0 }
 0x78a   : > { %v8361_v41 = vpop.f32.mrb[48].mxu1 }
 0x78b   : > { %v8781_v45 = vmul.f32 %v11779_v19, %v8736_v4  ;;  %v8737_v61 = vmin.f32 %v8692_v54, 6.0  ;;  %v11791_v48 = vadd.f32 %v11788_v39, %v8361_v41  ;;  %v11640_v44 = vpop.f32.mrb[49].mxu1 }
 0x78c   : > { %v8364_v60 = vpop.f32.mrb[50].mxu1  ;;  %v11824_v44 = vadd.f32 %v15459_v59, %v15564_v32 }
 0x78d   : > { %v8826_v46 = vmul.f32 0.16666667, %v8781_v45  ;;  %v8782_v42 = vmul.f32 %v11785_v35, %v8737_v61  ;;  %v8648_v51 = vadd.f32 3.0, %v11791_v48  ;;  %v11797_v57 = vadd.f32 %v11794_v43, %v8364_v60  ;;  %v11641_v56 = vpop.f32.mrb[51].mxu1 }
 0x78e   : > { %v11818_v35 = vadd.f32 %v15459_v59, %v15560_v29 }
 0x78f   : > { %8871 = vst [vmem:[%s15464_s27 + $0x40] sm:$0xff] %v8826_v46  ;;  %v8827_v10 = vmul.f32 0.16666667, %v8782_v42  ;;  %v8693_v53 = vmax.f32 %v8648_v51, 0.0  ;;  %v8649_v6 = vadd.f32 3.0, %v11797_v57  ;;  %v11830_v42 = vadd.f32 %v15459_v59, %v15566_v33 }
 0x791   : > { %8872 = vst [vmem:[%s15464_s27 + $0x48] sm:$0xff] %v8827_v10  ;;  %v8738_v9 = vmin.f32 %v8693_v53, 6.0  ;;  %v8694_v7 = vmax.f32 %v8649_v6, 0.0 }
 0x792   : > { %v8369_v3 = vpop.f32.mrb[52].mxu1 }
 0x793   : > { %v8783_v16 = vmul.f32 %v11791_v48, %v8738_v9  ;;  %v8739_v22 = vmin.f32 %v8694_v7, 6.0  ;;  %v11803_v52 = vadd.f32 %v11800_v2, %v8369_v3  ;;  %v11644_v55 = vpop.f32.mrb[53].mxu1 }
 0x794   : > { %v8372_v18 = vpop.f32.mrb[54].mxu1 }
 0x795   : > { %v8828_v25 = vmul.f32 0.16666667, %v8783_v16  ;;  %v8784_v58 = vmul.f32 %v11797_v57, %v8739_v22  ;;  %v8650_v21 = vadd.f32 3.0, %v11803_v52  ;;  %v11809_v5 = vadd.f32 %v11806_v62, %v8372_v18  ;;  %v11645_v19 = vpop.f32.mrb[55].mxu1 }
 0x796   : > { %v11836_v22 = vadd.f32 %v15459_v59, %v15570_v36  ;;  %v11842_v18 = vadd.f32 %v15459_v59, %v15572_v40 }
 0x797   : > { %8873 = vst [vmem:[%s15464_s27 + $0x50] sm:$0xff] %v8828_v25  ;;  %v8829_v31 = vmul.f32 0.16666667, %v8784_v58  ;;  %v8695_v17 = vmax.f32 %v8650_v21, 0.0  ;;  %v8651_v26 = vadd.f32 3.0, %v11809_v5 }
 0x799   : > { %8874 = vst [vmem:[%s15464_s27 + $0x58] sm:$0xff] %v8829_v31  ;;  %v8740_v11 = vmin.f32 %v8695_v17, 6.0  ;;  %v8696_v28 = vmax.f32 %v8651_v26, 0.0 }
 0x79a   : > { %v8377_v20 = vpop.f32.mrb[56].mxu1 }
 0x79b   : > { %v8785_v38 = vmul.f32 %v11803_v52, %v8740_v11  ;;  %v8741_v63 = vmin.f32 %v8696_v28, 6.0  ;;  %v11815_v27 = vadd.f32 %v11812_v30, %v8377_v20  ;;  %v11648_v37 = vpop.f32.mrb[57].mxu1 }
 0x79c   : > { %v8380_v39 = vpop.f32.mrb[58].mxu1 }
 0x79d   : > { %v8830_v4 = vmul.f32 0.16666667, %v8785_v38  ;;  %v8786_v54 = vmul.f32 %v11809_v5, %v8741_v63  ;;  %v8652_v41 = vadd.f32 3.0, %v11815_v27  ;;  %v11821_v43 = vadd.f32 %v11818_v35, %v8380_v39  ;;  %v11649_v45 = vpop.f32.mrb[59].mxu1 }
 0x79e   : > { %v11848_v35 = vadd.f32 %v15459_v59, %v15576_v49 }
 0x79f   : > { %8875 = vst [vmem:[%s15464_s27 + $0x60] sm:$0xff] %v8830_v4  ;;  %v8831_v24 = vmul.f32 0.16666667, %v8786_v54  ;;  %v8697_v61 = vmax.f32 %v8652_v41, 0.0  ;;  %v8653_v48 = vadd.f32 3.0, %v11821_v43 }
 0x7a1   : > { %8876 = vst [vmem:[%s15464_s27 + $0x68] sm:$0xff] %v8831_v24  ;;  %v8742_v29 = vmin.f32 %v8697_v61, 6.0  ;;  %v8698_v60 = vmax.f32 %v8653_v48, 0.0 }
 0x7a2   : > { %v8385_v46 = vpop.f32.mrb[60].mxu1 }
 0x7a3   : > { %v8787_v51 = vmul.f32 %v11815_v27, %v8742_v29  ;;  %v8743_v57 = vmin.f32 %v8698_v60, 6.0  ;;  %v11827_v56 = vadd.f32 %v11824_v44, %v8385_v46  ;;  %v11652_v10 = vpop.f32.mrb[61].mxu1  ;;  %v11854_v27 = vadd.f32 %v15459_v59, %v15578_v47 }
 0x7a4   : > { %v8388_v53 = vpop.f32.mrb[62].mxu1  ;;  %v11860_v60 = vadd.f32 %v15459_v59, %v15582_v0 }
 0x7a5   : > { %v8832_v6 = vmul.f32 0.16666667, %v8787_v51  ;;  %v8788_v2 = vmul.f32 %v11821_v43, %v8743_v57  ;;  %v8654_v9 = vadd.f32 3.0, %v11827_v56  ;;  %v11833_v7 = vadd.f32 %v11830_v42, %v8388_v53  ;;  %v11653_v3 = vpop.f32.mrb[63].mxu1 }
 0x7a6   : > { %v11866_v51 = vadd.f32 %v15459_v59, %v15584_v50 }
 0x7a7   : > { %8877 = vst [vmem:[%s15464_s27 + $0x70] sm:$0xff] %v8832_v6  ;;  %v8833_v32 = vmul.f32 0.16666667, %v8788_v2  ;;  %v8699_v62 = vmax.f32 %v8654_v9, 0.0  ;;  %v8655_v16 = vadd.f32 3.0, %v11833_v7 }
 0x7a9   : > { %8878 = vst [vmem:[%s15464_s27 + $0x78] sm:$0xff] %v8833_v32  ;;  %v8744_v33 = vmin.f32 %v8699_v62, 6.0  ;;  %v8700_v52 = vmax.f32 %v8655_v16, 0.0 }
 0x7aa   : > { %v8393_v55 = vpop.f32.mrb[64].mxu1 }
 0x7ab   : > { %v8789_v25 = vmul.f32 %v11827_v56, %v8744_v33  ;;  %v8745_v58 = vmin.f32 %v8700_v52, 6.0  ;;  %v11839_v21 = vadd.f32 %v11836_v22, %v8393_v55  ;;  %v11656_v5 = vpop.f32.mrb[65].mxu1  ;;  %v11872_v22 = vadd.f32 %v15459_v59, %v15588_v1 }
 0x7ac   : > { %v8396_v19 = vpop.f32.mrb[66].mxu1  ;;  %v11878_v55 = vadd.f32 %v15459_v59, %v15590_v13 }
 0x7ad   : > { %v8834_v31 = vmul.f32 0.16666667, %v8789_v25  ;;  %v8790_v17 = vmul.f32 %v11833_v7, %v8745_v58  ;;  %v8656_v26 = vadd.f32 3.0, %v11839_v21  ;;  %v11845_v30 = vadd.f32 %v11842_v18, %v8396_v19  ;;  %v11657_v11 = vpop.f32.mrb[67].mxu1 }
 0x7af   : > { %8879 = vst [vmem:[%s15464_s27 + $0x80] sm:$0xff] %v8834_v31  ;;  %v8835_v36 = vmul.f32 0.16666667, %v8790_v17  ;;  %v8701_v28 = vmax.f32 %v8656_v26, 0.0  ;;  %v8657_v20 = vadd.f32 3.0, %v11845_v30 }
 0x7b1   : > { %8880 = vst [vmem:[%s15464_s27 + $0x88] sm:$0xff] %v8835_v36  ;;  %v8746_v40 = vmin.f32 %v8701_v28, 6.0  ;;  %v8702_v38 = vmax.f32 %v8657_v20, 0.0  ;;  %v11884_v28 = vadd.f32 %v15459_v59, %v15592_v15 }
 0x7b2   : > { %v8401_v63 = vpop.f32.mrb[68].mxu1 }
 0x7b3   : > { %v8791_v37 = vmul.f32 %v11839_v21, %v8746_v40  ;;  %v8747_v39 = vmin.f32 %v8702_v38, 6.0  ;;  %v11851_v4 = vadd.f32 %v11848_v35, %v8401_v63  ;;  %v11660_v54 = vpop.f32.mrb[69].mxu1  ;;  %v11890_v40 = vadd.f32 %v15459_v59, %v15594_v12 }
 0x7b4   : > { %v8404_v41 = vpop.f32.mrb[70].mxu1 }
 0x7b5   : > { %v8836_v43 = vmul.f32 0.16666667, %v8791_v37  ;;  %v8792_v45 = vmul.f32 %v11845_v30, %v8747_v39  ;;  %v8658_v24 = vadd.f32 3.0, %v11851_v4  ;;  %v11857_v61 = vadd.f32 %v11854_v27, %v8404_v41  ;;  %v11661_v48 = vpop.f32.mrb[71].mxu1 }
 0x7b6   : > { %v11896_v48 = vadd.f32 %v15459_v59, %v15596_v34 }
 0x7b7   : > { %8881 = vst [vmem:[%s15464_s27 + $0x90] sm:$0xff] %v8836_v43  ;;  %v8837_v49 = vmul.f32 0.16666667, %v8792_v45  ;;  %v8703_v44 = vmax.f32 %v8658_v24, 0.0  ;;  %v8659_v29 = vadd.f32 3.0, %v11857_v61 }
 0x7b9   : > { %8882 = vst [vmem:[%s15464_s27 + $0x98] sm:$0xff] %v8837_v49  ;;  %v8748_v47 = vmin.f32 %v8703_v44, 6.0  ;;  %v8704_v46 = vmax.f32 %v8659_v29, 0.0  ;;  %v11902_v29 = vadd.f32 %v15459_v59, %v15598_v14 }
 0x7ba   : > { %v8409_v42 = vpop.f32.mrb[72].mxu1 }
 0x7bb   : > { %v8793_v57 = vmul.f32 %v11851_v4, %v8748_v47  ;;  %v8749_v56 = vmin.f32 %v8704_v46, 6.0  ;;  %v11863_v10 = vadd.f32 %v11860_v60, %v8409_v42  ;;  %v11664_v53 = vpop.f32.mrb[73].mxu1 }
 0x7bc   : > { %v8412_v6 = vpop.f32.mrb[74].mxu1 }
 0x7bd   : > { %v8838_v2 = vmul.f32 0.16666667, %v8793_v57  ;;  %v8794_v9 = vmul.f32 %v11857_v61, %v8749_v56  ;;  %v8660_v7 = vadd.f32 3.0, %v11863_v10  ;;  %v11869_v3 = vadd.f32 %v11866_v51, %v8412_v6  ;;  %v11665_v32 = vpop.f32.mrb[75].mxu1 }
 0x7bf   : > { %8883 = vst [vmem:[%s15464_s27 + $0xa0] sm:$0xff] %v8838_v2  ;;  %v8839_v0 = vmul.f32 0.16666667, %v8794_v9  ;;  %v8705_v62 = vmax.f32 %v8660_v7, 0.0  ;;  %v8661_v16 = vadd.f32 3.0, %v11869_v3  ;;  %v11908_v7 = vadd.f32 %v15459_v59, %v15600_v8 }
 0x7c1   : > { %8884 = vst [vmem:[%s15464_s27 + $0xa8] sm:$0xff] %v8839_v0  ;;  %v8750_v50 = vmin.f32 %v8705_v62, 6.0  ;;  %v8706_v33 = vmax.f32 %v8661_v16, 0.0  ;;  %v11914_v0 = vadd.f32 %v15459_v59, %v15602_v23 }
 0x7c2   : > { %v8417_v52 = vpop.f32.mrb[76].mxu1 }
 0x7c3   : > { %v8795_v18 = vmul.f32 %v11863_v10, %v8750_v50  ;;  %v8751_v25 = vmin.f32 %v8706_v33, 6.0  ;;  %v11875_v58 = vadd.f32 %v11872_v22, %v8417_v52  ;;  %v11668_v21 = vpop.f32.mrb[77].mxu1 }
 0x7c4   : > { %v8420_v5 = vpop.f32.mrb[78].mxu1 }
 0x7c5   : > { %v8840_v19 = vmul.f32 0.16666667, %v8795_v18  ;;  %v8796_v31 = vmul.f32 %v11869_v3, %v8751_v25  ;;  %v8662_v17 = vadd.f32 3.0, %v11875_v58  ;;  %v11881_v26 = vadd.f32 %v11878_v55, %v8420_v5  ;;  %v11669_v30 = vpop.f32.mrb[79].mxu1 }
 0x7c7   : > { %8885 = vst [vmem:[%s15464_s27 + $0xb0] sm:$0xff] %v8840_v19  ;;  %v8841_v1 = vmul.f32 0.16666667, %v8796_v31  ;;  %v8707_v11 = vmax.f32 %v8662_v17, 0.0  ;;  %v8663_v36 = vadd.f32 3.0, %v11881_v26  ;;  %v11922_v31 = vld [vmem:[%s15464_s27 + $0x100] sm:$0xff] }
 0x7c9   : > { %8886 = vst [vmem:[%s15464_s27 + $0xb8] sm:$0xff] %v8841_v1  ;;  %v8752_v13 = vmin.f32 %v8707_v11, 6.0  ;;  %v8708_v20 = vmax.f32 %v8663_v36, 0.0  ;;  %v11928_v36 = vld [vmem:[%s15464_s27 + $0x108] sm:$0xff] }
 0x7ca   : > { %v8425_v35 = vpop.f32.mrb[80].mxu1 }
 0x7cb   : > { %v8797_v38 = vmul.f32 %v11875_v58, %v8752_v13  ;;  %v8753_v63 = vmin.f32 %v8708_v20, 6.0  ;;  %v11887_v27 = vadd.f32 %v11884_v28, %v8425_v35  ;;  %v11672_v37 = vpop.f32.mrb[81].mxu1 }
 0x7cc   : > { %v8428_v39 = vpop.f32.mrb[82].mxu1 }
 0x7cd   : > { %v8842_v4 = vmul.f32 0.16666667, %v8797_v38  ;;  %v8798_v54 = vmul.f32 %v11881_v26, %v8753_v63  ;;  %v8664_v41 = vadd.f32 3.0, %v11887_v27  ;;  %v11893_v43 = vadd.f32 %v11890_v40, %v8428_v39  ;;  %v11673_v45 = vpop.f32.mrb[83].mxu1 }
 0x7cf   : > { %8887 = vst [vmem:[%s15464_s27 + $0xc0] sm:$0xff] %v8842_v4  ;;  %v8843_v15 = vmul.f32 0.16666667, %v8798_v54  ;;  %v8709_v24 = vmax.f32 %v8664_v41, 0.0  ;;  %v8665_v61 = vadd.f32 3.0, %v11893_v43  ;;  %v11934_v54 = vld [vmem:[%s15464_s27 + $0x110] sm:$0xff] }
 0x7d1   : > { %8888 = vst [vmem:[%s15464_s27 + $0xc8] sm:$0xff] %v8843_v15  ;;  %v8754_v12 = vmin.f32 %v8709_v24, 6.0  ;;  %v8710_v49 = vmax.f32 %v8665_v61, 0.0  ;;  %v11940_v61 = vld [vmem:[%s15464_s27 + $0x118] sm:$0xff] }
 0x7d2   : > { %v8433_v44 = vpop.f32.mrb[84].mxu1 }
 0x7d3   : > { %v8799_v60 = vmul.f32 %v11887_v27, %v8754_v12  ;;  %v8755_v47 = vmin.f32 %v8710_v49, 6.0  ;;  %v11899_v46 = vadd.f32 %v11896_v48, %v8433_v44  ;;  %v11676_v42 = vpop.f32.mrb[85].mxu1 }
 0x7d4   : > { %v8436_v51 = vpop.f32.mrb[86].mxu1 }
 0x7d5   : > { %v8844_v57 = vmul.f32 0.16666667, %v8799_v60  ;;  %v8800_v56 = vmul.f32 %v11893_v43, %v8755_v47  ;;  %v8666_v10 = vadd.f32 3.0, %v11899_v46  ;;  %v11905_v53 = vadd.f32 %v11902_v29, %v8436_v51  ;;  %v11677_v6 = vpop.f32.mrb[87].mxu1 }
 0x7d7   : > { %8889 = vst [vmem:[%s15464_s27 + $0xd0] sm:$0xff] %v8844_v57  ;;  %v8845_v34 = vmul.f32 0.16666667, %v8800_v56  ;;  %v8711_v2 = vmax.f32 %v8666_v10, 0.0  ;;  %v8667_v9 = vadd.f32 3.0, %v11905_v53  ;;  %v11946_v56 = vld [vmem:[%s15464_s27 + $0x120] sm:$0xff] }
 0x7d9   : > { %8890 = vst [vmem:[%s15464_s27 + $0xd8] sm:$0xff] %v8845_v34  ;;  %v8756_v14 = vmin.f32 %v8711_v2, 6.0  ;;  %v8712_v3 = vmax.f32 %v8667_v9, 0.0  ;;  %v11952_v9 = vld [vmem:[%s15464_s27 + $0x128] sm:$0xff] }
 0x7da   : > { %v8441_v32 = vpop.f32.mrb[88].mxu1 }
 0x7db   : > { %v8801_v62 = vmul.f32 %v11899_v46, %v8756_v14  ;;  %v8757_v16 = vmin.f32 %v8712_v3, 6.0  ;;  %v11911_v22 = vadd.f32 %v11908_v7, %v8441_v32  ;;  %v11680_v50 = vpop.f32.mrb[89].mxu1 }
 0x7dc   : > { %v8444_v33 = vpop.f32.mrb[90].mxu1 }
 0x7dd   : > { %v8846_v52 = vmul.f32 0.16666667, %v8801_v62  ;;  %v8802_v55 = vmul.f32 %v11905_v53, %v8757_v16  ;;  %v8668_v18 = vadd.f32 3.0, %v11911_v22  ;;  %v11917_v25 = vadd.f32 %v11914_v0, %v8444_v33  ;;  %v11681_v8 = vpop.f32.mrb[91].mxu1 }
 0x7df   : > { %8891 = vst [vmem:[%s15464_s27 + $0xe0] sm:$0xff] %v8846_v52  ;;  %v8847_v58 = vmul.f32 0.16666667, %v8802_v55  ;;  %v8713_v21 = vmax.f32 %v8668_v18, 0.0  ;;  %v8669_v5 = vadd.f32 3.0, %v11917_v25  ;;  %v11958_v55 = vld [vmem:[%s15464_s27 + $0x130] sm:$0xff] }
 0x7e1   : > { %8892 = vst [vmem:[%s15464_s27 + $0xe8] sm:$0xff] %v8847_v58  ;;  %v8758_v19 = vmin.f32 %v8713_v21, 6.0  ;;  %v8714_v59 = vmax.f32 %v8669_v5, 0.0  ;;  %v11964_v5 = vld [vmem:[%s15464_s27 + $0x138] sm:$0xff] }
 0x7e2   : > { %v8449_v23 = vpop.f32.mrb[0].mxu1 }
 0x7e3   : > { %v8803_v17 = vmul.f32 %v11911_v22, %v8758_v19  ;;  %v8759_v26 = vmin.f32 %v8714_v59, 6.0  ;;  %v11923_v30 = vadd.f32 %v11922_v31, %v8449_v23  ;;  %v11684_v1 = vpop.f32.mrb[1].mxu1 }
 0x7e4   : > { %v8452_v11 = vpop.f32.mrb[2].mxu1 }
 0x7e5   : > { %v8848_v28 = vmul.f32 0.16666667, %v8803_v17  ;;  %v8804_v13 = vmul.f32 %v11917_v25, %v8759_v26  ;;  %v8670_v20 = vadd.f32 3.0, %v11923_v30  ;;  %v11929_v35 = vadd.f32 %v11928_v36, %v8452_v11  ;;  %v11685_v40 = vpop.f32.mrb[3].mxu1 }
 0x7e7   : > { %8893 = vst [vmem:[%s15464_s27 + $0xf0] sm:$0xff] %v8848_v28  ;;  %v8849_v38 = vmul.f32 0.16666667, %v8804_v13  ;;  %v8715_v63 = vmax.f32 %v8670_v20, 0.0  ;;  %v8671_v27 = vadd.f32 3.0, %v11929_v35  ;;  %v11970_v13 = vld [vmem:[%s15464_s27 + $0x140] sm:$0xff] }
 0x7e9   : > { %8894 = vst [vmem:[%s15464_s27 + $0xf8] sm:$0xff] %v8849_v38  ;;  %v8760_v37 = vmin.f32 %v8715_v63, 6.0  ;;  %v8716_v39 = vmax.f32 %v8671_v27, 0.0  ;;  %v11976_v27 = vld [vmem:[%s15464_s27 + $0x148] sm:$0xff] }
 0x7ea   : > { %v8457_v4 = vpop.f32.mrb[4].mxu1 }
 0x7eb   : > { %v8805_v41 = vmul.f32 %v11923_v30, %v8760_v37  ;;  %v8761_v43 = vmin.f32 %v8716_v39, 6.0  ;;  %v11935_v45 = vadd.f32 %v11934_v54, %v8457_v4  ;;  %v11688_v15 = vpop.f32.mrb[5].mxu1 }
 0x7ec   : > { %v8460_v24 = vpop.f32.mrb[6].mxu1 }
 0x7ed   : > { %v8850_v48 = vmul.f32 0.16666667, %v8805_v41  ;;  %v8806_v12 = vmul.f32 %v11929_v35, %v8761_v43  ;;  %v8672_v49 = vadd.f32 3.0, %v11935_v45  ;;  %v11941_v44 = vadd.f32 %v11940_v61, %v8460_v24  ;;  %v11689_v29 = vpop.f32.mrb[7].mxu1 }
 0x7ef   : > { %8895 = vst [vmem:[%s15464_s27 + $0x100] sm:$0xff] %v8850_v48  ;;  %v8851_v60 = vmul.f32 0.16666667, %v8806_v12  ;;  %v8717_v47 = vmax.f32 %v8672_v49, 0.0  ;;  %v8673_v46 = vadd.f32 3.0, %v11941_v44  ;;  %v11982_v12 = vld [vmem:[%s15464_s27 + $0x150] sm:$0xff] }
 0x7f1   : > { %8896 = vst [vmem:[%s15464_s27 + $0x108] sm:$0xff] %v8851_v60  ;;  %v8762_v42 = vmin.f32 %v8717_v47, 6.0  ;;  %v8718_v51 = vmax.f32 %v8673_v46, 0.0  ;;  %v11988_v46 = vld [vmem:[%s15464_s27 + $0x158] sm:$0xff] }
 0x7f2   : > { %v8465_v57 = vpop.f32.mrb[8].mxu1 }
 0x7f3   : > { %v8807_v10 = vmul.f32 %v11935_v45, %v8762_v42  ;;  %v8763_v53 = vmin.f32 %v8718_v51, 6.0  ;;  %v11947_v6 = vadd.f32 %v11946_v56, %v8465_v57  ;;  %v11692_v34 = vpop.f32.mrb[9].mxu1 }
 0x7f4   : > { %v8468_v2 = vpop.f32.mrb[10].mxu1 }
 0x7f5   : > { %v8852_v7 = vmul.f32 0.16666667, %v8807_v10  ;;  %v8808_v14 = vmul.f32 %v11941_v44, %v8763_v53  ;;  %v8674_v3 = vadd.f32 3.0, %v11947_v6  ;;  %v11953_v32 = vadd.f32 %v11952_v9, %v8468_v2  ;;  %v11693_v0 = vpop.f32.mrb[11].mxu1 }
 0x7f7   : > { %8897 = vst [vmem:[%s15464_s27 + $0x110] sm:$0xff] %v8852_v7  ;;  %v8853_v62 = vmul.f32 0.16666667, %v8808_v14  ;;  %v8719_v16 = vmax.f32 %v8674_v3, 0.0  ;;  %v8675_v22 = vadd.f32 3.0, %v11953_v32  ;;  %v11994_v14 = vld [vmem:[%s15464_s27 + $0x160] sm:$0xff] }
 0x7f9   : > { %8898 = vst [vmem:[%s15464_s27 + $0x118] sm:$0xff] %v8853_v62  ;;  %v8764_v50 = vmin.f32 %v8719_v16, 6.0  ;;  %v8720_v33 = vmax.f32 %v8675_v22, 0.0 }
 0x7fa   : > { %v8473_v52 = vpop.f32.mrb[12].mxu1 }
 0x7fb   : > { %v8809_v18 = vmul.f32 %v11947_v6, %v8764_v50  ;;  %v8765_v25 = vmin.f32 %v8720_v33, 6.0  ;;  %v11959_v8 = vadd.f32 %v11958_v55, %v8473_v52  ;;  %v11696_v58 = vpop.f32.mrb[13].mxu1 }
 0x7fc   : > { %v8476_v21 = vpop.f32.mrb[14].mxu1 }
 0x7fd   : > { %v8854_v19 = vmul.f32 0.16666667, %v8809_v18  ;;  %v8810_v59 = vmul.f32 %v11953_v32, %v8765_v25  ;;  %v8676_v23 = vadd.f32 3.0, %v11959_v8  ;;  %v11965_v31 = vadd.f32 %v11964_v5, %v8476_v21  ;;  %v11697_v17 = vpop.f32.mrb[15].mxu1 }
 0x7ff   : > { %8899 = vst [vmem:[%s15464_s27 + $0x120] sm:$0xff] %v8854_v19  ;;  %v8855_v26 = vmul.f32 0.16666667, %v8810_v59  ;;  %v8721_v30 = vmax.f32 %v8676_v23, 0.0  ;;  %v8677_v1 = vadd.f32 3.0, %v11965_v31 }
 0x801   : > { %8900 = vst [vmem:[%s15464_s27 + $0x128] sm:$0xff] %v8855_v26  ;;  %v8766_v11 = vmin.f32 %v8721_v30, 6.0  ;;  %v8722_v36 = vmax.f32 %v8677_v1, 0.0 }
 0x802   : > { %v8481_v28 = vpop.f32.mrb[16].mxu1 }
 0x803   : > { %v8811_v20 = vmul.f32 %v11959_v8, %v8766_v11  ;;  %v8767_v35 = vmin.f32 %v8722_v36, 6.0  ;;  %v11971_v40 = vadd.f32 %v11970_v13, %v8481_v28  ;;  %v11700_v38 = vpop.f32.mrb[17].mxu1 }
 0x804   : > { %v8484_v63 = vpop.f32.mrb[18].mxu1 }
 0x805   : > { %v8856_v37 = vmul.f32 0.16666667, %v8811_v20  ;;  %v8812_v39 = vmul.f32 %v11965_v31, %v8767_v35  ;;  %v8678_v4 = vadd.f32 3.0, %v11971_v40  ;;  %v11977_v54 = vadd.f32 %v11976_v27, %v8484_v63  ;;  %v11701_v41 = vpop.f32.mrb[19].mxu1 }
 0x807   : > { %8901 = vst [vmem:[%s15464_s27 + $0x130] sm:$0xff] %v8856_v37  ;;  %v8857_v43 = vmul.f32 0.16666667, %v8812_v39  ;;  %v8723_v45 = vmax.f32 %v8678_v4, 0.0  ;;  %v8679_v15 = vadd.f32 3.0, %v11977_v54 }
 0x809   : > { %8902 = vst [vmem:[%s15464_s27 + $0x138] sm:$0xff] %v8857_v43  ;;  %v8768_v24 = vmin.f32 %v8723_v45, 6.0  ;;  %v8724_v61 = vmax.f32 %v8679_v15, 0.0 }
 0x80a   : > { %v8489_v48 = vpop.f32.mrb[20].mxu1 }
 0x80b   : > { %v8813_v49 = vmul.f32 %v11971_v40, %v8768_v24  ;;  %v8769_v44 = vmin.f32 %v8724_v61, 6.0  ;;  %v11983_v29 = vadd.f32 %v11982_v12, %v8489_v48  ;;  %v11704_v60 = vpop.f32.mrb[21].mxu1 }
 0x80c   : > { %v8492_v47 = vpop.f32.mrb[22].mxu1 }
 0x80d   : > { %v8858_v42 = vmul.f32 0.16666667, %v8813_v49  ;;  %v8814_v51 = vmul.f32 %v11977_v54, %v8769_v44  ;;  %v8680_v57 = vadd.f32 3.0, %v11983_v29  ;;  %v11989_v56 = vadd.f32 %v11988_v46, %v8492_v47  ;;  %v11705_v10 = vpop.f32.mrb[23].mxu1 }
 0x80f   : > { %8903 = vst [vmem:[%s15464_s27 + $0x140] sm:$0xff] %v8858_v42  ;;  %v8859_v53 = vmul.f32 0.16666667, %v8814_v51  ;;  %v8725_v6 = vmax.f32 %v8680_v57, 0.0  ;;  %v8681_v34 = vadd.f32 3.0, %v11989_v56 }
 0x811   : > { %8904 = vst [vmem:[%s15464_s27 + $0x148] sm:$0xff] %v8859_v53  ;;  %v8770_v2 = vmin.f32 %v8725_v6, 6.0  ;;  %v8726_v9 = vmax.f32 %v8681_v34, 0.0 }
 0x812   : > { %v8497_v7 = vpop.f32.mrb[24].mxu1 }
 0x813   : > { %v8815_v3 = vmul.f32 %v11983_v29, %v8770_v2  ;;  %v8771_v32 = vmin.f32 %v8726_v9, 6.0  ;;  %v11995_v0 = vadd.f32 %v11994_v14, %v8497_v7  ;;  %v11708_v62 = vpop.f32.mrb[25].mxu1 }
 0x814   : > { %v8500_v16 = vpop.f32.mrb[26].mxu1 }
 0x815   : > { %v8860_v22 = vmul.f32 0.16666667, %v8815_v3  ;;  %v8816_v50 = vmul.f32 %v11989_v56, %v8771_v32  ;;  %v8682_v33 = vadd.f32 3.0, %v11995_v0  ;;  %v11709_v52 = vpop.f32.mrb[27].mxu1 }
 0x817   : > { %8905 = vst [vmem:[%s15464_s27 + $0x150] sm:$0xff] %v8860_v22  ;;  %v8861_v55 = vmul.f32 0.16666667, %v8816_v50  ;;  %v8727_v18 = vmax.f32 %v8682_v33, 0.0 }
 0x819   : > { %8906 = vst [vmem:[%s15464_s27 + $0x158] sm:$0xff] %v8861_v55  ;;  %v8772_v25 = vmin.f32 %v8727_v18, 6.0 }
 0x81b   : > { %v8817_v8 = vmul.f32 %v11995_v0, %v8772_v25 }
 0x81d   : > { %v8862_v58 = vmul.f32 0.16666667, %v8817_v8 }
 0x81f   : > { %8907 = vst [vmem:[%s15464_s27 + $0x160] sm:$0xff] %v8862_v58 }
 0x820 PF: > { %s14_s15 = sadd.s32 1, %s13472_s15  }
 0x821   : > { %p11_p5 = scmp.ge.s32.totalorder %s14_s15, 4  }
 0x823   :  { %13 = sbr.rel (!%p11_p5) target bundleno = 1 (0x1), region = 81 }

</bundles_post_ra>
